<compile_context>
chip_gen: v7x
topology: tpu7x:2x2x1
jax: 0.10.0
libtpu: 0.0.40
codegen_flags: <defaults>
</compile_context>

<pallas_src>
import math
import functools

import jax
import jax.numpy as jnp
from jax import lax
from jax.experimental import pallas as pl
from jax.experimental.pallas import tpu as pltpu

# ----------------- small synthetic configuration -----------------
VOCAB = 300          # stand-in for len(tokenizer) (~57580 real); deliberately NOT a
                     # multiple of 128 so the ragged-vocab pad/mask path is exercised.
D_MODEL = 32
HEADS = 4
HEAD_DIM = D_MODEL // HEADS
FFN = 64
LAYERS = 2           # decoder_layer
MAX_POS = 16         # max_position_embeddings
LN_EPS = 1e-5
ATTN_SCALE = HEAD_DIM ** -0.5
NEG_INF = -1e9
NEG_BIG = -1e30

ACT_DTYPE = jnp.bfloat16     # inter-kernel activations / MXU operands
WEIGHT_DTYPE = jnp.bfloat16  # matmul weights
PROB_DTYPE = jnp.bfloat16    # predictive probs written to HBM

# Production tile targets (demo dims are smaller -> full-dim blocks).
# All matmul tiles are multiples of 256 to fill the 2x256x256 MXU on v6e/v7x.
TM = 256       # rows (tokens) per tile
TN = 1024      # output features per tile
TK = 512       # contraction per tile
TQ = 128       # query rows per attention tile (EUP budget on v5e)
TKV = 512      # key/value rows per attention tile (flash-style KV streaming)
TV = 2048      # vocab columns per lm_head tile
LANE = 128


def _vmem_limit_bytes():
    """~75% of this generation's VMEM: ~96 MiB on v5e/v6e, ~48 MiB on v7x."""
    try:
        cap = int(pltpu.get_tpu_info().vmem_capacity_bytes)
    except Exception:                       # conservative fallback, valid everywhere
        cap = 64 * 1024 * 1024
    return min(max(cap * 3 // 4, 32 * 1024 * 1024), 112 * 1024 * 1024)


VMEM_LIMIT_BYTES = _vmem_limit_bytes()


def _cparams(semantics):
    return pltpu.CompilerParams(dimension_semantics=semantics,
                                vmem_limit_bytes=VMEM_LIMIT_BYTES)


# ----------------- tiling / padding helpers -----------------
def _round_up(x, m):
    return (x + m - 1) // m * m


def _tile(dim, target, multiple=LANE):
    """Pick (tile, padded_dim): tile is a multiple of `multiple` dividing padded_dim,
    with >=2 tiles whenever dim >= 2*multiple (keeps 'parallel' grid axes shardable
    across v7x's two TensorCores).  Small dims use a single full-dim block (allowed
    by the (8,128) full-dim exception)."""
    if dim < 2 * multiple:
        return dim, dim
    padded = _round_up(dim, multiple)
    t = min(target, padded // 2)
    t = max(multiple, (t // multiple) * multiple)
    while padded % t:
        t -= multiple
    return t, padded


def _pad_axis(a, axis, new_size, value=0):
    pad = new_size - a.shape[axis]
    if pad == 0:
        return a
    widths = [(0, 0)] * a.ndim
    widths[axis] = (0, pad)
    return jnp.pad(a, widths, constant_values=value)


# ======================= tiled matmul (+bias/+GELU/+residual) =======================
def _matmul_kernel(*refs, activation, has_bias, has_residual):
    it = iter(refs)
    x_ref = next(it)
    w_ref = next(it)
    b_ref = next(it) if has_bias else None
    r_ref = next(it) if has_residual else None
    o_ref = next(it)
    acc_ref = next(it)

    k = pl.program_id(2)

    @pl.when(k == 0)
    def _():
        acc_ref[...] = jnp.zeros_like(acc_ref)

    acc_ref[...] += jnp.dot(x_ref[...], w_ref[...],
                            preferred_element_type=jnp.float32)

    @pl.when(k == pl.num_programs(2) - 1)
    def _():
        y = acc_ref[...]
        if has_bias:
            y = y + b_ref[...].astype(jnp.float32)
        if activation == "gelu":
            # TODO(synk): PyTorch MBart uses exact erf-GELU; tanh approximation
            # kept for robust Mosaic lowering.
            y = jax.nn.gelu(y, approximate=True)
        if has_residual:
            y = y + r_ref[...].astype(jnp.float32)
        o_ref[...] = y.astype(o_ref.dtype)


def matmul(x, w, b=None, residual=None, activation=None, out_dtype=None,
           tm=TM, tn=TN, tk=TK):
    """out = act(x @ w + b) [+ residual]; K-tiled, f32 VMEM accumulator.
    Ragged dims are zero-padded to aligned tiles and sliced back.
    TODO(synk): pipeline_mode=pl.Buffered(3) on the weight spec would deepen DMA
    overlap for the weight-streaming fc1/fc2/qkv matmuls."""
    M, K = x.shape
    N = w.shape[1]
    tm, Mp = _tile(M, tm)
    tn, Np = _tile(N, tn)
    tk, Kp = _tile(K, tk)

    xp = _pad_axis(_pad_axis(x, 0, Mp), 1, Kp)
    wp = _pad_axis(_pad_axis(w, 0, Kp), 1, Np)
    grid = (Mp // tm, Np // tn, Kp // tk)

    in_specs = [pl.BlockSpec((tm, tk), lambda i, j, k: (i, k)),
                pl.BlockSpec((tk, tn), lambda i, j, k: (k, j))]
    args = [xp, wp]
    if b is not None:
        in_specs.append(pl.BlockSpec((1, tn), lambda i, j, k: (0, j)))
        args.append(_pad_axis(b.reshape(1, N), 1, Np))
    if residual is not None:
        in_specs.append(pl.BlockSpec((tm, tn), lambda i, j, k: (i, j)))
        args.append(_pad_axis(_pad_axis(residual, 0, Mp), 1, Np))

    kern = functools.partial(_matmul_kernel, activation=activation,
                             has_bias=b is not None,
                             has_residual=residual is not None)
    out = pl.pallas_call(
        kern,
        out_shape=jax.ShapeDtypeStruct((Mp, Np), out_dtype or x.dtype),
        grid=grid,
        in_specs=in_specs,
        out_specs=pl.BlockSpec((tm, tn), lambda i, j, k: (i, j)),
        scratch_shapes=[pltpu.VMEM((tm, tn), jnp.float32)],
        compiler_params=_cparams(("parallel", "parallel", "arbitrary")),
    )(*args)
    return out if (Mp, Np) == (M, N) else out[:M, :N]


# ======================= LayerNorm =======================
def _layernorm_kernel(x_ref, g_ref, b_ref, o_ref):
    x = x_ref[...].astype(jnp.float32)
    mu = jnp.mean(x, axis=-1, keepdims=True)
    var = jnp.mean(jnp.square(x - mu), axis=-1, keepdims=True)
    y = (x - mu) * lax.rsqrt(var + LN_EPS)
    o_ref[...] = (y * g_ref[...] + b_ref[...]).astype(o_ref.dtype)


def layernorm(x, g, b, tm=TM):
    M, D = x.shape
    tm, Mp = _tile(M, tm)
    xp = _pad_axis(x, 0, Mp)
    out = pl.pallas_call(
        _layernorm_kernel,
        out_shape=jax.ShapeDtypeStruct((Mp, D), x.dtype),
        grid=(Mp // tm,),
        in_specs=[pl.BlockSpec((tm, D), lambda i: (i, 0)),
                  pl.BlockSpec((1, D), lambda i: (0, 0)),
                  pl.BlockSpec((1, D), lambda i: (0, 0))],
        out_specs=pl.BlockSpec((tm, D), lambda i: (i, 0)),
        compiler_params=_cparams(("parallel",)),
    )(xp, g.reshape(1, D), b.reshape(1, D))
    return out if Mp == M else out[:M]


# ========== attention: flash-style KV streaming, heads batched, lane-dense store ==========
def _attention_kernel(q_ref, k_ref, v_ref, bias_ref, o_ref,
                      m_ref, l_ref, acc_ref, *, scale, causal):
    nh, tq, hd = q_ref.shape[1], q_ref.shape[2], q_ref.shape[3]
    tkv = k_ref.shape[2]
    kv = pl.program_id(2)
    q_start = pl.program_id(1) * tq
    kv_start = kv * tkv

    @pl.when(kv == 0)
    def _():
        m_ref[...] = jnp.full_like(m_ref, NEG_BIG)
        l_ref[...] = jnp.zeros_like(l_ref)
        acc_ref[...] = jnp.zeros_like(acc_ref)

    def update():
        qh, kh, vh = q_ref[0], k_ref[0], v_ref[0]          # (H, t, hd) bf16
        s = jnp.einsum("hqd,hkd->hqk", qh, kh,
                       preferred_element_type=jnp.float32) * scale
        bias = bias_ref[0].astype(jnp.float32)             # (1, tkv) key bias
        if causal:
            row = lax.broadcasted_iota(jnp.int32, (tq, tkv), 0) + q_start
            col = lax.broadcasted_iota(jnp.int32, (tq, tkv), 1) + kv_start
            bias = bias + jnp.where(col > row, NEG_INF, 0.0)
        s = s + bias                                        # broadcast over heads
        m_prev = m_ref[...]
        m_new = jnp.maximum(m_prev, jnp.max(s, axis=-1, keepdims=True))
        alpha = jnp.exp(m_prev - m_new)
        p = jnp.exp(s - m_new)
        l_ref[...] = alpha * l_ref[...] + jnp.sum(p, axis=-1, keepdims=True)
        acc_ref[...] = alpha * acc_ref[...] + jnp.einsum(
            "hqk,hkd->hqd", p.astype(vh.dtype), vh,
            preferred_element_type=jnp.float32)
        m_ref[...] = m_new

    if causal:
        # Skip KV tiles entirely in the causal future (~2x fewer MXU/exp ops).
        pl.when(kv_start <= q_start + tq - 1)(update)
    else:
        update()

    @pl.when(kv == pl.num_programs(2) - 1)
    def _():
        inv = pl.reciprocal(l_ref[...], approx=True)        # (H, tq, 1)
        o = acc_ref[...] * inv                               # (H, tq, hd) f32
        # Merge heads in-VMEM and do ONE lane-dense (tq, H*hd) store.
        o = jnp.concatenate([o[hh] for hh in range(nh)], axis=-1)
        o_ref[0] = o.astype(o_ref.dtype)


def attention(q, k, v, key_bias=None, *, causal, tq=TQ, tkv=TKV):
    """q/k/v: (B, H, S, hd).  key_bias: (B, 1, Skv) additive bias (0 / -1e9).
    Returns (B, Sq, H*hd) with heads already merged (lane-dense output)."""
    B, H, Sq, hd = q.shape
    Skv = k.shape[2]
    D = H * hd
    tq, Sq_p = _tile(Sq, tq)
    tkv, Skv_p = _tile(Skv, tkv)

    if key_bias is None:
        key_bias = jnp.zeros((B, 1, Skv), jnp.float32)
    q = _pad_axis(q, 2, Sq_p)
    k = _pad_axis(k, 2, Skv_p)
    v = _pad_axis(v, 2, Skv_p)
    # alignment-padded keys are masked out so they never contaminate real queries
    key_bias = _pad_axis(key_bias.astype(jnp.float32), 2, Skv_p, value=NEG_INF)

    kern = functools.partial(_attention_kernel, scale=ATTN_SCALE, causal=causal)
    out = pl.pallas_call(
        kern,
        out_shape=jax.ShapeDtypeStruct((B, Sq_p, D), q.dtype),
        grid=(B, Sq_p // tq, Skv_p // tkv),
        in_specs=[pl.BlockSpec((1, H, tq, hd), lambda b, i, j: (b, 0, i, 0)),
                  pl.BlockSpec((1, H, tkv, hd), lambda b, i, j: (b, 0, j, 0)),
                  pl.BlockSpec((1, H, tkv, hd), lambda b, i, j: (b, 0, j, 0)),
                  pl.BlockSpec((1, 1, tkv), lambda b, i, j: (b, 0, j))],
        out_specs=pl.BlockSpec((1, tq, D), lambda b, i, j: (b, i, 0)),
        scratch_shapes=[pltpu.VMEM((H, tq, 1), jnp.float32),
                        pltpu.VMEM((H, tq, 1), jnp.float32),
                        pltpu.VMEM((H, tq, hd), jnp.float32)],
        compiler_params=_cparams(("parallel", "parallel", "arbitrary")),
    )(q, k, v, key_bias)
    return out if Sq_p == Sq else out[:, :Sq]


# ========== fused lm_head + softmax (vocab-tiled, two passes, no HBM logits) ==========
def _lm_stats_kernel(x_ref, w_ref, m_ref, l_ref, *, tv, v_real):
    j = pl.program_id(1)

    @pl.when(j == 0)
    def _():
        m_ref[...] = jnp.full(m_ref.shape, NEG_BIG, jnp.float32)
        l_ref[...] = jnp.zeros(l_ref.shape, jnp.float32)

    logits = jnp.dot(x_ref[...], w_ref[...], preferred_element_type=jnp.float32)
    if v_real is not None:      # mask zero-padded vocab columns out of the softmax
        col = lax.broadcasted_iota(jnp.int32, logits.shape, 1) + j * tv
        logits = jnp.where(col < v_real, logits, NEG_BIG)
    m_prev = m_ref[...]
    m_new = jnp.maximum(m_prev, jnp.max(logits, axis=-1, keepdims=True))
    l_ref[...] = (l_ref[...] * jnp.exp(m_prev - m_new)
                  + jnp.sum(jnp.exp(logits - m_new), axis=-1, keepdims=True))
    m_ref[...] = m_new


def _lm_probs_kernel(x_ref, w_ref, m_ref, l_ref, o_ref, *, tv, v_real):
    j = pl.program_id(1)
    logits = jnp.dot(x_ref[...], w_ref[...], preferred_element_type=jnp.float32)
    # exact division (not approx reciprocal): these are VBLL predictive probs.
    p = jnp.exp(logits - m_ref[...]) / l_ref[...]
    if v_real is not None:
        col = lax.broadcasted_iota(jnp.int32, logits.shape, 1) + j * tv
        p = jnp.where(col < v_real, p, 0.0)
    o_ref[...] = p.astype(o_ref.dtype)


def lm_head_softmax(x, w, *, tm=TM, tv=TV, probs_dtype=PROB_DTYPE):
    """probs = softmax(x @ w) without ever writing logits to HBM.

    Pass 1 accumulates per-row online max / sum-exp over 2048-wide vocab tiles;
    pass 2 recomputes each logits tile and writes normalized probs in bf16.
    TODO(synk): on v5e/v6e (128 MiB VMEM) a single-pass variant keeping a
    VMEM-resident (tm, V) logits slab would skip the second weight stream; the
    two-pass form is kept because it also fits v7x's 64 MiB VMEM.
    """
    M, K = x.shape
    V = w.shape[1]
    tm, Mp = _tile(M, tm)
    tv, Vp = _tile(V, tv)
    xp = _pad_axis(x, 0, Mp)
    wp = _pad_axis(w, 1, Vp)
    grid = (Mp // tm, Vp // tv)
    v_real = V if Vp != V else None

    x_spec = pl.BlockSpec((tm, K), lambda i, j: (i, 0))
    w_spec = pl.BlockSpec((K, tv), lambda i, j: (0, j))
    stat_spec = pl.BlockSpec((tm, 1), lambda i, j: (i, 0))

    m_row, l_row = pl.pallas_call(
        functools.partial(_lm_stats_kernel, tv=tv, v_real=v_real),
        out_shape=(jax.ShapeDtypeStruct((Mp, 1), jnp.float32),
                   jax.ShapeDtypeStruct((Mp, 1), jnp.float32)),
        grid=grid,
        in_specs=[x_spec, w_spec],
        out_specs=(stat_spec, stat_spec),
        compiler_params=_cparams(("parallel", "arbitrary")),
    )(xp, wp)

    probs = pl.pallas_call(
        functools.partial(_lm_probs_kernel, tv=tv, v_real=v_real),
        out_shape=jax.ShapeDtypeStruct((Mp, Vp), probs_dtype),
        grid=grid,
        in_specs=[x_spec, w_spec, stat_spec, stat_spec],
        out_specs=pl.BlockSpec((tm, tv), lambda i, j: (i, j)),
        compiler_params=_cparams(("parallel", "parallel")),
    )(xp, wp, m_row, l_row)
    return probs if (Mp, Vp) == (M, V) else probs[:M, :V]


# ======================= parameters (deterministic synthetic init) =======================
def init_params(key):
    keys = iter(jax.random.split(key, 128))

    def lin(i, o):
        return {"w": (0.02 * jax.random.normal(next(keys), (i, o), jnp.float32)
                      ).astype(WEIGHT_DTYPE),
                "b": jnp.zeros((o,), jnp.float32)}

    def ln(d):
        return {"g": jnp.ones((d,), jnp.float32), "b": jnp.zeros((d,), jnp.float32)}

    params = {
        "embed_tokens": 0.02 * jax.random.normal(next(keys), (VOCAB, D_MODEL), jnp.float32),
        "embed_positions": 0.02 * jax.random.normal(next(keys), (MAX_POS + 2, D_MODEL), jnp.float32),
        "ln_emb": ln(D_MODEL),
        "layers": [],
        "ln_final": ln(D_MODEL),
        # MBart lm_head is bias-free.
        "lm_head_w": (0.02 * jax.random.normal(next(keys), (D_MODEL, VOCAB), jnp.float32)
                      ).astype(WEIGHT_DTYPE),
    }
    for _ in range(LAYERS):
        params["layers"].append({
            "ln_self": ln(D_MODEL),
            "qkv": lin(D_MODEL, 3 * D_MODEL),     # fused q/k/v projection
            "o": lin(D_MODEL, D_MODEL),
            "ln_cross": ln(D_MODEL),
            "cq": lin(D_MODEL, D_MODEL),
            "ckv": lin(D_MODEL, 2 * D_MODEL),     # fused cross k/v projection
            "co": lin(D_MODEL, D_MODEL),
            "ln_ffn": ln(D_MODEL),
            "fc1": lin(D_MODEL, FFN), "fc2": lin(FFN, D_MODEL),
        })
    return params


# ======================= forward (glue in JAX, compute in Pallas) =======================
def bart_decoder_forward(params, input_ids, attention_mask, encoder_hidden_states):
    """Returns VBLL predictive probs of shape (B, S, VOCAB)."""
    B, S = input_ids.shape
    ENC_S = encoder_hidden_states.shape[1]

    # Pad the decoder sequence once so every downstream kernel sees aligned M.
    _, S_pad = _tile(S, TQ)
    input_ids = _pad_axis(input_ids, 1, S_pad)
    attention_mask = _pad_axis(attention_mask, 1, S_pad)     # pad tokens -> masked keys
    M = B * S_pad

    # --- embeddings (gathers kept in plain-JAX glue) ---
    x = jnp.take(params["embed_tokens"], input_ids, axis=0) * math.sqrt(D_MODEL)
    pos_ids = jnp.arange(S_pad, dtype=jnp.int32) + 2         # MBart learned-pos offset
    pos_ids = jnp.minimum(pos_ids, params["embed_positions"].shape[0] - 1)
    x = x + jnp.take(params["embed_positions"], pos_ids, axis=0)[None, :, :]
    h = x.reshape(M, D_MODEL).astype(ACT_DTYPE)
    h = layernorm(h, params["ln_emb"]["g"], params["ln_emb"]["b"])

    # Tiny (B,1,S) key-padding bias; the causal part is generated in-kernel.
    self_bias = ((1.0 - attention_mask.astype(jnp.float32)) * NEG_INF).reshape(B, 1, S_pad)
    # Reference passes no encoder mask (unmasked cross-attn); alignment padding
    # of encoder states (if any) is masked inside attention().
    cross_bias = jnp.zeros((B, 1, ENC_S), jnp.float32)

    enc2 = encoder_hidden_states.reshape(B * ENC_S, D_MODEL).astype(ACT_DTYPE)

    def heads(t, b_, s_):       # (b_*s_, D) -> (b_, H, s_, hd)
        return t.reshape(b_, s_, HEADS, HEAD_DIM).transpose(0, 2, 1, 3)

    for lp in params["layers"]:
        # ---- self attention (pre-LN) ----
        res = h
        hn = layernorm(h, lp["ln_self"]["g"], lp["ln_self"]["b"])
        qkv = matmul(hn, lp["qkv"]["w"], lp["qkv"]["b"])
        q = heads(qkv[:, :D_MODEL], B, S_pad)
        k = heads(qkv[:, D_MODEL:2 * D_MODEL], B, S_pad)
        v = heads(qkv[:, 2 * D_MODEL:], B, S_pad)
        a = attention(q, k, v, self_bias, causal=True)
        h = matmul(a.reshape(M, D_MODEL), lp["o"]["w"], lp["o"]["b"], residual=res)

        # ---- cross attention to encoder hidden states ----
        res = h
        hn = layernorm(h, lp["ln_cross"]["g"], lp["ln_cross"]["b"])
        q = heads(matmul(hn, lp["cq"]["w"], lp["cq"]["b"]), B, S_pad)
        kv = matmul(enc2, lp["ckv"]["w"], lp["ckv"]["b"])
        k = heads(kv[:, :D_MODEL], B, ENC_S)
        v = heads(kv[:, D_MODEL:], B, ENC_S)
        a = attention(q, k, v, cross_bias, causal=False)
        h = matmul(a.reshape(M, D_MODEL), lp["co"]["w"], lp["co"]["b"], residual=res)

        # ---- feed-forward (GELU fused into fc1, residual fused into fc2) ----
        res = h
        hn = layernorm(h, lp["ln_ffn"]["g"], lp["ln_ffn"]["b"])
        hn = matmul(hn, lp["fc1"]["w"], lp["fc1"]["b"], activation="gelu")
        h = matmul(hn, lp["fc2"]["w"], lp["fc2"]["b"], residual=res)

    # ---- final layer norm + fused lm_head/softmax (VBLL predictive probs) ----
    h = layernorm(h, params["ln_final"]["g"], params["ln_final"]["b"])
    probs = lm_head_softmax(h, params["lm_head_w"])          # (M, VOCAB)
    probs = probs.reshape(B, S_pad, VOCAB)[:, :S]
    # Original module does .squeeze().view(1, 767, 57580); generically (B, S, V).
    return probs


# ======================= demo =======================
if __name__ == "__main__":
    key = jax.random.PRNGKey(0)
    pkey, ikey, ekey = jax.random.split(key, 3)

    params = init_params(pkey)

    B, S, ENC_S = 2, 8, 16
    input_ids = jax.random.randint(ikey, (B, S), 0, VOCAB, dtype=jnp.int32)
    attention_mask = jnp.ones((B, S), jnp.int32)
    encoder_hidden_states = 0.1 * jax.random.normal(ekey, (B, ENC_S, D_MODEL), jnp.float32)

    fwd = jax.jit(bart_decoder_forward)
    probs = fwd(params, input_ids, attention_mask, encoder_hidden_states)
    probs = jax.block_until_ready(probs)

    assert probs.shape == (B, S, VOCAB), probs.shape
    probs_f32 = probs.astype(jnp.float32)
    assert bool(jnp.all(jnp.isfinite(probs_f32)))
    # rows of predictive probs must sum to 1 (bf16 prob writes -> loose tol)
    row_sums = jnp.sum(probs_f32, axis=-1)
    assert bool(jnp.allclose(row_sums, 1.0, atol=1.5e-2)), row_sums
    print("KERNEL_OK")
</pallas_src>

<mosaic_0001>
module attributes {stable_mosaic.version = 11 : i64} {
  func.func @_matmul_kernel(%arg0: i32, %arg1: i32, %arg2: i32, %arg3: memref<16x32xbf16, #tpu.memory_space<vmem>>, %arg4: memref<32x96xbf16, #tpu.memory_space<vmem>>, %arg5: memref<1x96xf32, #tpu.memory_space<vmem>>, %arg6: memref<16x96xbf16, #tpu.memory_space<vmem>>, %arg7: memref<16x96xf32, #tpu.memory_space<vmem>>) attributes {dimension_semantics = [#tpu.dimension_semantics<parallel>, #tpu.dimension_semantics<parallel>, #tpu.dimension_semantics<arbitrary>], iteration_bounds = array<i64: 1, 1, 1>, scalar_prefetch = 0 : i64, scratch_operands = 1 : i64, tpu.core_type = #tpu.core_type<tc>, window_params = [{transform_indices = @transform_0, window_bounds = array<i64: 16, 32>}, {transform_indices = @transform_1, window_bounds = array<i64: 32, 96>}, {transform_indices = @transform_2, window_bounds = array<i64: 1, 96>}, {transform_indices = @transform_3, window_bounds = array<i64: 16, 96>}]} {
    %c0_i32 = arith.constant 0 : i32
    %0 = arith.cmpi eq, %arg2, %c0_i32 : i32
    %1 = arith.extui %0 : i1 to i32
    %c0_i32_0 = arith.constant 0 : i32
    %2 = arith.cmpi ne, %1, %c0_i32_0 : i32
    scf.if %2 {
      %cst_10 = arith.constant 0.000000e+00 : f32
      %12 = vector.broadcast %cst_10 : f32 to vector<16x96xf32>
      %c0_11 = arith.constant 0 : index
      %c0_12 = arith.constant 0 : index
      %13 = vector.load %arg7[%c0_11, %c0_12] : memref<16x96xf32, #tpu.memory_space<vmem>>, vector<16x96xf32>
      tpu.vector_store %arg7[%c0_11, %c0_12], %12 {strides = array<i32>} : memref<16x96xf32, #tpu.memory_space<vmem>>, vector<16x96xf32>,
    } else {
    }
    %c0 = arith.constant 0 : index
    %c0_1 = arith.constant 0 : index
    %3 = vector.load %arg7[%c0, %c0_1] : memref<16x96xf32, #tpu.memory_space<vmem>>, vector<16x96xf32>
    %c0_2 = arith.constant 0 : index
    %c0_3 = arith.constant 0 : index
    %4 = vector.load %arg3[%c0_2, %c0_3] : memref<16x32xbf16, #tpu.memory_space<vmem>>, vector<16x32xbf16>
    %c0_4 = arith.constant 0 : index
    %c0_5 = arith.constant 0 : index
    %5 = vector.load %arg4[%c0_4, %c0_5] : memref<32x96xbf16, #tpu.memory_space<vmem>>, vector<32x96xbf16>
    %cst = arith.constant dense<0.000000e+00> : vector<16x96xf32>
    %6 = tpu.matmul %4, %5, %cst {dimension_numbers = #tpu.dot_dimension_numbers<[1], [0], [0], [1], [0, 0, 1, 1], [], []>} : vector<16x32xbf16>, vector<32x96xbf16>, vector<16x96xf32> -> vector<16x96xf32>
    %7 = arith.addf %3, %6 : vector<16x96xf32>
    %c0_6 = arith.constant 0 : index
    %c0_7 = arith.constant 0 : index
    %8 = vector.load %arg7[%c0_6, %c0_7] : memref<16x96xf32, #tpu.memory_space<vmem>>, vector<16x96xf32>
    tpu.vector_store %arg7[%c0_6, %c0_7], %7 {strides = array<i32>} : memref<16x96xf32, #tpu.memory_space<vmem>>, vector<16x96xf32>,
    %c0_i32_8 = arith.constant 0 : i32
    %9 = arith.cmpi eq, %arg2, %c0_i32_8 : i32
    %10 = arith.extui %9 : i1 to i32
    %c0_i32_9 = arith.constant 0 : i32
    %11 = arith.cmpi ne, %10, %c0_i32_9 : i32
    scf.if %11 {
      %c0_10 = arith.constant 0 : index
      %c0_11 = arith.constant 0 : index
      %12 = vector.load %arg7[%c0_10, %c0_11] : memref<16x96xf32, #tpu.memory_space<vmem>>, vector<16x96xf32>
      %c0_12 = arith.constant 0 : index
      %c0_13 = arith.constant 0 : index
      %13 = vector.load %arg5[%c0_12, %c0_13] : memref<1x96xf32, #tpu.memory_space<vmem>>, vector<1x96xf32>
      %14 = vector.broadcast %13 : vector<1x96xf32> to vector<16x96xf32>
      %15 = arith.addf %12, %14 : vector<16x96xf32>
      %16 = arith.truncf %15 : vector<16x96xf32> to vector<16x96xbf16>
      %c0_14 = arith.constant 0 : index
      %c0_15 = arith.constant 0 : index
      %17 = vector.load %arg6[%c0_14, %c0_15] : memref<16x96xbf16, #tpu.memory_space<vmem>>, vector<16x96xbf16>
      tpu.vector_store %arg6[%c0_14, %c0_15], %16 {strides = array<i32>} : memref<16x96xbf16, #tpu.memory_space<vmem>>, vector<16x96xbf16>,
    } else {
    }
    return
  }
  func.func @transform_0(%arg0: i32, %arg1: i32, %arg2: i32) -> (i32, i32) {
    %c0_i32 = arith.constant 0 : i32
    return %arg0, %arg2 : i32, i32
  }
  func.func @transform_1(%arg0: i32, %arg1: i32, %arg2: i32) -> (i32, i32) {
    %c0_i32 = arith.constant 0 : i32
    return %arg2, %arg1 : i32, i32
  }
  func.func @transform_2(%arg0: i32, %arg1: i32, %arg2: i32) -> (i32, i32) {
    %c0_i32 = arith.constant 0 : i32
    %c0_i32_0 = arith.constant 0 : i32
    return %c0_i32, %arg1 : i32, i32
  }
  func.func @transform_3(%arg0: i32, %arg1: i32, %arg2: i32) -> (i32, i32) {
    %c0_i32 = arith.constant 0 : i32
    return %arg0, %arg1 : i32, i32
  }
}

module attributes {stable_mosaic.version = 11 : i64} {
  func.func @_layernorm_kernel(%arg0: i32, %arg1: memref<16x32xbf16, #tpu.memory_space<vmem>>, %arg2: memref<1x32xf32, #tpu.memory_space<vmem>>, %arg3: memref<1x32xf32, #tpu.memory_space<vmem>>, %arg4: memref<16x32xbf16, #tpu.memory_space<vmem>>) attributes {dimension_semantics = [#tpu.dimension_semantics<parallel>], iteration_bounds = array<i64: 1>, scalar_prefetch = 0 : i64, scratch_operands = 0 : i64, tpu.core_type = #tpu.core_type<tc>, window_params = [{transform_indices = @transform_0, window_bounds = array<i64: 16, 32>}, {pipeline_mode = #tpu.pipeline_mode<synchronous>, transform_indices = @transform_1, window_bounds = array<i64: 1, 32>}, {pipeline_mode = #tpu.pipeline_mode<synchronous>, transform_indices = @transform_2, window_bounds = array<i64: 1, 32>}, {transform_indices = @transform_3, window_bounds = array<i64: 16, 32>}]} {
    %c0 = arith.constant 0 : index
    %c0_0 = arith.constant 0 : index
    %0 = vector.load %arg1[%c0, %c0_0] : memref<16x32xbf16, #tpu.memory_space<vmem>>, vector<16x32xbf16>
    %1 = arith.extf %0 : vector<16x32xbf16> to vector<16x32xf32>
    %cst = arith.constant dense<0.000000e+00> : vector<16xf32>
    %2 = vector.multi_reduction <add>, %1, %cst [1] : vector<16x32xf32> to vector<16xf32>
    %3 = vector.shape_cast %2 : vector<16xf32> to vector<16x1xf32>
    %cst_1 = arith.constant 3.200000e+01 : f32
    %4 = vector.broadcast %cst_1 : f32 to vector<16x1xf32>
    %5 = arith.divf %3, %4 : vector<16x1xf32>
    %6 = vector.broadcast %5 : vector<16x1xf32> to vector<16x32xf32>
    %7 = arith.subf %1, %6 : vector<16x32xf32>
    %8 = arith.mulf %7, %7 : vector<16x32xf32>
    %cst_2 = arith.constant dense<0.000000e+00> : vector<16xf32>
    %9 = vector.multi_reduction <add>, %8, %cst_2 [1] : vector<16x32xf32> to vector<16xf32>
    %10 = vector.shape_cast %9 : vector<16xf32> to vector<16x1xf32>
    %cst_3 = arith.constant 3.200000e+01 : f32
    %11 = vector.broadcast %cst_3 : f32 to vector<16x1xf32>
    %12 = arith.divf %10, %11 : vector<16x1xf32>
    %13 = vector.broadcast %5 : vector<16x1xf32> to vector<16x32xf32>
    %14 = arith.subf %1, %13 : vector<16x32xf32>
    %cst_4 = arith.constant 9.99999974E-6 : f32
    %15 = vector.broadcast %cst_4 : f32 to vector<16x1xf32>
    %16 = arith.addf %12, %15 : vector<16x1xf32>
    %17 = math.rsqrt %16 : vector<16x1xf32>
    %18 = vector.broadcast %17 : vector<16x1xf32> to vector<16x32xf32>
    %19 = arith.mulf %14, %18 : vector<16x32xf32>
    %c0_5 = arith.constant 0 : index
    %c0_6 = arith.constant 0 : index
    %20 = vector.load %arg2[%c0_5, %c0_6] : memref<1x32xf32, #tpu.memory_space<vmem>>, vector<1x32xf32>
    %21 = vector.broadcast %20 : vector<1x32xf32> to vector<16x32xf32>
    %22 = arith.mulf %19, %21 : vector<16x32xf32>
    %c0_7 = arith.constant 0 : index
    %c0_8 = arith.constant 0 : index
    %23 = vector.load %arg3[%c0_7, %c0_8] : memref<1x32xf32, #tpu.memory_space<vmem>>, vector<1x32xf32>
    %24 = vector.broadcast %23 : vector<1x32xf32> to vector<16x32xf32>
    %25 = arith.addf %22, %24 : vector<16x32xf32>
    %26 = arith.truncf %25 : vector<16x32xf32> to vector<16x32xbf16>
    %c0_9 = arith.constant 0 : index
    %c0_10 = arith.constant 0 : index
    %27 = vector.load %arg4[%c0_9, %c0_10] : memref<16x32xbf16, #tpu.memory_space<vmem>>, vector<16x32xbf16>
    tpu.vector_store %arg4[%c0_9, %c0_10], %26 {strides = array<i32>} : memref<16x32xbf16, #tpu.memory_space<vmem>>, vector<16x32xbf16>,
    return
  }
  func.func @transform_0(%arg0: i32) -> (i32, i32) {
    %c0_i32 = arith.constant 0 : i32
    %c0_i32_0 = arith.constant 0 : i32
    return %arg0, %c0_i32 : i32, i32
  }
  func.func @transform_1(%arg0: i32) -> (i32, i32) {
    %c0_i32 = arith.constant 0 : i32
    %c0_i32_0 = arith.constant 0 : i32
    %c0_i32_1 = arith.constant 0 : i32
    return %c0_i32, %c0_i32_0 : i32, i32
  }
  func.func @transform_2(%arg0: i32) -> (i32, i32) {
    %c0_i32 = arith.constant 0 : i32
    %c0_i32_0 = arith.constant 0 : i32
    %c0_i32_1 = arith.constant 0 : i32
    return %c0_i32, %c0_i32_0 : i32, i32
  }
  func.func @transform_3(%arg0: i32) -> (i32, i32) {
    %c0_i32 = arith.constant 0 : i32
    %c0_i32_0 = arith.constant 0 : i32
    return %arg0, %c0_i32 : i32, i32
  }
}

module attributes {stable_mosaic.version = 11 : i64} {
  func.func @_attention_kernel(%arg0: i32, %arg1: i32, %arg2: i32, %arg3: memref<1x4x8x8xbf16, #tpu.memory_space<vmem>>, %arg4: memref<1x4x8x8xbf16, #tpu.memory_space<vmem>>, %arg5: memref<1x4x8x8xbf16, #tpu.memory_space<vmem>>, %arg6: memref<1x1x8xf32, #tpu.memory_space<vmem>>, %arg7: memref<1x8x32xbf16, #tpu.memory_space<vmem>>, %arg8: memref<4x8x1xf32, #tpu.memory_space<vmem>>, %arg9: memref<4x8x1xf32, #tpu.memory_space<vmem>>, %arg10: memref<4x8x8xf32, #tpu.memory_space<vmem>>) attributes {dimension_semantics = [#tpu.dimension_semantics<parallel>, #tpu.dimension_semantics<parallel>, #tpu.dimension_semantics<arbitrary>], iteration_bounds = array<i64: 2, 1, 1>, scalar_prefetch = 0 : i64, scratch_operands = 3 : i64, tpu.core_type = #tpu.core_type<tc>, window_params = [{transform_indices = @transform_0, window_bounds = array<i64: 1, 4, 8, 8>}, {transform_indices = @transform_1, window_bounds = array<i64: 1, 4, 8, 8>}, {transform_indices = @transform_2, window_bounds = array<i64: 1, 4, 8, 8>}, {transform_indices = @transform_3, window_bounds = array<i64: 1, 1, 8>}, {transform_indices = @transform_4, window_bounds = array<i64: 1, 8, 32>}]} {
    %c8_i32 = arith.constant 8 : i32
    %0 = arith.muli %arg1, %c8_i32 : i32
    %c8_i32_0 = arith.constant 8 : i32
    %1 = arith.muli %arg2, %c8_i32_0 : i32
    %c0_i32 = arith.constant 0 : i32
    %2 = arith.cmpi eq, %arg2, %c0_i32 : i32
    %3 = arith.extui %2 : i1 to i32
    %c0_i32_1 = arith.constant 0 : i32
    %4 = arith.cmpi ne, %3, %c0_i32_1 : i32
    scf.if %4 {
      %cst = arith.constant -1.000000e+30 : f32
      %13 = vector.broadcast %cst : f32 to vector<4x8x1xf32>
      %c0 = arith.constant 0 : index
      %c0_6 = arith.constant 0 : index
      %c0_7 = arith.constant 0 : index
      %14 = vector.load %arg8[%c0, %c0_6, %c0_7] : memref<4x8x1xf32, #tpu.memory_space<vmem>>, vector<4x8x1xf32>
      tpu.vector_store %arg8[%c0, %c0_6, %c0_7], %13 {strides = array<i32>} : memref<4x8x1xf32, #tpu.memory_space<vmem>>, vector<4x8x1xf32>,
      %cst_8 = arith.constant 0.000000e+00 : f32
      %15 = vector.broadcast %cst_8 : f32 to vector<4x8x1xf32>
      %c0_9 = arith.constant 0 : index
      %c0_10 = arith.constant 0 : index
      %c0_11 = arith.constant 0 : index
      %16 = vector.load %arg9[%c0_9, %c0_10, %c0_11] : memref<4x8x1xf32, #tpu.memory_space<vmem>>, vector<4x8x1xf32>
      tpu.vector_store %arg9[%c0_9, %c0_10, %c0_11], %15 {strides = array<i32>} : memref<4x8x1xf32, #tpu.memory_space<vmem>>, vector<4x8x1xf32>,
      %cst_12 = arith.constant 0.000000e+00 : f32
      %17 = vector.broadcast %cst_12 : f32 to vector<4x8x8xf32>
      %c0_13 = arith.constant 0 : index
      %c0_14 = arith.constant 0 : index
      %c0_15 = arith.constant 0 : index
      %18 = vector.load %arg10[%c0_13, %c0_14, %c0_15] : memref<4x8x8xf32, #tpu.memory_space<vmem>>, vector<4x8x8xf32>
      tpu.vector_store %arg10[%c0_13, %c0_14, %c0_15], %17 {strides = array<i32>} : memref<4x8x8xf32, #tpu.memory_space<vmem>>, vector<4x8x8xf32>,
    } else {
    }
    %c8_i32_2 = arith.constant 8 : i32
    %5 = arith.addi %0, %c8_i32_2 : i32
    %c1_i32 = arith.constant 1 : i32
    %6 = arith.subi %5, %c1_i32 : i32
    %7 = arith.cmpi sle, %1, %6 : i32
    %8 = arith.extui %7 : i1 to i32
    %c0_i32_3 = arith.constant 0 : i32
    %9 = arith.cmpi ne, %8, %c0_i32_3 : i32
    scf.if %9 {
      %c0 = arith.constant 0 : index
      %c0_6 = arith.constant 0 : index
      %c0_7 = arith.constant 0 : index
      %c0_8 = arith.constant 0 : index
      %13 = vector.load %arg3[%c0, %c0_6, %c0_7, %c0_8] : memref<1x4x8x8xbf16, #tpu.memory_space<vmem>>, vector<1x4x8x8xbf16>
      %14 = vector.shape_cast %13 : vector<1x4x8x8xbf16> to vector<4x8x8xbf16>
      %c0_9 = arith.constant 0 : index
      %c0_10 = arith.constant 0 : index
      %c0_11 = arith.constant 0 : index
      %c0_12 = arith.constant 0 : index
      %15 = vector.load %arg4[%c0_9, %c0_10, %c0_11, %c0_12] : memref<1x4x8x8xbf16, #tpu.memory_space<vmem>>, vector<1x4x8x8xbf16>
      %16 = vector.shape_cast %15 : vector<1x4x8x8xbf16> to vector<4x8x8xbf16>
      %c0_13 = arith.constant 0 : index
      %c0_14 = arith.constant 0 : index
      %c0_15 = arith.constant 0 : index
      %c0_16 = arith.constant 0 : index
      %17 = vector.load %arg5[%c0_13, %c0_14, %c0_15, %c0_16] : memref<1x4x8x8xbf16, #tpu.memory_space<vmem>>, vector<1x4x8x8xbf16>
      %18 = vector.shape_cast %17 : vector<1x4x8x8xbf16> to vector<4x8x8xbf16>
      "tpu.trace_start"() <{level = 10 : i32, message = "hqd,hkd->hqk"}> : () -> ()
      %cst = arith.constant dense<0.000000e+00> : vector<4x8x8xf32>
      %19 = tpu.matmul %14, %16, %cst {dimension_numbers = #tpu.dot_dimension_numbers<[2], [2], [1], [1], [0, 0, 0, 1, 1, 1], [0], [0]>} : vector<4x8x8xbf16>, vector<4x8x8xbf16>, vector<4x8x8xf32> -> vector<4x8x8xf32>
      "tpu.trace_stop"() : () -> ()
      %cst_17 = arith.constant 0.353553385 : f32
      %20 = vector.broadcast %cst_17 : f32 to vector<4x8x8xf32>
      %21 = arith.mulf %19, %20 : vector<4x8x8xf32>
      %c0_18 = arith.constant 0 : index
      %c0_19 = arith.constant 0 : index
      %c0_20 = arith.constant 0 : index
      %22 = vector.load %arg6[%c0_18, %c0_19, %c0_20] : memref<1x1x8xf32, #tpu.memory_space<vmem>>, vector<1x1x8xf32>
      %23 = vector.shape_cast %22 : vector<1x1x8xf32> to vector<1x8xf32>
      %24 = tpu.iota {dimensions = array<i32: 0>} : vector<8x8xi32>
      %25 = vector.broadcast %0 : i32 to vector<8x8xi32>
      %26 = arith.addi %24, %25 : vector<8x8xi32>
      %27 = tpu.iota {dimensions = array<i32: 1>} : vector<8x8xi32>
      %28 = vector.broadcast %1 : i32 to vector<8x8xi32>
      %29 = arith.addi %27, %28 : vector<8x8xi32>
      %30 = arith.cmpi sgt, %29, %26 : vector<8x8xi32>
      %cst_21 = arith.constant -1.000000e+09 : f32
      %cst_22 = arith.constant 0.000000e+00 : f32
      %31 = vector.broadcast %cst_21 : f32 to vector<8x8xf32>
      %32 = vector.broadcast %cst_22 : f32 to vector<8x8xf32>
      %33 = arith.select %30, %31, %32 : vector<8x8xi1>, vector<8x8xf32>
      %34 = vector.broadcast %23 : vector<1x8xf32> to vector<8x8xf32>
      %35 = arith.addf %34, %33 : vector<8x8xf32>
      %36 = vector.shape_cast %35 : vector<8x8xf32> to vector<1x8x8xf32>
      %37 = vector.broadcast %36 : vector<1x8x8xf32> to vector<4x8x8xf32>
      %38 = arith.addf %21, %37 : vector<4x8x8xf32>
      %c0_23 = arith.constant 0 : index
      %c0_24 = arith.constant 0 : index
      %c0_25 = arith.constant 0 : index
      %39 = vector.load %arg8[%c0_23, %c0_24, %c0_25] : memref<4x8x1xf32, #tpu.memory_space<vmem>>, vector<4x8x1xf32>
      %cst_26 = arith.constant dense<0xFF800000> : vector<4x8xf32>
      %40 = vector.multi_reduction <maximumf>, %38, %cst_26 [2] : vector<4x8x8xf32> to vector<4x8xf32>
      %41 = vector.shape_cast %40 : vector<4x8xf32> to vector<4x8x1xf32>
      %42 = arith.maximumf %39, %41 : vector<4x8x1xf32>
      %43 = arith.subf %39, %42 : vector<4x8x1xf32>
      %44 = math.exp %43 : vector<4x8x1xf32>
      %45 = vector.broadcast %42 : vector<4x8x1xf32> to vector<4x8x8xf32>
      %46 = arith.subf %38, %45 : vector<4x8x8xf32>
      %47 = math.exp %46 : vector<4x8x8xf32>
      %c0_27 = arith.constant 0 : index
      %c0_28 = arith.constant 0 : index
      %c0_29 = arith.constant 0 : index
      %48 = vector.load %arg9[%c0_27, %c0_28, %c0_29] : memref<4x8x1xf32, #tpu.memory_space<vmem>>, vector<4x8x1xf32>
      %49 = arith.mulf %44, %48 : vector<4x8x1xf32>
      %cst_30 = arith.constant dense<0.000000e+00> : vector<4x8xf32>
      %50 = vector.multi_reduction <add>, %47, %cst_30 [2] : vector<4x8x8xf32> to vector<4x8xf32>
      %51 = vector.shape_cast %50 : vector<4x8xf32> to vector<4x8x1xf32>
      %52 = arith.addf %49, %51 : vector<4x8x1xf32>
      %c0_31 = arith.constant 0 : index
      %c0_32 = arith.constant 0 : index
      %c0_33 = arith.constant 0 : index
      %53 = vector.load %arg9[%c0_31, %c0_32, %c0_33] : memref<4x8x1xf32, #tpu.memory_space<vmem>>, vector<4x8x1xf32>
      tpu.vector_store %arg9[%c0_31, %c0_32, %c0_33], %52 {strides = array<i32>} : memref<4x8x1xf32, #tpu.memory_space<vmem>>, vector<4x8x1xf32>,
      %c0_34 = arith.constant 0 : index
      %c0_35 = arith.constant 0 : index
      %c0_36 = arith.constant 0 : index
      %54 = vector.load %arg10[%c0_34, %c0_35, %c0_36] : memref<4x8x8xf32, #tpu.memory_space<vmem>>, vector<4x8x8xf32>
      %55 = vector.broadcast %44 : vector<4x8x1xf32> to vector<4x8x8xf32>
      %56 = arith.mulf %55, %54 : vector<4x8x8xf32>
      %57 = arith.truncf %47 : vector<4x8x8xf32> to vector<4x8x8xbf16>
      "tpu.trace_start"() <{level = 10 : i32, message = "hqk,hkd->hqd"}> : () -> ()
      %cst_37 = arith.constant dense<0.000000e+00> : vector<4x8x8xf32>
      %58 = tpu.matmul %57, %18, %cst_37 {dimension_numbers = #tpu.dot_dimension_numbers<[2], [1], [1], [2], [0, 0, 0, 1, 1, 2], [0], [0]>} : vector<4x8x8xbf16>, vector<4x8x8xbf16>, vector<4x8x8xf32> -> vector<4x8x8xf32>
      "tpu.trace_stop"() : () -> ()
      %59 = arith.addf %56, %58 : vector<4x8x8xf32>
      %c0_38 = arith.constant 0 : index
      %c0_39 = arith.constant 0 : index
      %c0_40 = arith.constant 0 : index
      %60 = vector.load %arg10[%c0_38, %c0_39, %c0_40] : memref<4x8x8xf32, #tpu.memory_space<vmem>>, vector<4x8x8xf32>
      tpu.vector_store %arg10[%c0_38, %c0_39, %c0_40], %59 {strides = array<i32>} : memref<4x8x8xf32, #tpu.memory_space<vmem>>, vector<4x8x8xf32>,
      %c0_41 = arith.constant 0 : index
      %c0_42 = arith.constant 0 : index
      %c0_43 = arith.constant 0 : index
      %61 = vector.load %arg8[%c0_41, %c0_42, %c0_43] : memref<4x8x1xf32, #tpu.memory_space<vmem>>, vector<4x8x1xf32>
      tpu.vector_store %arg8[%c0_41, %c0_42, %c0_43], %42 {strides = array<i32>} : memref<4x8x1xf32, #tpu.memory_space<vmem>>, vector<4x8x1xf32>,
    } else {
    }
    %c0_i32_4 = arith.constant 0 : i32
    %10 = arith.cmpi eq, %arg2, %c0_i32_4 : i32
    %11 = arith.extui %10 : i1 to i32
    %c0_i32_5 = arith.constant 0 : i32
    %12 = arith.cmpi ne, %11, %c0_i32_5 : i32
    scf.if %12 {
      %c0 = arith.constant 0 : index
      %c0_6 = arith.constant 0 : index
      %c0_7 = arith.constant 0 : index
      %13 = vector.load %arg9[%c0, %c0_6, %c0_7] : memref<4x8x1xf32, #tpu.memory_space<vmem>>, vector<4x8x1xf32>
      %14 = tpu.reciprocal %13 {approx = true} : vector<4x8x1xf32> -> vector<4x8x1xf32>
      %c0_8 = arith.constant 0 : index
      %c0_9 = arith.constant 0 : index
      %c0_10 = arith.constant 0 : index
      %15 = vector.load %arg10[%c0_8, %c0_9, %c0_10] : memref<4x8x8xf32, #tpu.memory_space<vmem>>, vector<4x8x8xf32>
      %16 = vector.broadcast %14 : vector<4x8x1xf32> to vector<4x8x8xf32>
      %17 = arith.mulf %15, %16 : vector<4x8x8xf32>
      %18 = vector.extract_strided_slice %17 {offsets = [0, 0, 0], sizes = [1, 8, 8], strides = [1, 1, 1]} : vector<4x8x8xf32> to vector<1x8x8xf32>
      %19 = vector.shape_cast %18 : vector<1x8x8xf32> to vector<8x8xf32>
      %20 = vector.extract_strided_slice %17 {offsets = [1, 0, 0], sizes = [1, 8, 8], strides = [1, 1, 1]} : vector<4x8x8xf32> to vector<1x8x8xf32>
      %21 = vector.shape_cast %20 : vector<1x8x8xf32> to vector<8x8xf32>
      %22 = vector.extract_strided_slice %17 {offsets = [2, 0, 0], sizes = [1, 8, 8], strides = [1, 1, 1]} : vector<4x8x8xf32> to vector<1x8x8xf32>
      %23 = vector.shape_cast %22 : vector<1x8x8xf32> to vector<8x8xf32>
      %24 = vector.extract_strided_slice %17 {offsets = [3, 0, 0], sizes = [1, 8, 8], strides = [1, 1, 1]} : vector<4x8x8xf32> to vector<1x8x8xf32>
      %25 = vector.shape_cast %24 : vector<1x8x8xf32> to vector<8x8xf32>
      %26 = tpu.concatenate %19, %21, %23, %25 in 1 : vector<8x8xf32>, vector<8x8xf32>, vector<8x8xf32>, vector<8x8xf32> -> vector<8x32xf32>
      %27 = arith.truncf %26 : vector<8x32xf32> to vector<8x32xbf16>
      %c0_11 = arith.constant 0 : index
      %c0_12 = arith.constant 0 : index
      %c0_13 = arith.constant 0 : index
      %28 = vector.load %arg7[%c0_11, %c0_12, %c0_13] : memref<1x8x32xbf16, #tpu.memory_space<vmem>>, vector<1x8x32xbf16>
      %29 = vector.shape_cast %28 : vector<1x8x32xbf16> to vector<8x32xbf16>
      %30 = vector.shape_cast %27 : vector<8x32xbf16> to vector<1x8x32xbf16>
      tpu.vector_store %arg7[%c0_11, %c0_12, %c0_13], %30 {strides = array<i32>} : memref<1x8x32xbf16, #tpu.memory_space<vmem>>, vector<1x8x32xbf16>,
    } else {
    }
    return
  }
  func.func @transform_0(%arg0: i32, %arg1: i32, %arg2: i32) -> (i32, i32, i32, i32) {
    %c0_i32 = arith.constant 0 : i32
    %c0_i32_0 = arith.constant 0 : i32
    %c0_i32_1 = arith.constant 0 : i32
    return %arg0, %c0_i32, %arg1, %c0_i32_0 : i32, i32, i32, i32
  }
  func.func @transform_1(%arg0: i32, %arg1: i32, %arg2: i32) -> (i32, i32, i32, i32) {
    %c0_i32 = arith.constant 0 : i32
    %c0_i32_0 = arith.constant 0 : i32
    %c0_i32_1 = arith.constant 0 : i32
    return %arg0, %c0_i32, %arg2, %c0_i32_0 : i32, i32, i32, i32
  }
  func.func @transform_2(%arg0: i32, %arg1: i32, %arg2: i32) -> (i32, i32, i32, i32) {
    %c0_i32 = arith.constant 0 : i32
    %c0_i32_0 = arith.constant 0 : i32
    %c0_i32_1 = arith.constant 0 : i32
    return %arg0, %c0_i32, %arg2, %c0_i32_0 : i32, i32, i32, i32
  }
  func.func @transform_3(%arg0: i32, %arg1: i32, %arg2: i32) -> (i32, i32, i32) {
    %c0_i32 = arith.constant 0 : i32
    %c0_i32_0 = arith.constant 0 : i32
    return %arg0, %c0_i32, %arg2 : i32, i32, i32
  }
  func.func @transform_4(%arg0: i32, %arg1: i32, %arg2: i32) -> (i32, i32, i32) {
    %c0_i32 = arith.constant 0 : i32
    %c0_i32_0 = arith.constant 0 : i32
    return %arg0, %arg1, %c0_i32 : i32, i32, i32
  }
}

module attributes {stable_mosaic.version = 11 : i64} {
  func.func @_matmul_kernel(%arg0: i32, %arg1: i32, %arg2: i32, %arg3: memref<16x32xbf16, #tpu.memory_space<vmem>>, %arg4: memref<32x32xbf16, #tpu.memory_space<vmem>>, %arg5: memref<1x32xf32, #tpu.memory_space<vmem>>, %arg6: memref<16x32xbf16, #tpu.memory_space<vmem>>, %arg7: memref<16x32xbf16, #tpu.memory_space<vmem>>, %arg8: memref<16x32xf32, #tpu.memory_space<vmem>>) attributes {dimension_semantics = [#tpu.dimension_semantics<parallel>, #tpu.dimension_semantics<parallel>, #tpu.dimension_semantics<arbitrary>], iteration_bounds = array<i64: 1, 1, 1>, scalar_prefetch = 0 : i64, scratch_operands = 1 : i64, tpu.core_type = #tpu.core_type<tc>, window_params = [{transform_indices = @transform_0, window_bounds = array<i64: 16, 32>}, {transform_indices = @transform_1, window_bounds = array<i64: 32, 32>}, {transform_indices = @transform_2, window_bounds = array<i64: 1, 32>}, {transform_indices = @transform_3, window_bounds = array<i64: 16, 32>}, {transform_indices = @transform_4, window_bounds = array<i64: 16, 32>}]} {
    %c0_i32 = arith.constant 0 : i32
    %0 = arith.cmpi eq, %arg2, %c0_i32 : i32
    %1 = arith.extui %0 : i1 to i32
    %c0_i32_0 = arith.constant 0 : i32
    %2 = arith.cmpi ne, %1, %c0_i32_0 : i32
    scf.if %2 {
      %cst_10 = arith.constant 0.000000e+00 : f32
      %12 = vector.broadcast %cst_10 : f32 to vector<16x32xf32>
      %c0_11 = arith.constant 0 : index
      %c0_12 = arith.constant 0 : index
      %13 = vector.load %arg8[%c0_11, %c0_12] : memref<16x32xf32, #tpu.memory_space<vmem>>, vector<16x32xf32>
      tpu.vector_store %arg8[%c0_11, %c0_12], %12 {strides = array<i32>} : memref<16x32xf32, #tpu.memory_space<vmem>>, vector<16x32xf32>,
    } else {
    }
    %c0 = arith.constant 0 : index
    %c0_1 = arith.constant 0 : index
    %3 = vector.load %arg8[%c0, %c0_1] : memref<16x32xf32, #tpu.memory_space<vmem>>, vector<16x32xf32>
    %c0_2 = arith.constant 0 : index
    %c0_3 = arith.constant 0 : index
    %4 = vector.load %arg3[%c0_2, %c0_3] : memref<16x32xbf16, #tpu.memory_space<vmem>>, vector<16x32xbf16>
    %c0_4 = arith.constant 0 : index
    %c0_5 = arith.constant 0 : index
    %5 = vector.load %arg4[%c0_4, %c0_5] : memref<32x32xbf16, #tpu.memory_space<vmem>>, vector<32x32xbf16>
    %cst = arith.constant dense<0.000000e+00> : vector<16x32xf32>
    %6 = tpu.matmul %4, %5, %cst {dimension_numbers = #tpu.dot_dimension_numbers<[1], [0], [0], [1], [0, 0, 1, 1], [], []>} : vector<16x32xbf16>, vector<32x32xbf16>, vector<16x32xf32> -> vector<16x32xf32>
    %7 = arith.addf %3, %6 : vector<16x32xf32>
    %c0_6 = arith.constant 0 : index
    %c0_7 = arith.constant 0 : index
    %8 = vector.load %arg8[%c0_6, %c0_7] : memref<16x32xf32, #tpu.memory_space<vmem>>, vector<16x32xf32>
    tpu.vector_store %arg8[%c0_6, %c0_7], %7 {strides = array<i32>} : memref<16x32xf32, #tpu.memory_space<vmem>>, vector<16x32xf32>,
    %c0_i32_8 = arith.constant 0 : i32
    %9 = arith.cmpi eq, %arg2, %c0_i32_8 : i32
    %10 = arith.extui %9 : i1 to i32
    %c0_i32_9 = arith.constant 0 : i32
    %11 = arith.cmpi ne, %10, %c0_i32_9 : i32
    scf.if %11 {
      %c0_10 = arith.constant 0 : index
      %c0_11 = arith.constant 0 : index
      %12 = vector.load %arg8[%c0_10, %c0_11] : memref<16x32xf32, #tpu.memory_space<vmem>>, vector<16x32xf32>
      %c0_12 = arith.constant 0 : index
      %c0_13 = arith.constant 0 : index
      %13 = vector.load %arg5[%c0_12, %c0_13] : memref<1x32xf32, #tpu.memory_space<vmem>>, vector<1x32xf32>
      %14 = vector.broadcast %13 : vector<1x32xf32> to vector<16x32xf32>
      %15 = arith.addf %12, %14 : vector<16x32xf32>
      %c0_14 = arith.constant 0 : index
      %c0_15 = arith.constant 0 : index
      %16 = vector.load %arg6[%c0_14, %c0_15] : memref<16x32xbf16, #tpu.memory_space<vmem>>, vector<16x32xbf16>
      %17 = arith.extf %16 : vector<16x32xbf16> to vector<16x32xf32>
      %18 = arith.addf %15, %17 : vector<16x32xf32>
      %19 = arith.truncf %18 : vector<16x32xf32> to vector<16x32xbf16>
      %c0_16 = arith.constant 0 : index
      %c0_17 = arith.constant 0 : index
      %20 = vector.load %arg7[%c0_16, %c0_17] : memref<16x32xbf16, #tpu.memory_space<vmem>>, vector<16x32xbf16>
      tpu.vector_store %arg7[%c0_16, %c0_17], %19 {strides = array<i32>} : memref<16x32xbf16, #tpu.memory_space<vmem>>, vector<16x32xbf16>,
    } else {
    }
    return
  }
  func.func @transform_0(%arg0: i32, %arg1: i32, %arg2: i32) -> (i32, i32) {
    %c0_i32 = arith.constant 0 : i32
    return %arg0, %arg2 : i32, i32
  }
  func.func @transform_1(%arg0: i32, %arg1: i32, %arg2: i32) -> (i32, i32) {
    %c0_i32 = arith.constant 0 : i32
    return %arg2, %arg1 : i32, i32
  }
  func.func @transform_2(%arg0: i32, %arg1: i32, %arg2: i32) -> (i32, i32) {
    %c0_i32 = arith.constant 0 : i32
    %c0_i32_0 = arith.constant 0 : i32
    return %c0_i32, %arg1 : i32, i32
  }
  func.func @transform_3(%arg0: i32, %arg1: i32, %arg2: i32) -> (i32, i32) {
    %c0_i32 = arith.constant 0 : i32
    return %arg0, %arg1 : i32, i32
  }
  func.func @transform_4(%arg0: i32, %arg1: i32, %arg2: i32) -> (i32, i32) {
    %c0_i32 = arith.constant 0 : i32
    return %arg0, %arg1 : i32, i32
  }
}

module attributes {stable_mosaic.version = 11 : i64} {
  func.func @_matmul_kernel(%arg0: i32, %arg1: i32, %arg2: i32, %arg3: memref<32x32xbf16, #tpu.memory_space<vmem>>, %arg4: memref<32x64xbf16, #tpu.memory_space<vmem>>, %arg5: memref<1x64xf32, #tpu.memory_space<vmem>>, %arg6: memref<32x64xbf16, #tpu.memory_space<vmem>>, %arg7: memref<32x64xf32, #tpu.memory_space<vmem>>) attributes {dimension_semantics = [#tpu.dimension_semantics<parallel>, #tpu.dimension_semantics<parallel>, #tpu.dimension_semantics<arbitrary>], iteration_bounds = array<i64: 1, 1, 1>, scalar_prefetch = 0 : i64, scratch_operands = 1 : i64, tpu.core_type = #tpu.core_type<tc>, window_params = [{transform_indices = @transform_0, window_bounds = array<i64: 32, 32>}, {transform_indices = @transform_1, window_bounds = array<i64: 32, 64>}, {transform_indices = @transform_2, window_bounds = array<i64: 1, 64>}, {transform_indices = @transform_3, window_bounds = array<i64: 32, 64>}]} {
    %c0_i32 = arith.constant 0 : i32
    %0 = arith.cmpi eq, %arg2, %c0_i32 : i32
    %1 = arith.extui %0 : i1 to i32
    %c0_i32_0 = arith.constant 0 : i32
    %2 = arith.cmpi ne, %1, %c0_i32_0 : i32
    scf.if %2 {
      %cst_10 = arith.constant 0.000000e+00 : f32
      %12 = vector.broadcast %cst_10 : f32 to vector<32x64xf32>
      %c0_11 = arith.constant 0 : index
      %c0_12 = arith.constant 0 : index
      %13 = vector.load %arg7[%c0_11, %c0_12] : memref<32x64xf32, #tpu.memory_space<vmem>>, vector<32x64xf32>
      tpu.vector_store %arg7[%c0_11, %c0_12], %12 {strides = array<i32>} : memref<32x64xf32, #tpu.memory_space<vmem>>, vector<32x64xf32>,
    } else {
    }
    %c0 = arith.constant 0 : index
    %c0_1 = arith.constant 0 : index
    %3 = vector.load %arg7[%c0, %c0_1] : memref<32x64xf32, #tpu.memory_space<vmem>>, vector<32x64xf32>
    %c0_2 = arith.constant 0 : index
    %c0_3 = arith.constant 0 : index
    %4 = vector.load %arg3[%c0_2, %c0_3] : memref<32x32xbf16, #tpu.memory_space<vmem>>, vector<32x32xbf16>
    %c0_4 = arith.constant 0 : index
    %c0_5 = arith.constant 0 : index
    %5 = vector.load %arg4[%c0_4, %c0_5] : memref<32x64xbf16, #tpu.memory_space<vmem>>, vector<32x64xbf16>
    %cst = arith.constant dense<0.000000e+00> : vector<32x64xf32>
    %6 = tpu.matmul %4, %5, %cst {dimension_numbers = #tpu.dot_dimension_numbers<[1], [0], [0], [1], [0, 0, 1, 1], [], []>} : vector<32x32xbf16>, vector<32x64xbf16>, vector<32x64xf32> -> vector<32x64xf32>
    %7 = arith.addf %3, %6 : vector<32x64xf32>
    %c0_6 = arith.constant 0 : index
    %c0_7 = arith.constant 0 : index
    %8 = vector.load %arg7[%c0_6, %c0_7] : memref<32x64xf32, #tpu.memory_space<vmem>>, vector<32x64xf32>
    tpu.vector_store %arg7[%c0_6, %c0_7], %7 {strides = array<i32>} : memref<32x64xf32, #tpu.memory_space<vmem>>, vector<32x64xf32>,
    %c0_i32_8 = arith.constant 0 : i32
    %9 = arith.cmpi eq, %arg2, %c0_i32_8 : i32
    %10 = arith.extui %9 : i1 to i32
    %c0_i32_9 = arith.constant 0 : i32
    %11 = arith.cmpi ne, %10, %c0_i32_9 : i32
    scf.if %11 {
      %c0_10 = arith.constant 0 : index
      %c0_11 = arith.constant 0 : index
      %12 = vector.load %arg7[%c0_10, %c0_11] : memref<32x64xf32, #tpu.memory_space<vmem>>, vector<32x64xf32>
      %c0_12 = arith.constant 0 : index
      %c0_13 = arith.constant 0 : index
      %13 = vector.load %arg5[%c0_12, %c0_13] : memref<1x64xf32, #tpu.memory_space<vmem>>, vector<1x64xf32>
      %14 = vector.broadcast %13 : vector<1x64xf32> to vector<32x64xf32>
      %15 = arith.addf %12, %14 : vector<32x64xf32>
      %16 = arith.truncf %15 : vector<32x64xf32> to vector<32x64xbf16>
      %c0_14 = arith.constant 0 : index
      %c0_15 = arith.constant 0 : index
      %17 = vector.load %arg6[%c0_14, %c0_15] : memref<32x64xbf16, #tpu.memory_space<vmem>>, vector<32x64xbf16>
      tpu.vector_store %arg6[%c0_14, %c0_15], %16 {strides = array<i32>} : memref<32x64xbf16, #tpu.memory_space<vmem>>, vector<32x64xbf16>,
    } else {
    }
    return
  }
  func.func @transform_0(%arg0: i32, %arg1: i32, %arg2: i32) -> (i32, i32) {
    %c0_i32 = arith.constant 0 : i32
    return %arg0, %arg2 : i32, i32
  }
  func.func @transform_1(%arg0: i32, %arg1: i32, %arg2: i32) -> (i32, i32) {
    %c0_i32 = arith.constant 0 : i32
    return %arg2, %arg1 : i32, i32
  }
  func.func @transform_2(%arg0: i32, %arg1: i32, %arg2: i32) -> (i32, i32) {
    %c0_i32 = arith.constant 0 : i32
    %c0_i32_0 = arith.constant 0 : i32
    return %c0_i32, %arg1 : i32, i32
  }
  func.func @transform_3(%arg0: i32, %arg1: i32, %arg2: i32) -> (i32, i32) {
    %c0_i32 = arith.constant 0 : i32
    return %arg0, %arg1 : i32, i32
  }
}

module attributes {stable_mosaic.version = 11 : i64} {
  func.func @_matmul_kernel(%arg0: i32, %arg1: i32, %arg2: i32, %arg3: memref<16x32xbf16, #tpu.memory_space<vmem>>, %arg4: memref<32x32xbf16, #tpu.memory_space<vmem>>, %arg5: memref<1x32xf32, #tpu.memory_space<vmem>>, %arg6: memref<16x32xbf16, #tpu.memory_space<vmem>>, %arg7: memref<16x32xf32, #tpu.memory_space<vmem>>) attributes {dimension_semantics = [#tpu.dimension_semantics<parallel>, #tpu.dimension_semantics<parallel>, #tpu.dimension_semantics<arbitrary>], iteration_bounds = array<i64: 1, 1, 1>, scalar_prefetch = 0 : i64, scratch_operands = 1 : i64, tpu.core_type = #tpu.core_type<tc>, window_params = [{transform_indices = @transform_0, window_bounds = array<i64: 16, 32>}, {transform_indices = @transform_1, window_bounds = array<i64: 32, 32>}, {transform_indices = @transform_2, window_bounds = array<i64: 1, 32>}, {transform_indices = @transform_3, window_bounds = array<i64: 16, 32>}]} {
    %c0_i32 = arith.constant 0 : i32
    %0 = arith.cmpi eq, %arg2, %c0_i32 : i32
    %1 = arith.extui %0 : i1 to i32
    %c0_i32_0 = arith.constant 0 : i32
    %2 = arith.cmpi ne, %1, %c0_i32_0 : i32
    scf.if %2 {
      %cst_10 = arith.constant 0.000000e+00 : f32
      %12 = vector.broadcast %cst_10 : f32 to vector<16x32xf32>
      %c0_11 = arith.constant 0 : index
      %c0_12 = arith.constant 0 : index
      %13 = vector.load %arg7[%c0_11, %c0_12] : memref<16x32xf32, #tpu.memory_space<vmem>>, vector<16x32xf32>
      tpu.vector_store %arg7[%c0_11, %c0_12], %12 {strides = array<i32>} : memref<16x32xf32, #tpu.memory_space<vmem>>, vector<16x32xf32>,
    } else {
    }
    %c0 = arith.constant 0 : index
    %c0_1 = arith.constant 0 : index
    %3 = vector.load %arg7[%c0, %c0_1] : memref<16x32xf32, #tpu.memory_space<vmem>>, vector<16x32xf32>
    %c0_2 = arith.constant 0 : index
    %c0_3 = arith.constant 0 : index
    %4 = vector.load %arg3[%c0_2, %c0_3] : memref<16x32xbf16, #tpu.memory_space<vmem>>, vector<16x32xbf16>
    %c0_4 = arith.constant 0 : index
    %c0_5 = arith.constant 0 : index
    %5 = vector.load %arg4[%c0_4, %c0_5] : memref<32x32xbf16, #tpu.memory_space<vmem>>, vector<32x32xbf16>
    %cst = arith.constant dense<0.000000e+00> : vector<16x32xf32>
    %6 = tpu.matmul %4, %5, %cst {dimension_numbers = #tpu.dot_dimension_numbers<[1], [0], [0], [1], [0, 0, 1, 1], [], []>} : vector<16x32xbf16>, vector<32x32xbf16>, vector<16x32xf32> -> vector<16x32xf32>
    %7 = arith.addf %3, %6 : vector<16x32xf32>
    %c0_6 = arith.constant 0 : index
    %c0_7 = arith.constant 0 : index
    %8 = vector.load %arg7[%c0_6, %c0_7] : memref<16x32xf32, #tpu.memory_space<vmem>>, vector<16x32xf32>
    tpu.vector_store %arg7[%c0_6, %c0_7], %7 {strides = array<i32>} : memref<16x32xf32, #tpu.memory_space<vmem>>, vector<16x32xf32>,
    %c0_i32_8 = arith.constant 0 : i32
    %9 = arith.cmpi eq, %arg2, %c0_i32_8 : i32
    %10 = arith.extui %9 : i1 to i32
    %c0_i32_9 = arith.constant 0 : i32
    %11 = arith.cmpi ne, %10, %c0_i32_9 : i32
    scf.if %11 {
      %c0_10 = arith.constant 0 : index
      %c0_11 = arith.constant 0 : index
      %12 = vector.load %arg7[%c0_10, %c0_11] : memref<16x32xf32, #tpu.memory_space<vmem>>, vector<16x32xf32>
      %c0_12 = arith.constant 0 : index
      %c0_13 = arith.constant 0 : index
      %13 = vector.load %arg5[%c0_12, %c0_13] : memref<1x32xf32, #tpu.memory_space<vmem>>, vector<1x32xf32>
      %14 = vector.broadcast %13 : vector<1x32xf32> to vector<16x32xf32>
      %15 = arith.addf %12, %14 : vector<16x32xf32>
      %16 = arith.truncf %15 : vector<16x32xf32> to vector<16x32xbf16>
      %c0_14 = arith.constant 0 : index
      %c0_15 = arith.constant 0 : index
      %17 = vector.load %arg6[%c0_14, %c0_15] : memref<16x32xbf16, #tpu.memory_space<vmem>>, vector<16x32xbf16>
      tpu.vector_store %arg6[%c0_14, %c0_15], %16 {strides = array<i32>} : memref<16x32xbf16, #tpu.memory_space<vmem>>, vector<16x32xbf16>,
    } else {
    }
    return
  }
  func.func @transform_0(%arg0: i32, %arg1: i32, %arg2: i32) -> (i32, i32) {
    %c0_i32 = arith.constant 0 : i32
    return %arg0, %arg2 : i32, i32
  }
  func.func @transform_1(%arg0: i32, %arg1: i32, %arg2: i32) -> (i32, i32) {
    %c0_i32 = arith.constant 0 : i32
    return %arg2, %arg1 : i32, i32
  }
  func.func @transform_2(%arg0: i32, %arg1: i32, %arg2: i32) -> (i32, i32) {
    %c0_i32 = arith.constant 0 : i32
    %c0_i32_0 = arith.constant 0 : i32
    return %c0_i32, %arg1 : i32, i32
  }
  func.func @transform_3(%arg0: i32, %arg1: i32, %arg2: i32) -> (i32, i32) {
    %c0_i32 = arith.constant 0 : i32
    return %arg0, %arg1 : i32, i32
  }
}

module attributes {stable_mosaic.version = 11 : i64} {
  func.func @_matmul_kernel(%arg0: i32, %arg1: i32, %arg2: i32, %arg3: memref<16x32xbf16, #tpu.memory_space<vmem>>, %arg4: memref<32x64xbf16, #tpu.memory_space<vmem>>, %arg5: memref<1x64xf32, #tpu.memory_space<vmem>>, %arg6: memref<16x64xbf16, #tpu.memory_space<vmem>>, %arg7: memref<16x64xf32, #tpu.memory_space<vmem>>) attributes {dimension_semantics = [#tpu.dimension_semantics<parallel>, #tpu.dimension_semantics<parallel>, #tpu.dimension_semantics<arbitrary>], iteration_bounds = array<i64: 1, 1, 1>, scalar_prefetch = 0 : i64, scratch_operands = 1 : i64, tpu.core_type = #tpu.core_type<tc>, window_params = [{transform_indices = @transform_0, window_bounds = array<i64: 16, 32>}, {transform_indices = @transform_1, window_bounds = array<i64: 32, 64>}, {transform_indices = @transform_2, window_bounds = array<i64: 1, 64>}, {transform_indices = @transform_3, window_bounds = array<i64: 16, 64>}]} {
    %c0_i32 = arith.constant 0 : i32
    %0 = arith.cmpi eq, %arg2, %c0_i32 : i32
    %1 = arith.extui %0 : i1 to i32
    %c0_i32_0 = arith.constant 0 : i32
    %2 = arith.cmpi ne, %1, %c0_i32_0 : i32
    scf.if %2 {
      %cst_10 = arith.constant 0.000000e+00 : f32
      %12 = vector.broadcast %cst_10 : f32 to vector<16x64xf32>
      %c0_11 = arith.constant 0 : index
      %c0_12 = arith.constant 0 : index
      %13 = vector.load %arg7[%c0_11, %c0_12] : memref<16x64xf32, #tpu.memory_space<vmem>>, vector<16x64xf32>
      tpu.vector_store %arg7[%c0_11, %c0_12], %12 {strides = array<i32>} : memref<16x64xf32, #tpu.memory_space<vmem>>, vector<16x64xf32>,
    } else {
    }
    %c0 = arith.constant 0 : index
    %c0_1 = arith.constant 0 : index
    %3 = vector.load %arg7[%c0, %c0_1] : memref<16x64xf32, #tpu.memory_space<vmem>>, vector<16x64xf32>
    %c0_2 = arith.constant 0 : index
    %c0_3 = arith.constant 0 : index
    %4 = vector.load %arg3[%c0_2, %c0_3] : memref<16x32xbf16, #tpu.memory_space<vmem>>, vector<16x32xbf16>
    %c0_4 = arith.constant 0 : index
    %c0_5 = arith.constant 0 : index
    %5 = vector.load %arg4[%c0_4, %c0_5] : memref<32x64xbf16, #tpu.memory_space<vmem>>, vector<32x64xbf16>
    %cst = arith.constant dense<0.000000e+00> : vector<16x64xf32>
    %6 = tpu.matmul %4, %5, %cst {dimension_numbers = #tpu.dot_dimension_numbers<[1], [0], [0], [1], [0, 0, 1, 1], [], []>} : vector<16x32xbf16>, vector<32x64xbf16>, vector<16x64xf32> -> vector<16x64xf32>
    %7 = arith.addf %3, %6 : vector<16x64xf32>
    %c0_6 = arith.constant 0 : index
    %c0_7 = arith.constant 0 : index
    %8 = vector.load %arg7[%c0_6, %c0_7] : memref<16x64xf32, #tpu.memory_space<vmem>>, vector<16x64xf32>
    tpu.vector_store %arg7[%c0_6, %c0_7], %7 {strides = array<i32>} : memref<16x64xf32, #tpu.memory_space<vmem>>, vector<16x64xf32>,
    %c0_i32_8 = arith.constant 0 : i32
    %9 = arith.cmpi eq, %arg2, %c0_i32_8 : i32
    %10 = arith.extui %9 : i1 to i32
    %c0_i32_9 = arith.constant 0 : i32
    %11 = arith.cmpi ne, %10, %c0_i32_9 : i32
    scf.if %11 {
      %c0_10 = arith.constant 0 : index
      %c0_11 = arith.constant 0 : index
      %12 = vector.load %arg7[%c0_10, %c0_11] : memref<16x64xf32, #tpu.memory_space<vmem>>, vector<16x64xf32>
      %c0_12 = arith.constant 0 : index
      %c0_13 = arith.constant 0 : index
      %13 = vector.load %arg5[%c0_12, %c0_13] : memref<1x64xf32, #tpu.memory_space<vmem>>, vector<1x64xf32>
      %14 = vector.broadcast %13 : vector<1x64xf32> to vector<16x64xf32>
      %15 = arith.addf %12, %14 : vector<16x64xf32>
      %16 = arith.mulf %15, %15 : vector<16x64xf32>
      %17 = arith.mulf %15, %16 : vector<16x64xf32>
      %cst_14 = arith.constant 4.471500e-02 : f32
      %18 = vector.broadcast %cst_14 : f32 to vector<16x64xf32>
      %19 = arith.mulf %18, %17 : vector<16x64xf32>
      %20 = arith.addf %15, %19 : vector<16x64xf32>
      %cst_15 = arith.constant 0.797884583 : f32
      %21 = vector.broadcast %cst_15 : f32 to vector<16x64xf32>
      %22 = arith.mulf %21, %20 : vector<16x64xf32>
      %23 = math.tanh %22 : vector<16x64xf32>
      %cst_16 = arith.constant 1.000000e+00 : f32
      %24 = vector.broadcast %cst_16 : f32 to vector<16x64xf32>
      %25 = arith.addf %24, %23 : vector<16x64xf32>
      %cst_17 = arith.constant 5.000000e-01 : f32
      %26 = vector.broadcast %cst_17 : f32 to vector<16x64xf32>
      %27 = arith.mulf %26, %25 : vector<16x64xf32>
      %28 = arith.mulf %15, %27 : vector<16x64xf32>
      %29 = arith.truncf %28 : vector<16x64xf32> to vector<16x64xbf16>
      %c0_18 = arith.constant 0 : index
      %c0_19 = arith.constant 0 : index
      %30 = vector.load %arg6[%c0_18, %c0_19] : memref<16x64xbf16, #tpu.memory_space<vmem>>, vector<16x64xbf16>
      tpu.vector_store %arg6[%c0_18, %c0_19], %29 {strides = array<i32>} : memref<16x64xbf16, #tpu.memory_space<vmem>>, vector<16x64xbf16>,
    } else {
    }
    return
  }
  func.func @transform_0(%arg0: i32, %arg1: i32, %arg2: i32) -> (i32, i32) {
    %c0_i32 = arith.constant 0 : i32
    return %arg0, %arg2 : i32, i32
  }
  func.func @transform_1(%arg0: i32, %arg1: i32, %arg2: i32) -> (i32, i32) {
    %c0_i32 = arith.constant 0 : i32
    return %arg2, %arg1 : i32, i32
  }
  func.func @transform_2(%arg0: i32, %arg1: i32, %arg2: i32) -> (i32, i32) {
    %c0_i32 = arith.constant 0 : i32
    %c0_i32_0 = arith.constant 0 : i32
    return %c0_i32, %arg1 : i32, i32
  }
  func.func @transform_3(%arg0: i32, %arg1: i32, %arg2: i32) -> (i32, i32) {
    %c0_i32 = arith.constant 0 : i32
    return %arg0, %arg1 : i32, i32
  }
}

module attributes {stable_mosaic.version = 11 : i64} {
  func.func @_attention_kernel(%arg0: i32, %arg1: i32, %arg2: i32, %arg3: memref<1x4x8x8xbf16, #tpu.memory_space<vmem>>, %arg4: memref<1x4x16x8xbf16, #tpu.memory_space<vmem>>, %arg5: memref<1x4x16x8xbf16, #tpu.memory_space<vmem>>, %arg6: memref<1x1x16xf32, #tpu.memory_space<vmem>>, %arg7: memref<1x8x32xbf16, #tpu.memory_space<vmem>>, %arg8: memref<4x8x1xf32, #tpu.memory_space<vmem>>, %arg9: memref<4x8x1xf32, #tpu.memory_space<vmem>>, %arg10: memref<4x8x8xf32, #tpu.memory_space<vmem>>) attributes {dimension_semantics = [#tpu.dimension_semantics<parallel>, #tpu.dimension_semantics<parallel>, #tpu.dimension_semantics<arbitrary>], iteration_bounds = array<i64: 2, 1, 1>, scalar_prefetch = 0 : i64, scratch_operands = 3 : i64, tpu.core_type = #tpu.core_type<tc>, window_params = [{transform_indices = @transform_0, window_bounds = array<i64: 1, 4, 8, 8>}, {transform_indices = @transform_1, window_bounds = array<i64: 1, 4, 16, 8>}, {transform_indices = @transform_2, window_bounds = array<i64: 1, 4, 16, 8>}, {transform_indices = @transform_3, window_bounds = array<i64: 1, 1, 16>}, {transform_indices = @transform_4, window_bounds = array<i64: 1, 8, 32>}]} {
    %c0_i32 = arith.constant 0 : i32
    %0 = arith.cmpi eq, %arg2, %c0_i32 : i32
    %1 = arith.extui %0 : i1 to i32
    %c0_i32_0 = arith.constant 0 : i32
    %2 = arith.cmpi ne, %1, %c0_i32_0 : i32
    scf.if %2 {
      %cst_39 = arith.constant -1.000000e+30 : f32
      %43 = vector.broadcast %cst_39 : f32 to vector<4x8x1xf32>
      %c0_40 = arith.constant 0 : index
      %c0_41 = arith.constant 0 : index
      %c0_42 = arith.constant 0 : index
      %44 = vector.load %arg8[%c0_40, %c0_41, %c0_42] : memref<4x8x1xf32, #tpu.memory_space<vmem>>, vector<4x8x1xf32>
      tpu.vector_store %arg8[%c0_40, %c0_41, %c0_42], %43 {strides = array<i32>} : memref<4x8x1xf32, #tpu.memory_space<vmem>>, vector<4x8x1xf32>,
      %cst_43 = arith.constant 0.000000e+00 : f32
      %45 = vector.broadcast %cst_43 : f32 to vector<4x8x1xf32>
      %c0_44 = arith.constant 0 : index
      %c0_45 = arith.constant 0 : index
      %c0_46 = arith.constant 0 : index
      %46 = vector.load %arg9[%c0_44, %c0_45, %c0_46] : memref<4x8x1xf32, #tpu.memory_space<vmem>>, vector<4x8x1xf32>
      tpu.vector_store %arg9[%c0_44, %c0_45, %c0_46], %45 {strides = array<i32>} : memref<4x8x1xf32, #tpu.memory_space<vmem>>, vector<4x8x1xf32>,
      %cst_47 = arith.constant 0.000000e+00 : f32
      %47 = vector.broadcast %cst_47 : f32 to vector<4x8x8xf32>
      %c0_48 = arith.constant 0 : index
      %c0_49 = arith.constant 0 : index
      %c0_50 = arith.constant 0 : index
      %48 = vector.load %arg10[%c0_48, %c0_49, %c0_50] : memref<4x8x8xf32, #tpu.memory_space<vmem>>, vector<4x8x8xf32>
      tpu.vector_store %arg10[%c0_48, %c0_49, %c0_50], %47 {strides = array<i32>} : memref<4x8x8xf32, #tpu.memory_space<vmem>>, vector<4x8x8xf32>,
    } else {
    }
    %c0 = arith.constant 0 : index
    %c0_1 = arith.constant 0 : index
    %c0_2 = arith.constant 0 : index
    %c0_3 = arith.constant 0 : index
    %3 = vector.load %arg3[%c0, %c0_1, %c0_2, %c0_3] : memref<1x4x8x8xbf16, #tpu.memory_space<vmem>>, vector<1x4x8x8xbf16>
    %4 = vector.shape_cast %3 : vector<1x4x8x8xbf16> to vector<4x8x8xbf16>
    %c0_4 = arith.constant 0 : index
    %c0_5 = arith.constant 0 : index
    %c0_6 = arith.constant 0 : index
    %c0_7 = arith.constant 0 : index
    %5 = vector.load %arg4[%c0_4, %c0_5, %c0_6, %c0_7] : memref<1x4x16x8xbf16, #tpu.memory_space<vmem>>, vector<1x4x16x8xbf16>
    %6 = vector.shape_cast %5 : vector<1x4x16x8xbf16> to vector<4x16x8xbf16>
    %c0_8 = arith.constant 0 : index
    %c0_9 = arith.constant 0 : index
    %c0_10 = arith.constant 0 : index
    %c0_11 = arith.constant 0 : index
    %7 = vector.load %arg5[%c0_8, %c0_9, %c0_10, %c0_11] : memref<1x4x16x8xbf16, #tpu.memory_space<vmem>>, vector<1x4x16x8xbf16>
    %8 = vector.shape_cast %7 : vector<1x4x16x8xbf16> to vector<4x16x8xbf16>
    "tpu.trace_start"() <{level = 10 : i32, message = "hqd,hkd->hqk"}> : () -> ()
    %cst = arith.constant dense<0.000000e+00> : vector<4x8x16xf32>
    %9 = tpu.matmul %4, %6, %cst {dimension_numbers = #tpu.dot_dimension_numbers<[2], [2], [1], [1], [0, 0, 0, 1, 1, 1], [0], [0]>} : vector<4x8x8xbf16>, vector<4x16x8xbf16>, vector<4x8x16xf32> -> vector<4x8x16xf32>
    "tpu.trace_stop"() : () -> ()
    %cst_12 = arith.constant 0.353553385 : f32
    %10 = vector.broadcast %cst_12 : f32 to vector<4x8x16xf32>
    %11 = arith.mulf %9, %10 : vector<4x8x16xf32>
    %c0_13 = arith.constant 0 : index
    %c0_14 = arith.constant 0 : index
    %c0_15 = arith.constant 0 : index
    %12 = vector.load %arg6[%c0_13, %c0_14, %c0_15] : memref<1x1x16xf32, #tpu.memory_space<vmem>>, vector<1x1x16xf32>
    %13 = vector.shape_cast %12 : vector<1x1x16xf32> to vector<1x16xf32>
    %14 = vector.shape_cast %13 : vector<1x16xf32> to vector<1x1x16xf32>
    %15 = vector.broadcast %14 : vector<1x1x16xf32> to vector<4x8x16xf32>
    %16 = arith.addf %11, %15 : vector<4x8x16xf32>
    %c0_16 = arith.constant 0 : index
    %c0_17 = arith.constant 0 : index
    %c0_18 = arith.constant 0 : index
    %17 = vector.load %arg8[%c0_16, %c0_17, %c0_18] : memref<4x8x1xf32, #tpu.memory_space<vmem>>, vector<4x8x1xf32>
    %cst_19 = arith.constant dense<0xFF800000> : vector<4x8xf32>
    %18 = vector.multi_reduction <maximumf>, %16, %cst_19 [2] : vector<4x8x16xf32> to vector<4x8xf32>
    %19 = vector.shape_cast %18 : vector<4x8xf32> to vector<4x8x1xf32>
    %20 = arith.maximumf %17, %19 : vector<4x8x1xf32>
    %21 = arith.subf %17, %20 : vector<4x8x1xf32>
    %22 = math.exp %21 : vector<4x8x1xf32>
    %23 = vector.broadcast %20 : vector<4x8x1xf32> to vector<4x8x16xf32>
    %24 = arith.subf %16, %23 : vector<4x8x16xf32>
    %25 = math.exp %24 : vector<4x8x16xf32>
    %c0_20 = arith.constant 0 : index
    %c0_21 = arith.constant 0 : index
    %c0_22 = arith.constant 0 : index
    %26 = vector.load %arg9[%c0_20, %c0_21, %c0_22] : memref<4x8x1xf32, #tpu.memory_space<vmem>>, vector<4x8x1xf32>
    %27 = arith.mulf %22, %26 : vector<4x8x1xf32>
    %cst_23 = arith.constant dense<0.000000e+00> : vector<4x8xf32>
    %28 = vector.multi_reduction <add>, %25, %cst_23 [2] : vector<4x8x16xf32> to vector<4x8xf32>
    %29 = vector.shape_cast %28 : vector<4x8xf32> to vector<4x8x1xf32>
    %30 = arith.addf %27, %29 : vector<4x8x1xf32>
    %c0_24 = arith.constant 0 : index
    %c0_25 = arith.constant 0 : index
    %c0_26 = arith.constant 0 : index
    %31 = vector.load %arg9[%c0_24, %c0_25, %c0_26] : memref<4x8x1xf32, #tpu.memory_space<vmem>>, vector<4x8x1xf32>
    tpu.vector_store %arg9[%c0_24, %c0_25, %c0_26], %30 {strides = array<i32>} : memref<4x8x1xf32, #tpu.memory_space<vmem>>, vector<4x8x1xf32>,
    %c0_27 = arith.constant 0 : index
    %c0_28 = arith.constant 0 : index
    %c0_29 = arith.constant 0 : index
    %32 = vector.load %arg10[%c0_27, %c0_28, %c0_29] : memref<4x8x8xf32, #tpu.memory_space<vmem>>, vector<4x8x8xf32>
    %33 = vector.broadcast %22 : vector<4x8x1xf32> to vector<4x8x8xf32>
    %34 = arith.mulf %33, %32 : vector<4x8x8xf32>
    %35 = arith.truncf %25 : vector<4x8x16xf32> to vector<4x8x16xbf16>
    "tpu.trace_start"() <{level = 10 : i32, message = "hqk,hkd->hqd"}> : () -> ()
    %cst_30 = arith.constant dense<0.000000e+00> : vector<4x8x8xf32>
    %36 = tpu.matmul %35, %8, %cst_30 {dimension_numbers = #tpu.dot_dimension_numbers<[2], [1], [1], [2], [0, 0, 0, 1, 1, 2], [0], [0]>} : vector<4x8x16xbf16>, vector<4x16x8xbf16>, vector<4x8x8xf32> -> vector<4x8x8xf32>
    "tpu.trace_stop"() : () -> ()
    %37 = arith.addf %34, %36 : vector<4x8x8xf32>
    %c0_31 = arith.constant 0 : index
    %c0_32 = arith.constant 0 : index
    %c0_33 = arith.constant 0 : index
    %38 = vector.load %arg10[%c0_31, %c0_32, %c0_33] : memref<4x8x8xf32, #tpu.memory_space<vmem>>, vector<4x8x8xf32>
    tpu.vector_store %arg10[%c0_31, %c0_32, %c0_33], %37 {strides = array<i32>} : memref<4x8x8xf32, #tpu.memory_space<vmem>>, vector<4x8x8xf32>,
    %c0_34 = arith.constant 0 : index
    %c0_35 = arith.constant 0 : index
    %c0_36 = arith.constant 0 : index
    %39 = vector.load %arg8[%c0_34, %c0_35, %c0_36] : memref<4x8x1xf32, #tpu.memory_space<vmem>>, vector<4x8x1xf32>
    tpu.vector_store %arg8[%c0_34, %c0_35, %c0_36], %20 {strides = array<i32>} : memref<4x8x1xf32, #tpu.memory_space<vmem>>, vector<4x8x1xf32>,
    %c0_i32_37 = arith.constant 0 : i32
    %40 = arith.cmpi eq, %arg2, %c0_i32_37 : i32
    %41 = arith.extui %40 : i1 to i32
    %c0_i32_38 = arith.constant 0 : i32
    %42 = arith.cmpi ne, %41, %c0_i32_38 : i32
    scf.if %42 {
      %c0_39 = arith.constant 0 : index
      %c0_40 = arith.constant 0 : index
      %c0_41 = arith.constant 0 : index
      %43 = vector.load %arg9[%c0_39, %c0_40, %c0_41] : memref<4x8x1xf32, #tpu.memory_space<vmem>>, vector<4x8x1xf32>
      %44 = tpu.reciprocal %43 {approx = true} : vector<4x8x1xf32> -> vector<4x8x1xf32>
      %c0_42 = arith.constant 0 : index
      %c0_43 = arith.constant 0 : index
      %c0_44 = arith.constant 0 : index
      %45 = vector.load %arg10[%c0_42, %c0_43, %c0_44] : memref<4x8x8xf32, #tpu.memory_space<vmem>>, vector<4x8x8xf32>
      %46 = vector.broadcast %44 : vector<4x8x1xf32> to vector<4x8x8xf32>
      %47 = arith.mulf %45, %46 : vector<4x8x8xf32>
      %48 = vector.extract_strided_slice %47 {offsets = [0, 0, 0], sizes = [1, 8, 8], strides = [1, 1, 1]} : vector<4x8x8xf32> to vector<1x8x8xf32>
      %49 = vector.shape_cast %48 : vector<1x8x8xf32> to vector<8x8xf32>
      %50 = vector.extract_strided_slice %47 {offsets = [1, 0, 0], sizes = [1, 8, 8], strides = [1, 1, 1]} : vector<4x8x8xf32> to vector<1x8x8xf32>
      %51 = vector.shape_cast %50 : vector<1x8x8xf32> to vector<8x8xf32>
      %52 = vector.extract_strided_slice %47 {offsets = [2, 0, 0], sizes = [1, 8, 8], strides = [1, 1, 1]} : vector<4x8x8xf32> to vector<1x8x8xf32>
      %53 = vector.shape_cast %52 : vector<1x8x8xf32> to vector<8x8xf32>
      %54 = vector.extract_strided_slice %47 {offsets = [3, 0, 0], sizes = [1, 8, 8], strides = [1, 1, 1]} : vector<4x8x8xf32> to vector<1x8x8xf32>
      %55 = vector.shape_cast %54 : vector<1x8x8xf32> to vector<8x8xf32>
      %56 = tpu.concatenate %49, %51, %53, %55 in 1 : vector<8x8xf32>, vector<8x8xf32>, vector<8x8xf32>, vector<8x8xf32> -> vector<8x32xf32>
      %57 = arith.truncf %56 : vector<8x32xf32> to vector<8x32xbf16>
      %c0_45 = arith.constant 0 : index
      %c0_46 = arith.constant 0 : index
      %c0_47 = arith.constant 0 : index
      %58 = vector.load %arg7[%c0_45, %c0_46, %c0_47] : memref<1x8x32xbf16, #tpu.memory_space<vmem>>, vector<1x8x32xbf16>
      %59 = vector.shape_cast %58 : vector<1x8x32xbf16> to vector<8x32xbf16>
      %60 = vector.shape_cast %57 : vector<8x32xbf16> to vector<1x8x32xbf16>
      tpu.vector_store %arg7[%c0_45, %c0_46, %c0_47], %60 {strides = array<i32>} : memref<1x8x32xbf16, #tpu.memory_space<vmem>>, vector<1x8x32xbf16>,
    } else {
    }
    return
  }
  func.func @transform_0(%arg0: i32, %arg1: i32, %arg2: i32) -> (i32, i32, i32, i32) {
    %c0_i32 = arith.constant 0 : i32
    %c0_i32_0 = arith.constant 0 : i32
    %c0_i32_1 = arith.constant 0 : i32
    return %arg0, %c0_i32, %arg1, %c0_i32_0 : i32, i32, i32, i32
  }
  func.func @transform_1(%arg0: i32, %arg1: i32, %arg2: i32) -> (i32, i32, i32, i32) {
    %c0_i32 = arith.constant 0 : i32
    %c0_i32_0 = arith.constant 0 : i32
    %c0_i32_1 = arith.constant 0 : i32
    return %arg0, %c0_i32, %arg2, %c0_i32_0 : i32, i32, i32, i32
  }
  func.func @transform_2(%arg0: i32, %arg1: i32, %arg2: i32) -> (i32, i32, i32, i32) {
    %c0_i32 = arith.constant 0 : i32
    %c0_i32_0 = arith.constant 0 : i32
    %c0_i32_1 = arith.constant 0 : i32
    return %arg0, %c0_i32, %arg2, %c0_i32_0 : i32, i32, i32, i32
  }
  func.func @transform_3(%arg0: i32, %arg1: i32, %arg2: i32) -> (i32, i32, i32) {
    %c0_i32 = arith.constant 0 : i32
    %c0_i32_0 = arith.constant 0 : i32
    return %arg0, %c0_i32, %arg2 : i32, i32, i32
  }
  func.func @transform_4(%arg0: i32, %arg1: i32, %arg2: i32) -> (i32, i32, i32) {
    %c0_i32 = arith.constant 0 : i32
    %c0_i32_0 = arith.constant 0 : i32
    return %arg0, %arg1, %c0_i32 : i32, i32, i32
  }
}

module attributes {stable_mosaic.version = 11 : i64} {
  func.func @_matmul_kernel(%arg0: i32, %arg1: i32, %arg2: i32, %arg3: memref<16x64xbf16, #tpu.memory_space<vmem>>, %arg4: memref<64x32xbf16, #tpu.memory_space<vmem>>, %arg5: memref<1x32xf32, #tpu.memory_space<vmem>>, %arg6: memref<16x32xbf16, #tpu.memory_space<vmem>>, %arg7: memref<16x32xbf16, #tpu.memory_space<vmem>>, %arg8: memref<16x32xf32, #tpu.memory_space<vmem>>) attributes {dimension_semantics = [#tpu.dimension_semantics<parallel>, #tpu.dimension_semantics<parallel>, #tpu.dimension_semantics<arbitrary>], iteration_bounds = array<i64: 1, 1, 1>, scalar_prefetch = 0 : i64, scratch_operands = 1 : i64, tpu.core_type = #tpu.core_type<tc>, window_params = [{transform_indices = @transform_0, window_bounds = array<i64: 16, 64>}, {transform_indices = @transform_1, window_bounds = array<i64: 64, 32>}, {transform_indices = @transform_2, window_bounds = array<i64: 1, 32>}, {transform_indices = @transform_3, window_bounds = array<i64: 16, 32>}, {transform_indices = @transform_4, window_bounds = array<i64: 16, 32>}]} {
    %c0_i32 = arith.constant 0 : i32
    %0 = arith.cmpi eq, %arg2, %c0_i32 : i32
    %1 = arith.extui %0 : i1 to i32
    %c0_i32_0 = arith.constant 0 : i32
    %2 = arith.cmpi ne, %1, %c0_i32_0 : i32
    scf.if %2 {
      %cst_10 = arith.constant 0.000000e+00 : f32
      %12 = vector.broadcast %cst_10 : f32 to vector<16x32xf32>
      %c0_11 = arith.constant 0 : index
      %c0_12 = arith.constant 0 : index
      %13 = vector.load %arg8[%c0_11, %c0_12] : memref<16x32xf32, #tpu.memory_space<vmem>>, vector<16x32xf32>
      tpu.vector_store %arg8[%c0_11, %c0_12], %12 {strides = array<i32>} : memref<16x32xf32, #tpu.memory_space<vmem>>, vector<16x32xf32>,
    } else {
    }
    %c0 = arith.constant 0 : index
    %c0_1 = arith.constant 0 : index
    %3 = vector.load %arg8[%c0, %c0_1] : memref<16x32xf32, #tpu.memory_space<vmem>>, vector<16x32xf32>
    %c0_2 = arith.constant 0 : index
    %c0_3 = arith.constant 0 : index
    %4 = vector.load %arg3[%c0_2, %c0_3] : memref<16x64xbf16, #tpu.memory_space<vmem>>, vector<16x64xbf16>
    %c0_4 = arith.constant 0 : index
    %c0_5 = arith.constant 0 : index
    %5 = vector.load %arg4[%c0_4, %c0_5] : memref<64x32xbf16, #tpu.memory_space<vmem>>, vector<64x32xbf16>
    %cst = arith.constant dense<0.000000e+00> : vector<16x32xf32>
    %6 = tpu.matmul %4, %5, %cst {dimension_numbers = #tpu.dot_dimension_numbers<[1], [0], [0], [1], [0, 0, 1, 1], [], []>} : vector<16x64xbf16>, vector<64x32xbf16>, vector<16x32xf32> -> vector<16x32xf32>
    %7 = arith.addf %3, %6 : vector<16x32xf32>
    %c0_6 = arith.constant 0 : index
    %c0_7 = arith.constant 0 : index
    %8 = vector.load %arg8[%c0_6, %c0_7] : memref<16x32xf32, #tpu.memory_space<vmem>>, vector<16x32xf32>
    tpu.vector_store %arg8[%c0_6, %c0_7], %7 {strides = array<i32>} : memref<16x32xf32, #tpu.memory_space<vmem>>, vector<16x32xf32>,
    %c0_i32_8 = arith.constant 0 : i32
    %9 = arith.cmpi eq, %arg2, %c0_i32_8 : i32
    %10 = arith.extui %9 : i1 to i32
    %c0_i32_9 = arith.constant 0 : i32
    %11 = arith.cmpi ne, %10, %c0_i32_9 : i32
    scf.if %11 {
      %c0_10 = arith.constant 0 : index
      %c0_11 = arith.constant 0 : index
      %12 = vector.load %arg8[%c0_10, %c0_11] : memref<16x32xf32, #tpu.memory_space<vmem>>, vector<16x32xf32>
      %c0_12 = arith.constant 0 : index
      %c0_13 = arith.constant 0 : index
      %13 = vector.load %arg5[%c0_12, %c0_13] : memref<1x32xf32, #tpu.memory_space<vmem>>, vector<1x32xf32>
      %14 = vector.broadcast %13 : vector<1x32xf32> to vector<16x32xf32>
      %15 = arith.addf %12, %14 : vector<16x32xf32>
      %c0_14 = arith.constant 0 : index
      %c0_15 = arith.constant 0 : index
      %16 = vector.load %arg6[%c0_14, %c0_15] : memref<16x32xbf16, #tpu.memory_space<vmem>>, vector<16x32xbf16>
      %17 = arith.extf %16 : vector<16x32xbf16> to vector<16x32xf32>
      %18 = arith.addf %15, %17 : vector<16x32xf32>
      %19 = arith.truncf %18 : vector<16x32xf32> to vector<16x32xbf16>
      %c0_16 = arith.constant 0 : index
      %c0_17 = arith.constant 0 : index
      %20 = vector.load %arg7[%c0_16, %c0_17] : memref<16x32xbf16, #tpu.memory_space<vmem>>, vector<16x32xbf16>
      tpu.vector_store %arg7[%c0_16, %c0_17], %19 {strides = array<i32>} : memref<16x32xbf16, #tpu.memory_space<vmem>>, vector<16x32xbf16>,
    } else {
    }
    return
  }
  func.func @transform_0(%arg0: i32, %arg1: i32, %arg2: i32) -> (i32, i32) {
    %c0_i32 = arith.constant 0 : i32
    return %arg0, %arg2 : i32, i32
  }
  func.func @transform_1(%arg0: i32, %arg1: i32, %arg2: i32) -> (i32, i32) {
    %c0_i32 = arith.constant 0 : i32
    return %arg2, %arg1 : i32, i32
  }
  func.func @transform_2(%arg0: i32, %arg1: i32, %arg2: i32) -> (i32, i32) {
    %c0_i32 = arith.constant 0 : i32
    %c0_i32_0 = arith.constant 0 : i32
    return %c0_i32, %arg1 : i32, i32
  }
  func.func @transform_3(%arg0: i32, %arg1: i32, %arg2: i32) -> (i32, i32) {
    %c0_i32 = arith.constant 0 : i32
    return %arg0, %arg1 : i32, i32
  }
  func.func @transform_4(%arg0: i32, %arg1: i32, %arg2: i32) -> (i32, i32) {
    %c0_i32 = arith.constant 0 : i32
    return %arg0, %arg1 : i32, i32
  }
}

module attributes {stable_mosaic.version = 11 : i64} {
  func.func @_lm_stats_kernel(%arg0: i32, %arg1: i32, %arg2: memref<16x32xbf16, #tpu.memory_space<vmem>>, %arg3: memref<32x128xbf16, #tpu.memory_space<vmem>>, %arg4: memref<16x1xf32, #tpu.memory_space<vmem>>, %arg5: memref<16x1xf32, #tpu.memory_space<vmem>>) attributes {dimension_semantics = [#tpu.dimension_semantics<parallel>, #tpu.dimension_semantics<arbitrary>], iteration_bounds = array<i64: 1, 3>, scalar_prefetch = 0 : i64, scratch_operands = 0 : i64, tpu.core_type = #tpu.core_type<tc>, window_params = [{transform_indices = @transform_0, window_bounds = array<i64: 16, 32>}, {transform_indices = @transform_1, window_bounds = array<i64: 32, 128>}, {transform_indices = @transform_2, window_bounds = array<i64: 16, 1>}, {transform_indices = @transform_3, window_bounds = array<i64: 16, 1>}]} {
    %c0_i32 = arith.constant 0 : i32
    %0 = arith.cmpi eq, %arg1, %c0_i32 : i32
    %1 = arith.extui %0 : i1 to i32
    %c0_i32_0 = arith.constant 0 : i32
    %2 = arith.cmpi ne, %1, %c0_i32_0 : i32
    scf.if %2 {
      %cst_15 = arith.constant -1.000000e+30 : f32
      %30 = vector.broadcast %cst_15 : f32 to vector<16x1xf32>
      %c0_16 = arith.constant 0 : index
      %c0_17 = arith.constant 0 : index
      %31 = vector.load %arg4[%c0_16, %c0_17] : memref<16x1xf32, #tpu.memory_space<vmem>>, vector<16x1xf32>
      tpu.vector_store %arg4[%c0_16, %c0_17], %30 {strides = array<i32>} : memref<16x1xf32, #tpu.memory_space<vmem>>, vector<16x1xf32>,
      %cst_18 = arith.constant 0.000000e+00 : f32
      %32 = vector.broadcast %cst_18 : f32 to vector<16x1xf32>
      %c0_19 = arith.constant 0 : index
      %c0_20 = arith.constant 0 : index
      %33 = vector.load %arg5[%c0_19, %c0_20] : memref<16x1xf32, #tpu.memory_space<vmem>>, vector<16x1xf32>
      tpu.vector_store %arg5[%c0_19, %c0_20], %32 {strides = array<i32>} : memref<16x1xf32, #tpu.memory_space<vmem>>, vector<16x1xf32>,
    } else {
    }
    %c0 = arith.constant 0 : index
    %c0_1 = arith.constant 0 : index
    %3 = vector.load %arg2[%c0, %c0_1] : memref<16x32xbf16, #tpu.memory_space<vmem>>, vector<16x32xbf16>
    %c0_2 = arith.constant 0 : index
    %c0_3 = arith.constant 0 : index
    %4 = vector.load %arg3[%c0_2, %c0_3] : memref<32x128xbf16, #tpu.memory_space<vmem>>, vector<32x128xbf16>
    %cst = arith.constant dense<0.000000e+00> : vector<16x128xf32>
    %5 = tpu.matmul %3, %4, %cst {dimension_numbers = #tpu.dot_dimension_numbers<[1], [0], [0], [1], [0, 0, 1, 1], [], []>} : vector<16x32xbf16>, vector<32x128xbf16>, vector<16x128xf32> -> vector<16x128xf32>
    %6 = tpu.iota {dimensions = array<i32: 1>} : vector<16x128xi32>
    %c128_i32 = arith.constant 128 : i32
    %7 = arith.muli %arg1, %c128_i32 : i32
    %8 = vector.broadcast %7 : i32 to vector<16x128xi32>
    %9 = arith.addi %6, %8 : vector<16x128xi32>
    %c300_i32 = arith.constant 300 : i32
    %10 = vector.broadcast %c300_i32 : i32 to vector<16x128xi32>
    %11 = arith.cmpi slt, %9, %10 : vector<16x128xi32>
    %cst_4 = arith.constant -1.000000e+30 : f32
    %12 = vector.broadcast %cst_4 : f32 to vector<16x128xf32>
    %13 = arith.select %11, %5, %12 : vector<16x128xi1>, vector<16x128xf32>
    %c0_5 = arith.constant 0 : index
    %c0_6 = arith.constant 0 : index
    %14 = vector.load %arg4[%c0_5, %c0_6] : memref<16x1xf32, #tpu.memory_space<vmem>>, vector<16x1xf32>
    %cst_7 = arith.constant dense<0xFF800000> : vector<16xf32>
    %15 = vector.multi_reduction <maximumf>, %13, %cst_7 [1] : vector<16x128xf32> to vector<16xf32>
    %16 = vector.shape_cast %15 : vector<16xf32> to vector<16x1xf32>
    %17 = arith.maximumf %14, %16 : vector<16x1xf32>
    %c0_8 = arith.constant 0 : index
    %c0_9 = arith.constant 0 : index
    %18 = vector.load %arg5[%c0_8, %c0_9] : memref<16x1xf32, #tpu.memory_space<vmem>>, vector<16x1xf32>
    %19 = arith.subf %14, %17 : vector<16x1xf32>
    %20 = math.exp %19 : vector<16x1xf32>
    %21 = arith.mulf %18, %20 : vector<16x1xf32>
    %22 = vector.broadcast %17 : vector<16x1xf32> to vector<16x128xf32>
    %23 = arith.subf %13, %22 : vector<16x128xf32>
    %24 = math.exp %23 : vector<16x128xf32>
    %cst_10 = arith.constant dense<0.000000e+00> : vector<16xf32>
    %25 = vector.multi_reduction <add>, %24, %cst_10 [1] : vector<16x128xf32> to vector<16xf32>
    %26 = vector.shape_cast %25 : vector<16xf32> to vector<16x1xf32>
    %27 = arith.addf %21, %26 : vector<16x1xf32>
    %c0_11 = arith.constant 0 : index
    %c0_12 = arith.constant 0 : index
    %28 = vector.load %arg5[%c0_11, %c0_12] : memref<16x1xf32, #tpu.memory_space<vmem>>, vector<16x1xf32>
    tpu.vector_store %arg5[%c0_11, %c0_12], %27 {strides = array<i32>} : memref<16x1xf32, #tpu.memory_space<vmem>>, vector<16x1xf32>,
    %c0_13 = arith.constant 0 : index
    %c0_14 = arith.constant 0 : index
    %29 = vector.load %arg4[%c0_13, %c0_14] : memref<16x1xf32, #tpu.memory_space<vmem>>, vector<16x1xf32>
    tpu.vector_store %arg4[%c0_13, %c0_14], %17 {strides = array<i32>} : memref<16x1xf32, #tpu.memory_space<vmem>>, vector<16x1xf32>,
    return
  }
  func.func @transform_0(%arg0: i32, %arg1: i32) -> (i32, i32) {
    %c0_i32 = arith.constant 0 : i32
    %c0_i32_0 = arith.constant 0 : i32
    return %arg0, %c0_i32 : i32, i32
  }
  func.func @transform_1(%arg0: i32, %arg1: i32) -> (i32, i32) {
    %c0_i32 = arith.constant 0 : i32
    %c0_i32_0 = arith.constant 0 : i32
    return %c0_i32, %arg1 : i32, i32
  }
  func.func @transform_2(%arg0: i32, %arg1: i32) -> (i32, i32) {
    %c0_i32 = arith.constant 0 : i32
    %c0_i32_0 = arith.constant 0 : i32
    return %arg0, %c0_i32 : i32, i32
  }
  func.func @transform_3(%arg0: i32, %arg1: i32) -> (i32, i32) {
    %c0_i32 = arith.constant 0 : i32
    %c0_i32_0 = arith.constant 0 : i32
    return %arg0, %c0_i32 : i32, i32
  }
}

module attributes {stable_mosaic.version = 11 : i64} {
  func.func @_lm_probs_kernel(%arg0: i32, %arg1: i32, %arg2: memref<16x32xbf16, #tpu.memory_space<vmem>>, %arg3: memref<32x128xbf16, #tpu.memory_space<vmem>>, %arg4: memref<16x1xf32, #tpu.memory_space<vmem>>, %arg5: memref<16x1xf32, #tpu.memory_space<vmem>>, %arg6: memref<16x128xbf16, #tpu.memory_space<vmem>>) attributes {dimension_semantics = [#tpu.dimension_semantics<parallel>, #tpu.dimension_semantics<parallel>], iteration_bounds = array<i64: 1, 3>, scalar_prefetch = 0 : i64, scratch_operands = 0 : i64, tpu.core_type = #tpu.core_type<tc>, window_params = [{transform_indices = @transform_0, window_bounds = array<i64: 16, 32>}, {transform_indices = @transform_1, window_bounds = array<i64: 32, 128>}, {transform_indices = @transform_2, window_bounds = array<i64: 16, 1>}, {transform_indices = @transform_3, window_bounds = array<i64: 16, 1>}, {transform_indices = @transform_4, window_bounds = array<i64: 16, 128>}]} {
    %c0 = arith.constant 0 : index
    %c0_0 = arith.constant 0 : index
    %0 = vector.load %arg2[%c0, %c0_0] : memref<16x32xbf16, #tpu.memory_space<vmem>>, vector<16x32xbf16>
    %c0_1 = arith.constant 0 : index
    %c0_2 = arith.constant 0 : index
    %1 = vector.load %arg3[%c0_1, %c0_2] : memref<32x128xbf16, #tpu.memory_space<vmem>>, vector<32x128xbf16>
    %cst = arith.constant dense<0.000000e+00> : vector<16x128xf32>
    %2 = tpu.matmul %0, %1, %cst {dimension_numbers = #tpu.dot_dimension_numbers<[1], [0], [0], [1], [0, 0, 1, 1], [], []>} : vector<16x32xbf16>, vector<32x128xbf16>, vector<16x128xf32> -> vector<16x128xf32>
    %c0_3 = arith.constant 0 : index
    %c0_4 = arith.constant 0 : index
    %3 = vector.load %arg4[%c0_3, %c0_4] : memref<16x1xf32, #tpu.memory_space<vmem>>, vector<16x1xf32>
    %4 = vector.broadcast %3 : vector<16x1xf32> to vector<16x128xf32>
    %5 = arith.subf %2, %4 : vector<16x128xf32>
    %6 = math.exp %5 : vector<16x128xf32>
    %c0_5 = arith.constant 0 : index
    %c0_6 = arith.constant 0 : index
    %7 = vector.load %arg5[%c0_5, %c0_6] : memref<16x1xf32, #tpu.memory_space<vmem>>, vector<16x1xf32>
    %8 = vector.broadcast %7 : vector<16x1xf32> to vector<16x128xf32>
    %9 = arith.divf %6, %8 : vector<16x128xf32>
    %10 = tpu.iota {dimensions = array<i32: 1>} : vector<16x128xi32>
    %c128_i32 = arith.constant 128 : i32
    %11 = arith.muli %arg1, %c128_i32 : i32
    %12 = vector.broadcast %11 : i32 to vector<16x128xi32>
    %13 = arith.addi %10, %12 : vector<16x128xi32>
    %c300_i32 = arith.constant 300 : i32
    %14 = vector.broadcast %c300_i32 : i32 to vector<16x128xi32>
    %15 = arith.cmpi slt, %13, %14 : vector<16x128xi32>
    %cst_7 = arith.constant 0.000000e+00 : f32
    %16 = vector.broadcast %cst_7 : f32 to vector<16x128xf32>
    %17 = arith.select %15, %9, %16 : vector<16x128xi1>, vector<16x128xf32>
    %18 = arith.truncf %17 : vector<16x128xf32> to vector<16x128xbf16>
    %c0_8 = arith.constant 0 : index
    %c0_9 = arith.constant 0 : index
    %19 = vector.load %arg6[%c0_8, %c0_9] : memref<16x128xbf16, #tpu.memory_space<vmem>>, vector<16x128xbf16>
    tpu.vector_store %arg6[%c0_8, %c0_9], %18 {strides = array<i32>} : memref<16x128xbf16, #tpu.memory_space<vmem>>, vector<16x128xbf16>,
    return
  }
  func.func @transform_0(%arg0: i32, %arg1: i32) -> (i32, i32) {
    %c0_i32 = arith.constant 0 : i32
    %c0_i32_0 = arith.constant 0 : i32
    return %arg0, %c0_i32 : i32, i32
  }
  func.func @transform_1(%arg0: i32, %arg1: i32) -> (i32, i32) {
    %c0_i32 = arith.constant 0 : i32
    %c0_i32_0 = arith.constant 0 : i32
    return %c0_i32, %arg1 : i32, i32
  }
  func.func @transform_2(%arg0: i32, %arg1: i32) -> (i32, i32) {
    %c0_i32 = arith.constant 0 : i32
    %c0_i32_0 = arith.constant 0 : i32
    return %arg0, %c0_i32 : i32, i32
  }
  func.func @transform_3(%arg0: i32, %arg1: i32) -> (i32, i32) {
    %c0_i32 = arith.constant 0 : i32
    %c0_i32_0 = arith.constant 0 : i32
    return %arg0, %c0_i32 : i32, i32
  }
  func.func @transform_4(%arg0: i32, %arg1: i32) -> (i32, i32) {
    %c0_i32 = arith.constant 0 : i32
    return %arg0, %arg1 : i32, i32
  }
}

</mosaic_0001>

<bundles_post_ra>
// kernel: bart_decoder_forward.30
= control target key start
LH: loop header
LB: loop body
LE: loop exit
PB: predicated region body
PF: predicated region fallthrough
CT: control target
= control target key end

     0   :  { %vm19_vm0 = vcmask 785408   ;;  %v151_v0 = vmov 0.0   ;;  %vm152_vm1 = vmmov 0   ;;  %vm47_vm2 = vcmask 261120   ;;  %s195_s1 = inlined_call_operand.vmem [shape: bf16[32,96], index: 1, kind: input, shape index: {}]   ;;  %s196_s0 = inlined_call_operand.vmem [shape: bf16[16,32], index: 0, kind: input, shape index: {}]   ;;  %s197_s2 = inlined_call_operand.vmem [shape: f32[1,96], index: 2, kind: input, shape index: {}]   ;;  %s198_s3 = inlined_call_operand.vmem [shape: bf16[16,96], index: 3, kind: output, shape index: {}]  }
   0x1   :  { %138 = vmatprep.subr.bf16.mxu0 %v151_v0  ;;  %v148_v1 = vld [vmem:[%s195_s1] sm:$0xff]   ;;  %142 = vmatprep.mubr.msk.bf16.mxu0 %vm152_vm1, %v151_v0  ;;  %20 = vst.msk [vmem:[#allocation2] sm:$0xff] %vm19_vm0, %v151_v0  ;;  %21 = vst.msk [vmem:[#allocation2 + $0x8] sm:$0xff] %vm19_vm0, %v151_v0  ;;  %v149_v2 = vld [vmem:[%s195_s1 + $0x8] sm:$0xff]   ;;  %vm119_vm3 = vcmask 781312  }
   0x2   :  { %139 = vmatpush3.bf16.msra.mxu0 %v148_v1  ;;  %v150_v3 = vld [vmem:[%s196_s0] sm:$0xff]  }
   0x3   :  { %140 = vmatprep.subr.bf16.mxu0 %v151_v0  ;;  %v130_v12 = vld [vmem:[%s197_s2] ss:$0 sm:$0xff] }
   0x6   :  { %141 = vmatpush3.bf16.msra.mxu0 %v149_v2 }
   0x8   :  { %v22_v4 = vld [vmem:[#allocation2] sm:$0xff]  ;;  %v23_v6 = vld [vmem:[#allocation2 + $0x8] sm:$0xff] }
   0x9   :  { %143 = vmatmul.mubr.msk.bf16.vlgmr.msra.gmra.mrb[0].mxu0 %vm47_vm2, %v150_v3 }
  0xdc   :  { %v85_v5 = vpop.f32.mrb[0].mxu0 }
  0xdd   :  { %v92_v7 = vadd.f32 %v85_v5, %v22_v4  ;;  %v144_v8 = vpop.f32.mrb[1].mxu0 }
  0xde   :  { %v88_v9 = vpop.f32.mrb[2].mxu0 }
  0xdf   :  { %95 = vst.msk [vmem:[#allocation2] sm:$0xff] %vm19_vm0, %v92_v7  ;;  %v93_v10 = vadd.f32 %v88_v9, %v23_v6  ;;  %v145_v11 = vpop.f32.mrb[3].mxu0 }
  0xe1   :  { %96 = vst.msk [vmem:[#allocation2 + $0x8] sm:$0xff] %vm19_vm0, %v93_v10 }
  0xe6   :  { %v100_v13 = vld [vmem:[#allocation2] sm:$0xff] }
  0xe7   :  { %v109_v14 = vadd.f32 %v130_v12, %v100_v13 }
  0xe8   :  { %v101_v15 = vld [vmem:[#allocation2 + $0x8] sm:$0xff] }
  0xe9   :  { %v133_v16 = vpack.c.bf16 %v109_v14, %v109_v14  ;;  %v110_v17 = vadd.f32 %v130_v12, %v101_v15 }
  0xeb   :  { %120 = vst.msk [vmem:[%s198_s3] sm:$0xf] %vm119_vm3, %v133_v16  ;;  %v134_v18 = vpack.c.bf16 %v110_v17, %v110_v17 }
  0xed   :  { %121 = vst.msk [vmem:[%s198_s3 + $0x4] sm:$0xf] %vm119_vm3, %v134_v18 }

// kernel: bart_decoder_forward.28
= control target key start
LH: loop header
LB: loop body
LE: loop exit
PB: predicated region body
PF: predicated region fallthrough
CT: control target
= control target key end

     0   :  { %vm18_vm0 = vcmask 261120   ;;  %vm72_vm1 = vcmask 257024   ;;  %s132_s0 = inlined_call_operand.vmem [shape: bf16[16,32], index: 0, kind: input, shape index: {}]   ;;  %s133_s1 = inlined_call_operand.vmem [shape: f32[1,32], index: 1, kind: input, shape index: {}]   ;;  %s134_s2 = inlined_call_operand.vmem [shape: f32[1,32], index: 2, kind: input, shape index: {}]   ;;  %s135_s3 = inlined_call_operand.vmem [shape: bf16[16,32], index: 3, kind: output, shape index: {}]  }
   0x1   :  { %v86_v0 = vld [vmem:[%s132_s0] sm:$0xff]  }
   0x2   :  { %v87_v1 = vunpack.c.l.bf16 %v86_v0  ;;  %v88_v2 = vunpack.c.h.bf16 %v86_v0  ;;  %v79_v22 = vld [vmem:[%s133_s1] ss:$0 sm:$0xff] }
   0x3   :  { %v80_v24 = vld [vmem:[%s134_s2] ss:$0 sm:$0xff] }
   0x4   :  { %v19_v3 = vsel %vm18_vm0, %v87_v1, 0.0  ;;  %v22_v4 = vsel %vm18_vm0, %v88_v2, 0.0 }
   0x5   :  { %20 = vadd.xlane.f32.xlu0 %v19_v3 }
   0x9   :  { %23 = vadd.xlane.f32.xlu0 %v22_v4 }
  0x92   :  { %v21_v5 = vpop.xlane.xlu0 %20 }
  0x93   :  { %v26_v6 = vmul.f32 0.03125, %v21_v5 }
  0x95   :  { %v28_v7 = vsub.f32 %v87_v1, %v26_v6 }
  0x96   :  { %v24_v8 = vpop.xlane.xlu0 %23 }
  0x97   :  { %v27_v9 = vmul.f32 0.03125, %v24_v8  ;;  %v30_v10 = vmul.f32 %v28_v7, %v28_v7 }
  0x99   :  { %v29_v11 = vsub.f32 %v88_v2, %v27_v9  ;;  %v32_v12 = vsel %vm18_vm0, %v30_v10, 0.0 }
  0x9a   :  { %33 = vadd.xlane.f32.xlu1 %v32_v12 }
  0x9b   :  { %v31_v13 = vmul.f32 %v29_v11, %v29_v11 }
  0x9d   :  { %v35_v14 = vsel %vm18_vm0, %v31_v13, 0.0 }
  0x9e   :  { %36 = vadd.xlane.f32.xlu1 %v35_v14 }
 0x127   :  { %v34_v15 = vpop.xlane.xlu1 %33 }
 0x128   :  { %v38_v16 = vmul.f32 0.03125, %v34_v15 }
 0x12a   :  { %v40_v17 = vadd.f32 1e-05, %v38_v16 }
 0x12b   :  { %v37_v18 = vpop.xlane.xlu1 %36 }
 0x12c   :  { %89 = vrsqrt.f32 %v40_v17  ;;  %v39_v19 = vmul.f32 0.03125, %v37_v18 }
 0x12e   :  { %v41_v20 = vadd.f32 1e-05, %v39_v19 }
 0x130   :  { %91 = vrsqrt.f32 %v41_v20 }
 0x136   :  { %v90_v21 = vpop.eup %89 }
 0x137   :  { %v44_v23 = vmul.f32 %v90_v21, %v28_v7 }
 0x139   :  { %v53_v25 = vmul.f32 %v79_v22, %v44_v23 }
 0x13a   :  { %v92_v26 = vpop.eup %91 }
 0x13b   :  { %v62_v27 = vadd.f32 %v80_v24, %v53_v25  ;;  %v45_v28 = vmul.f32 %v92_v26, %v29_v11 }
 0x13d   :  { %v83_v29 = vpack.c.bf16 %v62_v27, %v62_v27  ;;  %v54_v30 = vmul.f32 %v79_v22, %v45_v28 }
 0x13f   :  { %73 = vst.msk [vmem:[%s135_s3] sm:$0xf] %vm72_vm1, %v83_v29  ;;  %v63_v31 = vadd.f32 %v80_v24, %v54_v30 }
 0x141   :  { %v84_v32 = vpack.c.bf16 %v63_v31, %v63_v31 }
 0x143   :  { %74 = vst.msk [vmem:[%s135_s3 + $0x4] sm:$0xf] %vm72_vm1, %v84_v32 }

// kernel: bart_decoder_forward.32
= control target key start
LH: loop header
LB: loop body
LE: loop exit
PB: predicated region body
PF: predicated region fallthrough
CT: control target
= control target key end

     0   :  { %vm22_vm0 = vcmask 261120   ;;  %v163_v0 = vmov 0.0   ;;  %vm164_vm1 = vmmov 0   ;;  %vm127_vm2 = vcmask 257024   ;;  %s216_s1 = inlined_call_operand.vmem [shape: bf16[32,32], index: 1, kind: input, shape index: {}]   ;;  %s217_s0 = inlined_call_operand.vmem [shape: bf16[16,32], index: 0, kind: input, shape index: {}]   ;;  %s218_s3 = inlined_call_operand.vmem [shape: bf16[16,32], index: 3, kind: input, shape index: {}]   ;;  %s219_s2 = inlined_call_operand.vmem [shape: f32[1,32], index: 2, kind: input, shape index: {}]   ;;  %s220_s4 = inlined_call_operand.vmem [shape: bf16[16,32], index: 4, kind: output, shape index: {}]  }
   0x1   :  { %150 = vmatprep.subr.bf16.mxu0 %v163_v0  ;;  %v160_v1 = vld [vmem:[%s216_s1] sm:$0xff]   ;;  %154 = vmatprep.mubr.msk.bf16.mxu0 %vm164_vm1, %v163_v0  ;;  %23 = vst.msk [vmem:[#allocation2] sm:$0xff] %vm22_vm0, %v163_v0  ;;  %24 = vst.msk [vmem:[#allocation2 + $0x8] sm:$0xff] %vm22_vm0, %v163_v0  ;;  %v161_v2 = vld [vmem:[%s216_s1 + $0x8] sm:$0xff]  }
   0x2   :  { %151 = vmatpush3.bf16.msra.mxu0 %v160_v1  ;;  %v162_v3 = vld [vmem:[%s217_s0] sm:$0xff]  }
   0x3   :  { %152 = vmatprep.subr.bf16.mxu0 %v163_v0  ;;  %v144_v12 = vld [vmem:[%s218_s3] sm:$0xff]  }
   0x4   :  { %v138_v13 = vld [vmem:[%s219_s2] ss:$0 sm:$0xff]  ;;  %v145_v14 = vunpack.c.l.bf16 %v144_v12  ;;  %v146_v17 = vunpack.c.h.bf16 %v144_v12 }
   0x6   :  { %153 = vmatpush3.bf16.msra.mxu0 %v161_v2 }
   0x8   :  { %v25_v4 = vld [vmem:[#allocation2] sm:$0xff]  ;;  %v26_v6 = vld [vmem:[#allocation2 + $0x8] sm:$0xff] }
   0x9   :  { %155 = vmatmul.mubr.msk.bf16.vlgmr.msra.gmra.mrb[0].mxu0 %vm22_vm0, %v162_v3 }
  0xdc   :  { %v88_v5 = vpop.f32.mrb[0].mxu0 }
  0xdd   :  { %v95_v7 = vadd.f32 %v88_v5, %v25_v4  ;;  %v156_v8 = vpop.f32.mrb[1].mxu0 }
  0xde   :  { %v91_v9 = vpop.f32.mrb[2].mxu0 }
  0xdf   :  { %97 = vst.msk [vmem:[#allocation2] sm:$0xff] %vm22_vm0, %v95_v7  ;;  %v96_v10 = vadd.f32 %v91_v9, %v26_v6  ;;  %v157_v11 = vpop.f32.mrb[3].mxu0 }
  0xe1   :  { %98 = vst.msk [vmem:[#allocation2 + $0x8] sm:$0xff] %vm22_vm0, %v96_v10 }
  0xe6   :  { %v102_v15 = vld [vmem:[#allocation2] sm:$0xff] }
  0xe7   :  { %v111_v16 = vadd.f32 %v138_v13, %v102_v15 }
  0xe8   :  { %v103_v18 = vld [vmem:[#allocation2 + $0x8] sm:$0xff] }
  0xe9   :  { %v117_v19 = vadd.f32 %v145_v14, %v111_v16  ;;  %v112_v20 = vadd.f32 %v138_v13, %v103_v18 }
  0xeb   :  { %v141_v21 = vpack.c.bf16 %v117_v19, %v117_v19  ;;  %v118_v22 = vadd.f32 %v146_v17, %v112_v20 }
  0xed   :  { %128 = vst.msk [vmem:[%s220_s4] sm:$0xf] %vm127_vm2, %v141_v21  ;;  %v142_v23 = vpack.c.bf16 %v118_v22, %v118_v22 }
  0xef   :  { %129 = vst.msk [vmem:[%s220_s4 + $0x4] sm:$0xf] %vm127_vm2, %v142_v23 }

// kernel: bart_decoder_forward.31
= control target key start
LH: loop header
LB: loop body
LE: loop exit
PB: predicated region body
PF: predicated region fallthrough
CT: control target
= control target key end

     0   :  { %s1283_s15 = smov 0   ;;  %s1285_s16 = smov 0   ;;  %s1453_s0 = inlined_call_operand.vmem [shape: bf16[2,4,8,8], index: 0, kind: input, shape index: {}]   ;;  %s1454_s1 = inlined_call_operand.vmem [shape: bf16[2,4,8,8], index: 1, kind: input, shape index: {}]   ;;  %s1455_s2 = inlined_call_operand.vmem [shape: bf16[2,4,8,8], index: 2, kind: input, shape index: {}]   ;;  %s1456_s3 = inlined_call_operand.vmem [shape: f32[2,1,8], index: 3, kind: input, shape index: {}]   ;;  %s1457_s4 = inlined_call_operand.vmem [shape: bf16[2,8,32], index: 4, kind: output, shape index: {}]  }
   0x1   :  { %s1287_s17 = smov 0  }
   0x2 LB: > { %s33_s18 = sadd.s32 1, %s1245_s16  ;;  %p1084_p0 = scmp.ge.s32.totalorder %s1249_s17, 1  ;;  %s1249_s17 = sphi %s1287_s17, %s14_s17   ;;  %s1245_s16 = sphi %s1285_s16, %s1459_s16   ;;  %s1241_s15 = sphi %s1283_s15, %s1458_s15  }
   0x3   : > { %p35_p1 = scmp.ge.s32.totalorder %s33_s18, 2  ;;  %p231_p2 = scmp.lt.s32.totalorder %s1249_s17, 3 }
   0x5   : > { %s1461_s18 = smov (%p35_p1, %s33_s18), 0  ;;  %p232_p3 = pnand %p1084_p0, %p231_p2 }
   0x6   : > { %p284_p4 = scmp.lt.s32.totalorder (!%p232_p3), %s1241_s15, 1  ;;  %vm337_vm0 = vcmask (!%p232_p3), 64512   ;;  %v1251_v0 = vmov (!%p232_p3), 0.0   ;;  %vm1252_vm1 = vmmov (!%p232_p3), 0   ;;  %vm328_vm2 = vcmask (!%p232_p3), 7168   ;;  %s1255_s6 = smov (!%p232_p3), 8  }
   0x7   : > { %235 = sbr.rel (%p232_p3) target bundleno = 955 (0x3bb), region = 36  ;;  %1122 = vmatprep.subr.bf16.mxu0 (!%p232_p3), %v1251_v0  ;;  %338 = vst.msk [vmem:[#allocation4] sm:$0xff] (!%p232_p3), %vm337_vm0, %v1251_v0  ;;  %339 = vst.msk [vmem:[#allocation4 + $0x8] sm:$0xff] (!%p232_p3), %vm337_vm0, %v1251_v0  ;;  %1128 = vmatprep.subr.bf16.mxu1 (!%p232_p3), %v1251_v0  ;;  %v1253_v13 = vmov (!%p232_p3), -1e+30   ;;  %v549_v14 = vlaneseq (!%p232_p3)  ;;  %v1254_v48 = vmov (!%p232_p3), 0  }
   0x8   : > { %340 = vst.msk [vmem:[#allocation4 + $0x10] sm:$0xff] (!%p232_p3), %vm337_vm0, %v1251_v0  ;;  %341 = vst.msk [vmem:[#allocation4 + $0x18] sm:$0xff] (!%p232_p3), %vm337_vm0, %v1251_v0  ;;  %1124 = vmatprep.mubr.msk.bf16.mxu0 (!%p232_p3), %vm1252_vm1, %v1251_v0  ;;  %1130 = vmatprep.mubr.msk.bf16.mxu1 (!%p232_p3), %vm1252_vm1, %v1251_v0  ;;  %vm698_vm4 = vcmask (!%p232_p3), 1043456   ;;  %s1256_s7 = smov (!%p232_p3), 16   ;;  %s1257_s8 = smov (!%p232_p3), 24   ;;  %vm945_vm5 = vcmask (!%p232_p3), 130048  }
   0x9   : > { %329 = vst.msk [vmem:[#allocation2] sm:$0xff] (!%p232_p3), %vm328_vm2, %v1253_v13  ;;  %330 = vst.msk [vmem:[#allocation2 + $0x8] sm:$0xff] (!%p232_p3), %vm328_vm2, %v1253_v13  ;;  %v550_v15 = vshrl.u32 (!%p232_p3), %v549_v14, 7  ;;  %v554_v16 = vand.u32 (!%p232_p3), 127, %v549_v14  ;;  %1201 = vset.pattern.permute.xlu0 (!%p232_p3), %v1254_v48  ;;  %1202 = vset.pattern.permute.xlu1 (!%p232_p3), %v1254_v48  ;;  %vm947_vm6 = vcmask (!%p232_p3), 195584   ;;  %vm950_vm7 = vcmask (!%p232_p3), 257024  }
   0xa   : > { %331 = vst.msk [vmem:[#allocation2 + $0x10] sm:$0xff] (!%p232_p3), %vm328_vm2, %v1253_v13  ;;  %332 = vst.msk [vmem:[#allocation2 + $0x18] sm:$0xff] (!%p232_p3), %vm328_vm2, %v1253_v13 }
   0xb   : > { %333 = vst.msk [vmem:[#allocation3] sm:$0xff] (!%p232_p3), %vm328_vm2, %v1251_v0  ;;  %334 = vst.msk [vmem:[#allocation3 + $0x8] sm:$0xff] (!%p232_p3), %vm328_vm2, %v1251_v0  ;;  %vm557_vm3 = vcmp.gt.s32.totalorder (!%p232_p3), %v554_v16, %v550_v15 }
   0xc   : > { %335 = vst.msk [vmem:[#allocation3 + $0x10] sm:$0xff] (!%p232_p3), %vm328_vm2, %v1251_v0  ;;  %336 = vst.msk [vmem:[#allocation3 + $0x18] sm:$0xff] (!%p232_p3), %vm328_vm2, %v1251_v0  ;;  %v558_v18 = vsel (!%p232_p3), %vm557_vm3, -1e+09, %v1251_v0 }
   0xe   : > { %s1463_s15 = smov (!%p284_p4, %s1241_s15), 1 }
   0xf   : > { %s1318_s19 = sshll.u32 %s1463_s15, 4  ;;  %s313_s28 = scalar_lea.vmem %s1456_s3, %s1463_s15 }
  0x10   : > { %s299_s22 = scalar_lea.vmem %s1454_s1, %s1318_s19  ;;  %s291_s25 = scalar_lea.vmem %s1453_s0, %s1318_s19  ;;  %v1096_v17 = vld [vmem:[%s313_s28] ss:$0 sm:$0xff]  ;;  %v1380_v52 = vld [vmem:[#allocation2 + $0x8] sm:$0xff] }
  0x11   : > { %v351_v1 = vld [vmem:[%s299_s22] sm:$0xf]  ;;  %v352_v2 = vld [vmem:[%s299_s22 + $0x4] sm:$0xf]  ;;  %v353_v5 = vld [vmem:[%s299_s22 + $0x8] sm:$0xf]  ;;  %v565_v19 = vadd.f32 %v1096_v17, %v558_v18  ;;  %s307_s5 = scalar_lea.vmem %s1455_s2, %s1318_s19 }
  0x12   : > { %v364_v3 = vsel %vm337_vm0, %v351_v1, 0  ;;  %v410_v4 = vsel %vm337_vm0, %v352_v2, 0  ;;  %v354_v6 = vld [vmem:[%s299_s22 + $0xc] sm:$0xf]  ;;  %v347_v7 = vld [vmem:[%s291_s25] sm:$0xf] }
  0x13   : > { %1123 = vmatpush3.bf16.xpose.msra.mxu0 %v364_v3  ;;  %1129 = vmatpush3.bf16.xpose.msra.mxu1 %v410_v4  ;;  %v348_v8 = vld [vmem:[%s291_s25 + $0x4] sm:$0xf]  ;;  %v456_v9 = vsel %vm337_vm0, %v353_v5, 0  ;;  %v502_v10 = vsel %vm337_vm0, %v354_v6, 0  ;;  %v349_v11 = vld [vmem:[%s291_s25 + $0x8] sm:$0xf] }
  0x14   : > { %1134 = vmatprep.subr.bf16.mxu0 %v1251_v0  ;;  %1140 = vmatprep.subr.bf16.mxu1 %v1251_v0  ;;  %v350_v12 = vld [vmem:[%s291_s25 + $0xc] sm:$0xf]  ;;  %v1375_v49 = vld [vmem:[#allocation2] sm:$0xff]  ;;  %v1390_v56 = vld [vmem:[#allocation2 + $0x10] sm:$0xff]  ;;  %s1091_s9 = sshll.u32 %s1463_s15, 2 }
  0x15   : > { %v1398_v60 = vld [vmem:[#allocation2 + $0x18] sm:$0xff]  ;;  %v355_v2 = vld [vmem:[%s307_s5] sm:$0xf]  ;;  %v356_v4 = vld [vmem:[%s307_s5 + $0x4] sm:$0xf]  ;;  %s320_s12 = scalar_lea.vmem %s1457_s4, %s1091_s9 }
  0x16   : > { %v700_v3 = vsel %vm698_vm4, %v355_v2, 0  ;;  %v746_v5 = vsel %vm698_vm4, %v356_v4, 0  ;;  %v357_v6 = vld [vmem:[%s307_s5 + $0x8] sm:$0xf] }
  0x17   : > { %v664_v2 = vld [vmem:[#allocation4 + $0x8] sm:$0xff] }
  0x1a   : > { %1125 = vmatmul.mubr.msk.bf16.vlgmr.msra.gmra.mrb[0].mxu0 %vm337_vm0, %v347_v7  ;;  %1131 = vmatmul.mubr.msk.bf16.vlgmr.msra.gmra.mrb[0].mxu1 %vm337_vm0, %v348_v8  ;;  %v792_v7 = vsel %vm698_vm4, %v357_v6, 0  ;;  %v358_v8 = vld [vmem:[%s307_s5 + $0xc] sm:$0xf] }
  0x1b   : > { %1135 = vmatpush3.bf16.xpose.msra.mxu0 %v456_v9  ;;  %1141 = vmatpush3.bf16.xpose.msra.mxu1 %v502_v10  ;;  %v838_v9 = vsel %vm698_vm4, %v358_v8, 0 }
  0x1c   : > { %1136 = vmatprep.mubr.msk.bf16.mxu0 %vm1252_vm1, %v1251_v0  ;;  %1142 = vmatprep.mubr.msk.bf16.mxu1 %vm1252_vm1, %v1251_v0 }
  0x1d   : > { %1146 = vmatprep.subr.bf16.mxu0 %v1251_v0  ;;  %1152 = vmatprep.subr.bf16.mxu1 %v1251_v0 }
  0x22   : > { %1137 = vmatmul.mubr.msk.bf16.vlgmr.msra.gmra.mrb[4].mxu0 %vm337_vm0, %v349_v11  ;;  %1143 = vmatmul.mubr.msk.bf16.vlgmr.msra.gmra.mrb[4].mxu1 %vm337_vm0, %v350_v12 }
  0x23   : > { %1148 = vmatprep.mubr.msk.bf16.mxu0 %vm1252_vm1, %v1251_v0  ;;  %1154 = vmatprep.mubr.msk.bf16.mxu1 %vm1252_vm1, %v1251_v0 }
  0x24   : > { %1147 = vmatpush3.bf16.msra.mxu0 %v700_v3  ;;  %1153 = vmatpush3.bf16.msra.mxu1 %v746_v5 }
  0x25   : > { %1158 = vmatprep.subr.bf16.mxu0 %v1251_v0  ;;  %1164 = vmatprep.subr.bf16.mxu1 %v1251_v0 }
  0xed   : > { %v400_v20 = vpop.f32.mrb[0].mxu0  ;;  %v446_v21 = vpop.f32.mrb[0].mxu1 }
  0xee   : > { %v544_v22 = vmul.f32 0.35355338, %v400_v20  ;;  %v1126_v23 = vpop.f32.mrb[1].mxu0  ;;  %v545_v24 = vmul.f32 0.35355338, %v446_v21  ;;  %v1132_v25 = vpop.f32.mrb[1].mxu1 }
  0xef   : > { %v403_v26 = vpop.f32.mrb[2].mxu0  ;;  %v449_v27 = vpop.f32.mrb[2].mxu1 }
  0xf0   : > { %v1127_v28 = vpop.f32.mrb[3].mxu0  ;;  %v1133_v29 = vpop.f32.mrb[3].mxu1  ;;  %v1365_v30 = vadd.f32 %v565_v19, %v544_v22  ;;  %v1367_v31 = vadd.f32 %v565_v19, %v545_v24 }
  0xf2   : > { %v574_v32 = vsel %vm337_vm0, %v1365_v30, -inf  ;;  %v577_v33 = vsel %vm337_vm0, %v1367_v31, -inf }
  0xf3   : > { %575 = vmax.xlane.f32.xlu0 %v574_v32 }
  0xf5   : > { %v492_v34 = vpop.f32.mrb[4].mxu0  ;;  %v538_v35 = vpop.f32.mrb[4].mxu1 }
  0xf6   : > { %v546_v36 = vmul.f32 0.35355338, %v492_v34  ;;  %v1138_v37 = vpop.f32.mrb[5].mxu0  ;;  %v547_v38 = vmul.f32 0.35355338, %v538_v35  ;;  %v1144_v39 = vpop.f32.mrb[5].mxu1 }
  0xf7   : > { %578 = vmax.xlane.f32.xlu0 %v577_v33  ;;  %v495_v40 = vpop.f32.mrb[6].mxu0  ;;  %v541_v41 = vpop.f32.mrb[6].mxu1 }
  0xf8   : > { %v1139_v42 = vpop.f32.mrb[7].mxu0  ;;  %v1145_v43 = vpop.f32.mrb[7].mxu1  ;;  %v568_v44 = vadd.f32 %v565_v19, %v546_v36  ;;  %v569_v45 = vadd.f32 %v565_v19, %v547_v38  ;;  %v635_v40 = vld [vmem:[#allocation3 + $0x8] sm:$0xff] }
  0xf9   : > { %v636_v43 = vld [vmem:[#allocation3 + $0x10] sm:$0xff] }
  0xfa   : > { %v580_v46 = vsel %vm337_vm0, %v568_v44, -inf  ;;  %v583_v47 = vsel %vm337_vm0, %v569_v45, -inf }
  0xfb   : > { %581 = vmax.xlane.f32.xlu1 %v580_v46 }
  0xff   : > { %584 = vmax.xlane.f32.xlu1 %v583_v47  ;;  %v637_v47 = vld [vmem:[#allocation3 + $0x18] sm:$0xff] }
 0x180   : > { %v576_v50 = vpop.xlane.xlu0 %575 }
 0x181   : > { %v1378_v51 = vmax.f32 %v1375_v49, %v576_v50 }
 0x183   : > { %v590_v53 = vsub.f32 %v1375_v49, %v1378_v51  ;;  %888 = vst.msk [vmem:[#allocation2] sm:$0xff] %vm328_vm2, %v1378_v51  ;;  %604 = vperm.xlu0 %1201, %v1378_v51  }
 0x184   : > { %v579_v54 = vpop.xlane.xlu0 %578 }
 0x185   : > { %v1388_v55 = vmax.f32 %v1380_v52, %v579_v54  ;;  %v594_v39 = vmul.f32 1.442695, %v590_v53 }
 0x187   : > { %v591_v57 = vsub.f32 %v1380_v52, %v1388_v55  ;;  %889 = vst.msk [vmem:[#allocation2 + $0x8] sm:$0xff] %vm328_vm2, %v1388_v55  ;;  %609 = vperm.xlu1 %1202, %v1388_v55   ;;  %v634_v55 = vld [vmem:[#allocation3] sm:$0xff] }
 0x188   : > { %v582_v58 = vpop.xlane.xlu1 %581 }
 0x189   : > { %v588_v59 = vmax.f32 %v1390_v56, %v582_v58 }
 0x18b   : > { %v592_v61 = vsub.f32 %v1390_v56, %v588_v59  ;;  %890 = vst.msk [vmem:[#allocation2 + $0x10] sm:$0xff] %vm328_vm2, %v588_v59  ;;  %614 = vperm.xlu1 %1202, %v588_v59  }
 0x18c   : > { %v585_v62 = vpop.xlane.xlu1 %584 }
 0x18d   : > { %v589_v63 = vmax.f32 %v1398_v60, %v585_v62  ;;  %v598_v33 = vmul.f32 1.442695, %v592_v61 }
 0x18f   : > { %v593_v1 = vsub.f32 %v1398_v60, %v589_v63  ;;  %891 = vst.msk [vmem:[#allocation2 + $0x18] sm:$0xff] %vm328_vm2, %v589_v63  ;;  %619 = vperm.xlu1 %1202, %v589_v63  }
 0x191   : > { %v600_v35 = vmul.f32 1.442695, %v593_v1 }
 0x202   : > { %v605_v10 = vpop.permute.xlu0 %604 }
 0x203   : > { %v622_v11 = vsub.f32 %v1365_v30, %v605_v10 }
 0x205   : > { %v626_v12 = vmul.f32 1.442695, %v622_v11 }
 0x206   : > { %v610_v13 = vpop.permute.xlu1 %609 }
 0x207   : > { %1203 = vpow2.f32 %v626_v12  ;;  %v623_v14 = vsub.f32 %v1367_v31, %v610_v13 }
 0x209   : > { %v628_v15 = vmul.f32 1.442695, %v623_v14 }
 0x20a   : > { %v615_v16 = vpop.permute.xlu1 %614 }
 0x20b   : > { %1205 = vpow2.f32 %v628_v15  ;;  %v624_v17 = vsub.f32 %v568_v44, %v615_v16 }
 0x20d   : > { %v630_v18 = vmul.f32 1.442695, %v624_v17  ;;  %v666_v17 = vld [vmem:[#allocation4 + $0x18] sm:$0xff] }
 0x20e   : > { %v620_v19 = vpop.permute.xlu1 %619 }
 0x20f   : > { %1207 = vpow2.f32 %v630_v18  ;;  %v625_v20 = vsub.f32 %v569_v45, %v620_v19 }
 0x211   : > { %v1204_v21 = vpop.eup %1203  ;;  %v632_v22 = vmul.f32 1.442695, %v625_v20 }
 0x212   : > { %v691_v23 = vpack.c.bf16 %v1204_v21, %v1204_v21  ;;  %v642_v34 = vsel %vm337_vm0, %v1204_v21, 0.0 }
 0x213   : > { %1209 = vpow2.f32 %v632_v22 }
 0x214   : > { %1149 = vmatmul.mubr.msk.bf16.vlgmr.msra.gmra.mrb[8].mxu0 %vm337_vm0, %v691_v23  ;;  %1211 = vpow2.f32 %v598_v33 }
 0x215   : > { %v1206_v24 = vpop.eup %1205  ;;  %1159 = vmatpush3.bf16.msra.mxu0 %v792_v7  ;;  %1160 = vmatprep.mubr.msk.bf16.mxu0 %vm1252_vm1, %v1251_v0 }
 0x216   : > { %v645_v25 = vsel %vm337_vm0, %v1206_v24, 0.0  ;;  %v692_v26 = vpack.c.bf16 %v1206_v24, %v1206_v24 }
 0x217   : > { %646 = vadd.xlane.f32.xlu1 %v645_v25 }
 0x218   : > { %1155 = vmatmul.mubr.msk.bf16.vlgmr.msra.gmra.mrb[8].mxu1 %vm337_vm0, %v692_v26 }
 0x219   : > { %v1208_v27 = vpop.eup %1207  ;;  %1165 = vmatpush3.bf16.msra.mxu1 %v838_v9  ;;  %1166 = vmatprep.mubr.msk.bf16.mxu1 %vm1252_vm1, %v1251_v0  ;;  %v596_v0 = vmul.f32 1.442695, %v591_v57  ;;  %v665_v9 = vld [vmem:[#allocation4 + $0x10] sm:$0xff] }
 0x21a   : > { %v648_v28 = vsel %vm337_vm0, %v1208_v27, 0.0  ;;  %v693_v29 = vpack.c.bf16 %v1208_v27, %v1208_v27 }
 0x21b   : > { %649 = vadd.xlane.f32.xlu0 %v648_v28  ;;  %1213 = vpow2.f32 %v596_v0 }
 0x21c   : > { %1161 = vmatmul.mubr.msk.bf16.vlgmr.msra.gmra.mrb[12].mxu0 %vm337_vm0, %v693_v29  ;;  %1215 = vpow2.f32 %v600_v35  ;;  %v663_v35 = vld [vmem:[#allocation4] sm:$0xff] }
 0x21d   : > { %v1210_v30 = vpop.eup %1209  ;;  %1217 = vpow2.f32 %v594_v39 }
 0x21e   : > { %v651_v31 = vsel %vm337_vm0, %v1210_v30, 0.0  ;;  %v694_v32 = vpack.c.bf16 %v1210_v30, %v1210_v30  ;;  %v1212_v36 = vpop.eup %1211 }
 0x21f   : > { %652 = vadd.xlane.f32.xlu1 %v651_v31  ;;  %v640_v45 = vmul.f32 %v1212_v36, %v636_v43 }
 0x220   : > { %1167 = vmatmul.mubr.msk.bf16.vlgmr.msra.gmra.mrb[12].mxu1 %vm337_vm0, %v694_v32 }
 0x223   : > { %643 = vadd.xlane.f32.xlu1 %v642_v34 }
 0x225   : > { %v1214_v37 = vpop.eup %1213 }
 0x226   : > { %v1216_v38 = vpop.eup %1215  ;;  %v639_v41 = vmul.f32 %v1214_v37, %v635_v40 }
 0x227   : > { %v641_v50 = vmul.f32 %v1216_v38, %v637_v47  ;;  %v1218_v52 = vpop.eup %1217 }
 0x228   : > { %v638_v53 = vmul.f32 %v1218_v52, %v634_v55 }
 0x231   : > { %679 = vperm.xlu0 %1201, %v1212_v36  }
 0x234   : > { %674 = vperm.xlu1 %1202, %v1214_v37  }
 0x238   : > { %684 = vperm.xlu1 %1202, %v1216_v38  }
 0x2a4   : > { %v647_v42 = vpop.xlane.xlu1 %646 }
 0x2a5   : > { %v655_v44 = vadd.f32 %v647_v42, %v639_v41 }
 0x2a7   : > { %660 = vst.msk [vmem:[#allocation3 + $0x8] sm:$0xff] %vm328_vm2, %v655_v44 }
 0x2a8   : > { %v650_v46 = vpop.xlane.xlu0 %649 }
 0x2a9   : > { %v656_v48 = vadd.f32 %v650_v46, %v640_v45 }
 0x2ab   : > { %661 = vst.msk [vmem:[#allocation3 + $0x10] sm:$0xff] %vm328_vm2, %v656_v48 }
 0x2ac   : > { %v653_v54 = vpop.xlane.xlu1 %652 }
 0x2ad   : > { %v657_v49 = vadd.f32 %v653_v54, %v641_v50 }
 0x2ae   : > { %v896_v51 = vld [vmem:[#allocation3 + $0x8] sm:$0xff] }
 0x2af   : > { %662 = vst.msk [vmem:[#allocation3 + $0x18] sm:$0xff] %vm328_vm2, %v657_v49  ;;  %1219 = vrcp.f32 %v896_v51 }
 0x2b0   : > { %v644_v56 = vpop.xlane.xlu1 %643  ;;  %v680_v10 = vpop.permute.xlu0 %679 }
 0x2b1   : > { %v654_v57 = vadd.f32 %v644_v56, %v638_v53  ;;  %v689_v15 = vmul.f32 %v680_v10, %v665_v9 }
 0x2b2   : > { %v897_v58 = vld [vmem:[#allocation3 + $0x10] sm:$0xff] }
 0x2b3   : > { %659 = vst.msk [vmem:[#allocation3] sm:$0xff] %vm328_vm2, %v654_v57  ;;  %1221 = vrcp.f32 %v897_v58 }
 0x2b4   : > { %v675_v3 = vpop.permute.xlu1 %674 }
 0x2b5   : > { %v688_v7 = vmul.f32 %v675_v3, %v664_v2 }
 0x2b6   : > { %v898_v59 = vld [vmem:[#allocation3 + $0x18] sm:$0xff] }
 0x2b7   : > { %1223 = vrcp.f32 %v898_v59 }
 0x2b8   : > { %v685_v18 = vpop.permute.xlu1 %684 }
 0x2b9   : > { %v1220_v60 = vpop.eup %1219  ;;  %v690_v23 = vmul.f32 %v685_v18, %v666_v17 }
 0x2ba   : > { %914 = vperm.xlu1 %1202, %v1220_v60   ;;  %v895_v61 = vld [vmem:[#allocation3] sm:$0xff] }
 0x2bb   : > { %1225 = vrcp.f32 %v895_v61 }
 0x2bd   : > { %v1222_v62 = vpop.eup %1221 }
 0x2be   : > { %919 = vperm.xlu1 %1202, %v1222_v62  }
 0x2c1   : > { %v1224_v63 = vpop.eup %1223 }
 0x2c2   : > { %669 = vperm.xlu1 %1202, %v1218_v52   ;;  %924 = vperm.xlu0 %1201, %v1224_v63  }
 0x2c5   : > { %v1226_v1 = vpop.eup %1225 }
 0x2c6   : > { %909 = vperm.xlu0 %1201, %v1226_v1  }
 0x2e7   : > { %v736_v4 = vpop.f32.mrb[8].mxu0 }
 0x2e8   : > { %v1150_v5 = vpop.f32.mrb[9].mxu0 }
 0x2e9   : > { %v739_v6 = vpop.f32.mrb[10].mxu0 }
 0x2ea   : > { %v1151_v8 = vpop.f32.mrb[11].mxu0 }
 0x2eb   : > { %v782_v11 = vpop.f32.mrb[8].mxu1 }
 0x2ec   : > { %v881_v12 = vadd.f32 %v782_v11, %v688_v7  ;;  %v1156_v13 = vpop.f32.mrb[9].mxu1 }
 0x2ed   : > { %v785_v14 = vpop.f32.mrb[10].mxu1 }
 0x2ee   : > { %885 = vst.msk [vmem:[#allocation4 + $0x8] sm:$0xff] %vm337_vm0, %v881_v12  ;;  %v1157_v16 = vpop.f32.mrb[11].mxu1 }
 0x2ef   : > { %v828_v19 = vpop.f32.mrb[12].mxu0 }
 0x2f0   : > { %v882_v20 = vadd.f32 %v828_v19, %v689_v15  ;;  %v1162_v21 = vpop.f32.mrb[13].mxu0 }
 0x2f1   : > { %v831_v22 = vpop.f32.mrb[14].mxu0 }
 0x2f2   : > { %886 = vst.msk [vmem:[#allocation4 + $0x10] sm:$0xff] %vm337_vm0, %v882_v20  ;;  %v1163_v24 = vpop.f32.mrb[15].mxu0 }
 0x2f3   : > { %v874_v25 = vpop.f32.mrb[12].mxu1 }
 0x2f4   : > { %v883_v26 = vadd.f32 %v874_v25, %v690_v23  ;;  %v1168_v27 = vpop.f32.mrb[13].mxu1 }
 0x2f5   : > { %v877_v28 = vpop.f32.mrb[14].mxu1  ;;  %v904_v30 = vld [vmem:[#allocation4 + $0x8] sm:$0xff] }
 0x2f6   : > { %887 = vst.msk [vmem:[#allocation4 + $0x18] sm:$0xff] %vm337_vm0, %v883_v26  ;;  %v1169_v29 = vpop.f32.mrb[15].mxu1 }
 0x2f9   : > { %v905_v34 = vld [vmem:[#allocation4 + $0x10] sm:$0xff] }
 0x2fd   : > { %v906_v37 = vld [vmem:[#allocation4 + $0x18] sm:$0xff] }
 0x339   : > { %v915_v31 = vpop.permute.xlu1 %914 }
 0x33a   : > { %v928_v32 = vmul.f32 %v915_v31, %v904_v30 }
 0x33c   : > { %932 = vrot.lane.b32.xlu1 %v928_v32, %s1255_s6 }
 0x33d   : > { %v920_v33 = vpop.permute.xlu1 %919 }
 0x33e   : > { %v929_v0 = vmul.f32 %v920_v33, %v905_v34 }
 0x340   : > { %936 = vrot.lane.b32.xlu0 %v929_v0, %s1256_s7 }
 0x341   : > { %v925_v36 = vpop.permute.xlu0 %924  ;;  %v670_v38 = vpop.permute.xlu1 %669 }
 0x342   : > { %v930_v39 = vmul.f32 %v925_v36, %v906_v37  ;;  %v687_v40 = vmul.f32 %v670_v38, %v663_v35 }
 0x344   : > { %v880_v41 = vadd.f32 %v736_v4, %v687_v40  ;;  %940 = vrot.lane.b32.xlu1 %v930_v39, %s1257_s8 }
 0x345   : > { %v910_v42 = vpop.permute.xlu0 %909 }
 0x346   : > { %884 = vst.msk [vmem:[#allocation4] sm:$0xff] %vm337_vm0, %v880_v41 }
 0x34d   : > { %v903_v43 = vld [vmem:[#allocation4] sm:$0xff] }
 0x34e   : > { %v927_v45 = vmul.f32 %v910_v42, %v903_v43 }
 0x3ae   : > { %v933_v44 = vpop.permute.xlu1 %932 }
 0x3af   : > { %v944_v47 = vsel %vm337_vm0, %v927_v45, %v933_v44 }
 0x3b2   : > { %v937_v46 = vpop.permute.xlu0 %936 }
 0x3b3   : > { %v946_v48 = vsel %vm945_vm5, %v944_v47, %v937_v46 }
 0x3b6   : > { %v941_v50 = vpop.permute.xlu1 %940 }
 0x3b7   : > { %v948_v52 = vsel %vm947_vm6, %v946_v48, %v941_v50 }
 0x3b8   : > { %v949_v54 = vpack.c.bf16 %v948_v52, %v948_v52 }
 0x3ba   : > { %951 = vst.msk [vmem:[%s320_s12] sm:$0xf] %vm950_vm7, %v949_v54 }
 0x3bb PF: > { %s14_s17 = sadd.s32 1, %s1249_s17   ;;  %s1458_s15 = smov %s1245_s16 }
 0x3bc   : > { %p11_p5 = scmp.ge.s32.totalorder %s14_s17, 4   ;;  %s1459_s16 = smov %s1461_s18 }
 0x3be   :  { %13 = sbr.rel (!%p11_p5) target bundleno = 2 (0x2), region = 87 }

// kernel: bart_decoder_forward.35
= control target key start
LH: loop header
LB: loop body
LE: loop exit
PB: predicated region body
PF: predicated region fallthrough
CT: control target
= control target key end

     0   :  { %vm19_vm0 = vcmask 523264   ;;  %v198_v1 = vmov 0.0   ;;  %vm58_vm1 = vcmask 261120   ;;  %vm157_vm2 = vcmask 519168   ;;  %s254_s1 = inlined_call_operand.vmem [shape: bf16[32,64], index: 1, kind: input, shape index: {}]   ;;  %s255_s0 = inlined_call_operand.vmem [shape: bf16[32,32], index: 0, kind: input, shape index: {}]   ;;  %s256_s2 = inlined_call_operand.vmem [shape: f32[1,64], index: 2, kind: input, shape index: {}]   ;;  %s257_s3 = inlined_call_operand.vmem [shape: bf16[32,64], index: 3, kind: output, shape index: {}]  }
   0x1   :  { %v194_v0 = vld [vmem:[%s254_s1] sm:$0xff]   ;;  %22 = vst.msk [vmem:[#allocation2 + $0x10] sm:$0xff] %vm19_vm0, %v198_v1  ;;  %20 = vst.msk [vmem:[#allocation2] sm:$0xff] %vm19_vm0, %v198_v1  ;;  %v195_v2 = vld [vmem:[%s254_s1 + $0x8] sm:$0xff]  }
   0x2   :  { %21 = vst.msk [vmem:[#allocation2 + $0x8] sm:$0xff] %vm19_vm0, %v198_v1  ;;  %23 = vst.msk [vmem:[#allocation2 + $0x18] sm:$0xff] %vm19_vm0, %v198_v1  ;;  %185 = vmatprep.subr.bf16.mxu0 %v194_v0  ;;  %v196_v3 = vld [vmem:[%s255_s0] sm:$0xff]   ;;  %v197_v4 = vld [vmem:[%s255_s0 + $0x8] sm:$0xff]  }
   0x3   :  { %186 = vmatpush3.bf16.msra.mxu0 %v194_v0  ;;  %189 = vmatprep.mubr.msk.bf16.mxu0 %vm58_vm1, %v196_v3  ;;  %v172_v17 = vld [vmem:[%s256_s2] ss:$0 sm:$0xff] }
   0x4   :  { %187 = vmatprep.subr.bf16.mxu0 %v195_v2 }
   0x7   :  { %188 = vmatpush3.bf16.msra.mxu0 %v195_v2 }
   0x8   :  { %v26_v5 = vld [vmem:[#allocation2 + $0x10] sm:$0xff]  ;;  %v24_v6 = vld [vmem:[#allocation2] sm:$0xff] }
   0x9   :  { %v27_v8 = vld [vmem:[#allocation2 + $0x18] sm:$0xff]  ;;  %v25_v11 = vld [vmem:[#allocation2 + $0x8] sm:$0xff] }
   0xa   :  { %190 = vmatmul.mubr.msk.bf16.vlgmr.msra.gmra.mrb[0].mxu0 %vm58_vm1, %v197_v4 }
  0xdd   :  { %v191_v7 = vpop.f32.mrb[0].mxu0 }
  0xde   :  { %v116_v9 = vadd.f32 %v191_v7, %v26_v5  ;;  %v99_v10 = vpop.f32.mrb[1].mxu0 }
  0xdf   :  { %v114_v12 = vadd.f32 %v99_v10, %v24_v6  ;;  %v192_v13 = vpop.f32.mrb[2].mxu0 }
  0xe0   :  { %121 = vst.msk [vmem:[#allocation2 + $0x10] sm:$0xff] %vm19_vm0, %v116_v9  ;;  %v117_v14 = vadd.f32 %v192_v13, %v27_v8  ;;  %v102_v15 = vpop.f32.mrb[3].mxu0 }
  0xe1   :  { %119 = vst.msk [vmem:[#allocation2] sm:$0xff] %vm19_vm0, %v114_v12  ;;  %v115_v16 = vadd.f32 %v102_v15, %v25_v11 }
  0xe2   :  { %122 = vst.msk [vmem:[#allocation2 + $0x18] sm:$0xff] %vm19_vm0, %v117_v14 }
  0xe3   :  { %120 = vst.msk [vmem:[#allocation2 + $0x8] sm:$0xff] %vm19_vm0, %v115_v16 }
  0xe7   :  { %v128_v18 = vld [vmem:[#allocation2 + $0x10] sm:$0xff] }
  0xe8   :  { %v139_v19 = vadd.f32 %v172_v17, %v128_v18  ;;  %v126_v20 = vld [vmem:[#allocation2] sm:$0xff] }
  0xe9   :  { %v137_v21 = vadd.f32 %v172_v17, %v126_v20  ;;  %v129_v22 = vld [vmem:[#allocation2 + $0x18] sm:$0xff] }
  0xea   :  { %v179_v23 = vpack.c.bf16 %v139_v19, %v139_v19  ;;  %v140_v24 = vadd.f32 %v172_v17, %v129_v22  ;;  %v127_v25 = vld [vmem:[#allocation2 + $0x8] sm:$0xff] }
  0xeb   :  { %v177_v26 = vpack.c.bf16 %v137_v21, %v137_v21  ;;  %v138_v27 = vadd.f32 %v172_v17, %v127_v25 }
  0xec   :  { %160 = vst.msk [vmem:[%s257_s3 + $0x8] sm:$0xf] %vm157_vm2, %v179_v23  ;;  %v180_v28 = vpack.c.bf16 %v140_v24, %v140_v24 }
  0xed   :  { %158 = vst.msk [vmem:[%s257_s3] sm:$0xf] %vm157_vm2, %v177_v26  ;;  %v178_v29 = vpack.c.bf16 %v138_v27, %v138_v27 }
  0xee   :  { %161 = vst.msk [vmem:[%s257_s3 + $0xc] sm:$0xf] %vm157_vm2, %v180_v28 }
  0xef   :  { %159 = vst.msk [vmem:[%s257_s3 + $0x4] sm:$0xf] %vm157_vm2, %v178_v29 }

// kernel: bart_decoder_forward.34
= control target key start
LH: loop header
LB: loop body
LE: loop exit
PB: predicated region body
PF: predicated region fallthrough
CT: control target
= control target key end

     0   :  { %vm19_vm0 = vcmask 261120   ;;  %v150_v0 = vmov 0.0   ;;  %vm151_vm1 = vmmov 0   ;;  %vm118_vm2 = vcmask 257024   ;;  %s195_s1 = inlined_call_operand.vmem [shape: bf16[32,32], index: 1, kind: input, shape index: {}]   ;;  %s196_s0 = inlined_call_operand.vmem [shape: bf16[16,32], index: 0, kind: input, shape index: {}]   ;;  %s197_s2 = inlined_call_operand.vmem [shape: f32[1,32], index: 2, kind: input, shape index: {}]   ;;  %s198_s3 = inlined_call_operand.vmem [shape: bf16[16,32], index: 3, kind: output, shape index: {}]  }
   0x1   :  { %137 = vmatprep.subr.bf16.mxu0 %v150_v0  ;;  %v147_v1 = vld [vmem:[%s195_s1] sm:$0xff]   ;;  %141 = vmatprep.mubr.msk.bf16.mxu0 %vm151_vm1, %v150_v0  ;;  %20 = vst.msk [vmem:[#allocation2] sm:$0xff] %vm19_vm0, %v150_v0  ;;  %21 = vst.msk [vmem:[#allocation2 + $0x8] sm:$0xff] %vm19_vm0, %v150_v0  ;;  %v148_v2 = vld [vmem:[%s195_s1 + $0x8] sm:$0xff]  }
   0x2   :  { %138 = vmatpush3.bf16.msra.mxu0 %v147_v1  ;;  %v149_v3 = vld [vmem:[%s196_s0] sm:$0xff]  }
   0x3   :  { %139 = vmatprep.subr.bf16.mxu0 %v150_v0  ;;  %v129_v12 = vld [vmem:[%s197_s2] ss:$0 sm:$0xff] }
   0x6   :  { %140 = vmatpush3.bf16.msra.mxu0 %v148_v2 }
   0x8   :  { %v22_v4 = vld [vmem:[#allocation2] sm:$0xff]  ;;  %v23_v6 = vld [vmem:[#allocation2 + $0x8] sm:$0xff] }
   0x9   :  { %142 = vmatmul.mubr.msk.bf16.vlgmr.msra.gmra.mrb[0].mxu0 %vm19_vm0, %v149_v3 }
  0xdc   :  { %v85_v5 = vpop.f32.mrb[0].mxu0 }
  0xdd   :  { %v92_v7 = vadd.f32 %v85_v5, %v22_v4  ;;  %v143_v8 = vpop.f32.mrb[1].mxu0 }
  0xde   :  { %v88_v9 = vpop.f32.mrb[2].mxu0 }
  0xdf   :  { %94 = vst.msk [vmem:[#allocation2] sm:$0xff] %vm19_vm0, %v92_v7  ;;  %v93_v10 = vadd.f32 %v88_v9, %v23_v6  ;;  %v144_v11 = vpop.f32.mrb[3].mxu0 }
  0xe1   :  { %95 = vst.msk [vmem:[#allocation2 + $0x8] sm:$0xff] %vm19_vm0, %v93_v10 }
  0xe6   :  { %v99_v13 = vld [vmem:[#allocation2] sm:$0xff] }
  0xe7   :  { %v108_v14 = vadd.f32 %v129_v12, %v99_v13 }
  0xe8   :  { %v100_v15 = vld [vmem:[#allocation2 + $0x8] sm:$0xff] }
  0xe9   :  { %v132_v16 = vpack.c.bf16 %v108_v14, %v108_v14  ;;  %v109_v17 = vadd.f32 %v129_v12, %v100_v15 }
  0xeb   :  { %119 = vst.msk [vmem:[%s198_s3] sm:$0xf] %vm118_vm2, %v132_v16  ;;  %v133_v18 = vpack.c.bf16 %v109_v17, %v109_v17 }
  0xed   :  { %120 = vst.msk [vmem:[%s198_s3 + $0x4] sm:$0xf] %vm118_vm2, %v133_v18 }

// kernel: bart_decoder_forward.39
= control target key start
LH: loop header
LB: loop body
LE: loop exit
PB: predicated region body
PF: predicated region fallthrough
CT: control target
= control target key end

     0   :  { %vm19_vm0 = vcmask 523264   ;;  %v173_v0 = vmov 0.0   ;;  %vm174_vm1 = vmmov 0   ;;  %vm47_vm2 = vcmask 261120   ;;  %s217_s1 = inlined_call_operand.vmem [shape: bf16[32,64], index: 1, kind: input, shape index: {}]   ;;  %s218_s0 = inlined_call_operand.vmem [shape: bf16[16,32], index: 0, kind: input, shape index: {}]   ;;  %s219_s2 = inlined_call_operand.vmem [shape: f32[1,64], index: 2, kind: input, shape index: {}]   ;;  %s220_s3 = inlined_call_operand.vmem [shape: bf16[16,64], index: 3, kind: output, shape index: {}]  }
   0x1   :  { %156 = vmatprep.subr.bf16.mxu0 %v173_v0  ;;  %v166_v1 = vld [vmem:[%s217_s1] sm:$0xff]   ;;  %160 = vmatprep.mubr.msk.bf16.mxu0 %vm174_vm1, %v173_v0  ;;  %20 = vst.msk [vmem:[#allocation2] sm:$0xff] %vm19_vm0, %v173_v0  ;;  %21 = vst.msk [vmem:[#allocation2 + $0x8] sm:$0xff] %vm19_vm0, %v173_v0  ;;  %v167_v2 = vld [vmem:[%s217_s1 + $0x8] sm:$0xff]   ;;  %vm137_vm3 = vcmask 519168  }
   0x2   :  { %157 = vmatpush3.bf16.msra.mxu0 %v166_v1  ;;  %v168_v3 = vld [vmem:[%s218_s0] sm:$0xff]  }
   0x3   :  { %158 = vmatprep.subr.bf16.mxu0 %v173_v0  ;;  %v148_v12 = vld [vmem:[%s219_s2] ss:$0 sm:$0xff] }
   0x6   :  { %159 = vmatpush3.bf16.msra.mxu0 %v167_v2 }
   0x8   :  { %v22_v4 = vld [vmem:[#allocation2] sm:$0xff]  ;;  %v23_v6 = vld [vmem:[#allocation2 + $0x8] sm:$0xff] }
   0x9   :  { %161 = vmatmul.mubr.msk.bf16.vlgmr.msra.gmra.mrb[0].mxu0 %vm47_vm2, %v168_v3 }
  0xdc   :  { %v85_v5 = vpop.f32.mrb[0].mxu0 }
  0xdd   :  { %v92_v7 = vadd.f32 %v85_v5, %v22_v4  ;;  %v162_v8 = vpop.f32.mrb[1].mxu0 }
  0xde   :  { %v88_v9 = vpop.f32.mrb[2].mxu0 }
  0xdf   :  { %95 = vst.msk [vmem:[#allocation2] sm:$0xff] %vm19_vm0, %v92_v7  ;;  %v93_v10 = vadd.f32 %v88_v9, %v23_v6  ;;  %v163_v11 = vpop.f32.mrb[3].mxu0 }
  0xe1   :  { %96 = vst.msk [vmem:[#allocation2 + $0x8] sm:$0xff] %vm19_vm0, %v93_v10 }
  0xe6   :  { %v100_v13 = vld [vmem:[#allocation2] sm:$0xff] }
  0xe7   :  { %v109_v14 = vadd.f32 %v148_v12, %v100_v13 }
  0xe8   :  { %v101_v15 = vld [vmem:[#allocation2 + $0x8] sm:$0xff] }
  0xe9   :  { %v111_v16 = vmul.f32 %v109_v14, %v109_v14  ;;  %v110_v17 = vadd.f32 %v148_v12, %v101_v15 }
  0xeb   :  { %v113_v18 = vmul.f32 %v111_v16, %v109_v14  ;;  %v112_v19 = vmul.f32 %v110_v17, %v110_v17 }
  0xed   :  { %v115_v20 = vmul.f32 0.044715, %v113_v18  ;;  %v114_v21 = vmul.f32 %v112_v19, %v110_v17 }
  0xef   :  { %v117_v22 = vadd.f32 %v115_v20, %v109_v14  ;;  %v116_v23 = vmul.f32 0.044715, %v114_v21 }
  0xf1   :  { %v119_v24 = vmul.f32 0.7978846, %v117_v22  ;;  %v118_v25 = vadd.f32 %v116_v23, %v110_v17 }
  0xf3   :  { %169 = vtanh.f32 %v119_v24  ;;  %v120_v26 = vmul.f32 0.7978846, %v118_v25 }
  0xf5   :  { %171 = vtanh.f32 %v120_v26 }
  0xfd   :  { %v170_v27 = vpop.eup %169 }
  0xfe   :  { %v123_v28 = vadd.f32 1.0, %v170_v27 }
  0xff   :  { %v172_v29 = vpop.eup %171 }
 0x100   :  { %v125_v30 = vmul.f32 0.5, %v123_v28  ;;  %v124_v31 = vadd.f32 1.0, %v172_v29 }
 0x102   :  { %v127_v32 = vmul.f32 %v125_v30, %v109_v14  ;;  %v126_v33 = vmul.f32 0.5, %v124_v31 }
 0x104   :  { %v151_v34 = vpack.c.bf16 %v127_v32, %v127_v32  ;;  %v128_v35 = vmul.f32 %v126_v33, %v110_v17 }
 0x106   :  { %138 = vst.msk [vmem:[%s220_s3] sm:$0xf] %vm137_vm3, %v151_v34  ;;  %v152_v36 = vpack.c.bf16 %v128_v35, %v128_v35 }
 0x108   :  { %139 = vst.msk [vmem:[%s220_s3 + $0x4] sm:$0xf] %vm137_vm3, %v152_v36 }

// kernel: bart_decoder_forward.40
= control target key start
LH: loop header
LB: loop body
LE: loop exit
PB: predicated region body
PF: predicated region fallthrough
CT: control target
= control target key end

     0   :  { %vm22_vm0 = vcmask 261120   ;;  %v190_v0 = vmov 0.0   ;;  %vm191_vm1 = vmmov 0   ;;  %vm66_vm2 = vcmask 523264   ;;  %s248_s1 = inlined_call_operand.vmem [shape: bf16[64,32], index: 1, kind: input, shape index: {}]   ;;  %s249_s0 = inlined_call_operand.vmem [shape: bf16[16,64], index: 0, kind: input, shape index: {}]   ;;  %s250_s3 = inlined_call_operand.vmem [shape: bf16[16,32], index: 3, kind: input, shape index: {}]   ;;  %s251_s2 = inlined_call_operand.vmem [shape: f32[1,32], index: 2, kind: input, shape index: {}]   ;;  %s252_s4 = inlined_call_operand.vmem [shape: bf16[16,32], index: 4, kind: output, shape index: {}]  }
   0x1   :  { %171 = vmatprep.subr.bf16.mxu0 %v190_v0  ;;  %v185_v1 = vld [vmem:[%s248_s1] sm:$0xff]   ;;  %179 = vmatprep.mubr.msk.bf16.mxu0 %vm191_vm1, %v190_v0  ;;  %23 = vst.msk [vmem:[#allocation2] sm:$0xff] %vm22_vm0, %v190_v0  ;;  %24 = vst.msk [vmem:[#allocation2 + $0x8] sm:$0xff] %vm22_vm0, %v190_v0  ;;  %v186_v2 = vld [vmem:[%s248_s1 + $0x8] sm:$0xff]   ;;  %vm144_vm3 = vcmask 257024  }
   0x2   :  { %172 = vmatpush3.bf16.msra.mxu0 %v185_v1  ;;  %v187_v3 = vld [vmem:[%s248_s1 + $0x10] sm:$0xff]   ;;  %v188_v4 = vld [vmem:[%s248_s1 + $0x18] sm:$0xff]   ;;  %v189_v5 = vld [vmem:[%s249_s0] sm:$0xff]  }
   0x3   :  { %173 = vmatprep.subr.bf16.mxu0 %v190_v0  ;;  %v163_v14 = vld [vmem:[%s250_s3] sm:$0xff]  }
   0x4   :  { %v157_v15 = vld [vmem:[%s251_s2] ss:$0 sm:$0xff]  ;;  %v164_v16 = vunpack.c.l.bf16 %v163_v14  ;;  %v165_v19 = vunpack.c.h.bf16 %v163_v14 }
   0x6   :  { %174 = vmatpush3.bf16.msra.mxu0 %v186_v2 }
   0x7   :  { %175 = vmatprep.subr.bf16.mxu0 %v190_v0 }
   0x8   :  { %v25_v6 = vld [vmem:[#allocation2] sm:$0xff]  ;;  %v26_v8 = vld [vmem:[#allocation2 + $0x8] sm:$0xff] }
   0xa   :  { %176 = vmatpush3.bf16.msra.mxu0 %v187_v3 }
   0xb   :  { %177 = vmatprep.subr.bf16.mxu0 %v190_v0 }
   0xe   :  { %178 = vmatpush3.bf16.msra.mxu0 %v188_v4 }
  0x11   :  { %180 = vmatmul.mubr.msk.bf16.vlgmr.msra.gmra.mrb[0].mxu0 %vm66_vm2, %v189_v5 }
  0xe4   :  { %v104_v7 = vpop.f32.mrb[0].mxu0 }
  0xe5   :  { %v111_v9 = vadd.f32 %v104_v7, %v25_v6  ;;  %v181_v10 = vpop.f32.mrb[1].mxu0 }
  0xe6   :  { %v107_v11 = vpop.f32.mrb[2].mxu0 }
  0xe7   :  { %114 = vst.msk [vmem:[#allocation2] sm:$0xff] %vm22_vm0, %v111_v9  ;;  %v112_v12 = vadd.f32 %v107_v11, %v26_v8  ;;  %v182_v13 = vpop.f32.mrb[3].mxu0 }
  0xe9   :  { %115 = vst.msk [vmem:[#allocation2 + $0x8] sm:$0xff] %vm22_vm0, %v112_v12 }
  0xee   :  { %v119_v17 = vld [vmem:[#allocation2] sm:$0xff] }
  0xef   :  { %v128_v18 = vadd.f32 %v157_v15, %v119_v17 }
  0xf0   :  { %v120_v20 = vld [vmem:[#allocation2 + $0x8] sm:$0xff] }
  0xf1   :  { %v134_v21 = vadd.f32 %v164_v16, %v128_v18  ;;  %v129_v22 = vadd.f32 %v157_v15, %v120_v20 }
  0xf3   :  { %v160_v23 = vpack.c.bf16 %v134_v21, %v134_v21  ;;  %v135_v24 = vadd.f32 %v165_v19, %v129_v22 }
  0xf5   :  { %145 = vst.msk [vmem:[%s252_s4] sm:$0xf] %vm144_vm3, %v160_v23  ;;  %v161_v25 = vpack.c.bf16 %v135_v24, %v135_v24 }
  0xf7   :  { %146 = vst.msk [vmem:[%s252_s4 + $0x4] sm:$0xf] %vm144_vm3, %v161_v25 }

// kernel: bart_decoder_forward.54
= control target key start
LH: loop header
LB: loop body
LE: loop exit
PB: predicated region body
PF: predicated region fallthrough
CT: control target
= control target key end

     0   :  { %s672_s12 = smov 0   ;;  %s674_s13 = smov 0   ;;  %s778_s0 = inlined_call_operand.vmem [shape: bf16[16,32], index: 0, kind: input, shape index: {}]   ;;  %s779_s1 = inlined_call_operand.vmem [shape: bf16[32,384], index: 1, kind: input, shape index: {}]   ;;  %s780_s2 = inlined_call_operand.vmem [shape: f32[16,1], index: 2, kind: output, shape index: {0}]   ;;  %s781_s3 = inlined_call_operand.vmem [shape: f32[16,1], index: 3, kind: output, shape index: {1}]  }
   0x1   :  { %s676_s14 = smov 0   ;;  %s678_s15 = smov 0  }
   0x2   :  { %s680_s16 = smov 0  }
   0x3 LB: > { %s23_s17 = sadd.s32 1, %s641_s15  ;;  %p66_p1 = scmp.ne.s32.totalorder %s633_s13, %s629_s12  ;;  %s645_s16 = sphi %s680_s16, %s14_s16   ;;  %s641_s15 = sphi %s678_s15, %s785_s15   ;;  %s637_s14 = sphi %s676_s14, %s784_s14   ;;  %s633_s13 = sphi %s674_s13, %s783_s13   ;;  %s629_s12 = sphi %s672_s12, %s782_s12  }
   0x4   : > { %p24_p0 = scmp.ge.s32.totalorder %s23_s17, 3  ;;  %p67_p2 = scmp.eq.s32.totalorder %s645_s16, 0 }
   0x5   : > { %s59_s19 = sadd.s32 1, %s633_s13  ;;  %p521_p5 = scmp.ge.s32.totalorder %s645_s16, 3 }
   0x6   : > { %s787_s17 = smov (%p24_p0, %s23_s17), 0  ;;  %p68_p3 = por %p67_p2, %p66_p1 }
   0x7   : > { %s56_s18 = ssub.s32 %s641_s15, %s787_s17  ;;  %153 = sbr.rel (%p521_p5) target bundleno = 21 (0x15), region = 20 }
   0x8   : > { %p57_p4 = scmp.eq.s32.totalorder %s56_s18, 0 }
   0xa   : > { %s707_s20 = scalar_select %p57_p4, %s633_s13, %s59_s19  }
   0xe   : > { %156 = sbr.rel (!%p68_p3) target bundleno = 21 (0x15), region = 24  ;;  %s158_s21 = sand.u32 (%p68_p3), 1, %s633_s13  }
   0xf   : > { %s523_s22 = sshll.u32 (%p68_p3), %s641_s15, 2  ;;  %s522_s23 = sshll.u32 (%p68_p3), %s158_s21, 4 }
  0x10   : > { %s162_s26 = scalar_lea.vmem (%p68_p3), %s779_s1, %s523_s22  ;;  %s160_s27 = scalar_lea.vmem (%p68_p3), [#allocation2], %s522_s23 }
  0x11   : > { %v178_v0 = vld [vmem:[%s162_s26] sm:$0xf] (%p68_p3)  ;;  %v180_v1 = vld [vmem:[%s162_s26 + $0xc] sm:$0xf] (%p68_p3)  ;;  %v182_v2 = vld [vmem:[%s162_s26 + $0x18] sm:$0xf] (%p68_p3) }
  0x12   : > { %179 = vst [vmem:[%s160_s27] sm:$0xf] (%p68_p3), %v178_v0  ;;  %181 = vst [vmem:[%s160_s27 + $0x4] sm:$0xf] (%p68_p3), %v180_v1  ;;  %v184_v3 = vld [vmem:[%s162_s26 + $0x24] sm:$0xf] (%p68_p3) }
  0x13   : > { %183 = vst [vmem:[%s160_s27 + $0x8] sm:$0xf] (%p68_p3), %v182_v2  ;;  %185 = vst [vmem:[%s160_s27 + $0xc] sm:$0xf] (%p68_p3), %v184_v3 }
  0x15 PF: > { %p524_p6 = scmp.ge.s32.totalorder %s645_s16, 1  ;;  %p215_p7 = scmp.lt.s32.totalorder %s645_s16, 4 }
  0x17   : > { %p216_p8 = pnand %p524_p6, %p215_p7 }
  0x18   : > { %s222_s28 = sand.u32 (!%p216_p8), 1, %s629_s12   ;;  %p526_p9 = scmp.ne.s32.totalorder (!%p216_p8), %s637_s14, 0 }
  0x19   : > { %219 = sbr.rel (%p216_p8) target bundleno = 697 (0x2b9), region = 65  ;;  %s525_s29 = sshll.u32 (!%p216_p8), %s222_s28, 4 }
  0x1a   : > { %s224_s30 = scalar_lea.vmem (!%p216_p8), [#allocation2], %s525_s29 }
  0x20   : > { %277 = sbr.rel (%p526_p9) target bundleno = 39 (0x27), region = 73  ;;  %vm278_vm0 = vcmask (!%p526_p9), 7168   ;;  %v647_v4 = vmov (!%p526_p9), -1e+30   ;;  %v648_v5 = vmov (!%p526_p9), 0.0  }
  0x21   : > { %279 = vst.msk [vmem:[%s780_s2] sm:$0xff] (!%p526_p9), %vm278_vm0, %v647_v4  ;;  %280 = vst.msk [vmem:[%s780_s2 + $0x8] sm:$0xff] (!%p526_p9), %vm278_vm0, %v647_v4 }
  0x22   : > { %281 = vst.msk [vmem:[%s781_s3] sm:$0xff] (!%p526_p9), %vm278_vm0, %v648_v5  ;;  %282 = vst.msk [vmem:[%s781_s3 + $0x8] sm:$0xff] (!%p526_p9), %vm278_vm0, %v648_v5 }
  0x27 PF: > { %v596_v6 = vld [vmem:[%s224_s30] sm:$0xff]   ;;  %v649_v7 = vmov 0.0   ;;  %v597_v8 = vld [vmem:[%s224_s30 + $0x8] sm:$0xff]   ;;  %vm650_vm1 = vmmov 0   ;;  %vm306_vm2 = vcmask 261120   ;;  %v351_v10 = vlaneseq  ;;  %s531_s19 = sshll.u32 %s637_s14, 7 }
  0x28   : > { %541 = vmatprep.subr.bf16.mxu0 %v649_v7  ;;  %545 = vmatprep.mubr.msk.bf16.mxu0 %vm650_vm1, %v649_v7  ;;  %v598_v9 = vld [vmem:[%s778_s0] sm:$0xff]   ;;  %v354_v12 = vstv %s531_s19  ;;  %v651_v20 = vmov 0   ;;  %vm399_vm4 = vcmask 7168   ;;  %v360_v24 = vld [vmem:[%s780_s2 + $0x8] sm:$0xff] }
  0x29   : > { %542 = vmatpush3.bf16.msra.mxu0 %v596_v6  ;;  %v352_v11 = vand.u32 127, %v351_v10  ;;  %594 = vset.pattern.permute.xlu1 %v651_v20  ;;  %v359_v21 = vld [vmem:[%s780_s2] sm:$0xff]  ;;  %v368_v44 = vld [vmem:[%s781_s3 + $0x8] sm:$0xff] }
  0x2a   : > { %543 = vmatprep.subr.bf16.mxu0 %v649_v7  ;;  %595 = vset.pattern.permute.xlu0 %v651_v20  ;;  %v367_v40 = vld [vmem:[%s781_s3] sm:$0xff] }
  0x2b   : > { %v355_v13 = vadd.s32 %v354_v12, %v352_v11 }
  0x2d   : > { %544 = vmatpush3.bf16.msra.mxu0 %v597_v8  ;;  %vm356_vm3 = vcmp.lt.s32.totalorder %v355_v13, 300 }
  0x30   : > { %546 = vmatmul.mubr.msk.bf16.vlgmr.msra.gmra.mrb[0].mxu0 %vm306_vm2, %v598_v9 }
 0x103   : > { %v344_v14 = vpop.f32.mrb[0].mxu0 }
 0x104   : > { %v547_v15 = vpop.f32.mrb[1].mxu0  ;;  %v357_v16 = vsel %vm356_vm3, %v344_v14, -1e+30 }
 0x105   : > { %361 = vmax.xlane.f32.xlu0 %v357_v16  ;;  %v347_v17 = vpop.f32.mrb[2].mxu0 }
 0x106   : > { %v548_v18 = vpop.f32.mrb[3].mxu0  ;;  %v358_v19 = vsel %vm356_vm3, %v347_v17, -1e+30 }
 0x109   : > { %363 = vmax.xlane.f32.xlu0 %v358_v19 }
 0x192   : > { %v362_v22 = vpop.xlane.xlu0 %361 }
 0x193   : > { %v365_v23 = vmax.f32 %v359_v21, %v362_v22 }
 0x195   : > { %v369_v25 = vsub.f32 %v359_v21, %v365_v23  ;;  %402 = vst.msk [vmem:[%s780_s2] sm:$0xff] %vm399_vm4, %v365_v23  ;;  %379 = vperm.xlu1 %594, %v365_v23  }
 0x196   : > { %v364_v26 = vpop.xlane.xlu0 %363 }
 0x197   : > { %v366_v27 = vmax.f32 %v360_v24, %v364_v26  ;;  %v371_v37 = vmul.f32 1.442695, %v369_v25 }
 0x199   : > { %v370_v28 = vsub.f32 %v360_v24, %v366_v27  ;;  %403 = vst.msk [vmem:[%s780_s2 + $0x8] sm:$0xff] %vm399_vm4, %v366_v27  ;;  %384 = vperm.xlu1 %594, %v366_v27  }
 0x19b   : > { %v373_v38 = vmul.f32 1.442695, %v370_v28 }
 0x214   : > { %v380_v29 = vpop.permute.xlu1 %379 }
 0x215   : > { %v387_v30 = vsub.f32 %v357_v16, %v380_v29 }
 0x217   : > { %v389_v31 = vmul.f32 1.442695, %v387_v30 }
 0x218   : > { %v385_v32 = vpop.permute.xlu1 %384 }
 0x219   : > { %599 = vpow2.f32 %v389_v31  ;;  %v388_v33 = vsub.f32 %v358_v19, %v385_v32 }
 0x21b   : > { %v391_v34 = vmul.f32 1.442695, %v388_v33 }
 0x21d   : > { %601 = vpow2.f32 %v391_v34 }
 0x21e   : > { %603 = vpow2.f32 %v371_v37 }
 0x21f   : > { %605 = vpow2.f32 %v373_v38 }
 0x223   : > { %v600_v35 = vpop.eup %599 }
 0x224   : > { %393 = vadd.xlane.f32.xlu0 %v600_v35 }
 0x227   : > { %v602_v36 = vpop.eup %601 }
 0x228   : > { %395 = vadd.xlane.f32.xlu1 %v602_v36  ;;  %v604_v39 = vpop.eup %603 }
 0x229   : > { %v375_v41 = vmul.f32 %v604_v39, %v367_v40  ;;  %v606_v42 = vpop.eup %605 }
 0x22a   : > { %v376_v46 = vmul.f32 %v606_v42, %v368_v44 }
 0x2b1   : > { %v394_v43 = vpop.xlane.xlu0 %393 }
 0x2b2   : > { %v397_v45 = vadd.f32 %v394_v43, %v375_v41 }
 0x2b4   : > { %400 = vst.msk [vmem:[%s781_s3] sm:$0xff] %vm399_vm4, %v397_v45 }
 0x2b5   : > { %v396_v47 = vpop.xlane.xlu1 %395 }
 0x2b6   : > { %v398_v48 = vadd.f32 %v396_v47, %v376_v46 }
 0x2b8   : > { %401 = vst.msk [vmem:[%s781_s3 + $0x8] sm:$0xff] %vm399_vm4, %v398_v48 }
 0x2b9 PF: > { %s14_s16 = sadd.s32 1, %s645_s16   ;;  %s782_s12 = smov %s633_s13 }
 0x2ba   : > { %p11_p10 = scmp.ge.s32.totalorder %s14_s16, 5   ;;  %s783_s13 = smov %s707_s20 }
 0x2bb   : > { %s784_s14 = smov %s641_s15  ;;  %s785_s15 = smov %s787_s17 }
 0x2bc   :  { %13 = sbr.rel (!%p11_p10) target bundleno = 3 (0x3), region = 123 }

// kernel: bart_decoder_forward.36
= control target key start
LH: loop header
LB: loop body
LE: loop exit
PB: predicated region body
PF: predicated region fallthrough
CT: control target
= control target key end

     0   :  { %s1329_s15 = smov 0   ;;  %s1331_s16 = smov 0   ;;  %s1482_s0 = inlined_call_operand.vmem [shape: bf16[2,4,8,8], index: 0, kind: input, shape index: {}]   ;;  %s1483_s1 = inlined_call_operand.vmem [shape: bf16[2,4,16,8], index: 1, kind: input, shape index: {}]   ;;  %s1484_s2 = inlined_call_operand.vmem [shape: bf16[2,4,16,8], index: 2, kind: input, shape index: {}]   ;;  %s1485_s3 = inlined_call_operand.vmem [shape: f32[2,1,16], index: 3, kind: input, shape index: {}]   ;;  %s1486_s4 = inlined_call_operand.vmem [shape: bf16[2,8,32], index: 4, kind: output, shape index: {}]  }
   0x1   :  { %s1333_s17 = smov 0  }
   0x2 LB: > { %s33_s18 = sadd.s32 1, %s1291_s16  ;;  %p1114_p0 = scmp.ge.s32.totalorder %s1295_s17, 1  ;;  %s1295_s17 = sphi %s1333_s17, %s14_s17   ;;  %s1291_s16 = sphi %s1331_s16, %s1488_s16   ;;  %s1287_s15 = sphi %s1329_s15, %s1487_s15  }
   0x3   : > { %p35_p1 = scmp.ge.s32.totalorder %s33_s18, 2  ;;  %p235_p2 = scmp.lt.s32.totalorder %s1295_s17, 3 }
   0x5   : > { %s1490_s18 = smov (%p35_p1, %s33_s18), 0  ;;  %p236_p3 = pnand %p1114_p0, %p235_p2 }
   0x6   : > { %p290_p4 = scmp.lt.s32.totalorder (!%p236_p3), %s1287_s15, 1  ;;  %vm345_vm0 = vcmask (!%p236_p3), 64512   ;;  %v1297_v0 = vmov (!%p236_p3), 0.0   ;;  %vm1298_vm1 = vmmov (!%p236_p3), 0   ;;  %vm336_vm2 = vcmask (!%p236_p3), 7168   ;;  %s1301_s7 = smov (!%p236_p3), 8  }
   0x7   : > { %239 = sbr.rel (%p236_p3) target bundleno = 955 (0x3bb), region = 36  ;;  %1160 = vmatprep.subr.bf16.mxu0 (!%p236_p3), %v1297_v0  ;;  %346 = vst.msk [vmem:[#allocation4] sm:$0xff] (!%p236_p3), %vm345_vm0, %v1297_v0  ;;  %347 = vst.msk [vmem:[#allocation4 + $0x8] sm:$0xff] (!%p236_p3), %vm345_vm0, %v1297_v0  ;;  %1166 = vmatprep.subr.bf16.mxu1 (!%p236_p3), %v1297_v0  ;;  %v1299_v13 = vmov (!%p236_p3), -1e+30   ;;  %vm594_vm3 = vcmask (!%p236_p3), 130048  }
   0x8   : > { %348 = vst.msk [vmem:[#allocation4 + $0x10] sm:$0xff] (!%p236_p3), %vm345_vm0, %v1297_v0  ;;  %349 = vst.msk [vmem:[#allocation4 + $0x18] sm:$0xff] (!%p236_p3), %vm345_vm0, %v1297_v0  ;;  %1162 = vmatprep.mubr.msk.bf16.mxu0 (!%p236_p3), %vm1298_vm1, %v1297_v0  ;;  %1168 = vmatprep.mubr.msk.bf16.mxu1 (!%p236_p3), %vm1298_vm1, %v1297_v0  ;;  %v1300_v43 = vmov (!%p236_p3), 0   ;;  %s1302_s8 = smov (!%p236_p3), 16   ;;  %s1303_s9 = smov (!%p236_p3), 24   ;;  %vm977_vm4 = vcmask (!%p236_p3), 195584  }
   0x9   : > { %337 = vst.msk [vmem:[#allocation2] sm:$0xff] (!%p236_p3), %vm336_vm2, %v1299_v13  ;;  %338 = vst.msk [vmem:[#allocation2 + $0x8] sm:$0xff] (!%p236_p3), %vm336_vm2, %v1299_v13  ;;  %1239 = vset.pattern.permute.xlu0 (!%p236_p3), %v1300_v43  ;;  %1240 = vset.pattern.permute.xlu1 (!%p236_p3), %v1300_v43  ;;  %vm980_vm5 = vcmask (!%p236_p3), 257024  }
   0xa   : > { %339 = vst.msk [vmem:[#allocation2 + $0x10] sm:$0xff] (!%p236_p3), %vm336_vm2, %v1299_v13  ;;  %340 = vst.msk [vmem:[#allocation2 + $0x18] sm:$0xff] (!%p236_p3), %vm336_vm2, %v1299_v13 }
   0xb   : > { %341 = vst.msk [vmem:[#allocation3] sm:$0xff] (!%p236_p3), %vm336_vm2, %v1297_v0  ;;  %342 = vst.msk [vmem:[#allocation3 + $0x8] sm:$0xff] (!%p236_p3), %vm336_vm2, %v1297_v0 }
   0xc   : > { %343 = vst.msk [vmem:[#allocation3 + $0x10] sm:$0xff] (!%p236_p3), %vm336_vm2, %v1297_v0  ;;  %344 = vst.msk [vmem:[#allocation3 + $0x18] sm:$0xff] (!%p236_p3), %vm336_vm2, %v1297_v0 }
   0xe   : > { %s1492_s15 = smov (!%p290_p4, %s1287_s15), 1 }
   0xf   : > { %s1142_s19 = sshll.u32 %s1492_s15, 5  ;;  %s1141_s23 = sshll.u32 %s1492_s15, 4 }
  0x10   : > { %s306_s22 = scalar_lea.vmem %s1483_s1, %s1142_s19  ;;  %s297_s26 = scalar_lea.vmem %s1482_s0, %s1141_s23  ;;  %v1416_v44 = vld [vmem:[#allocation2] sm:$0xff]  ;;  %v1421_v47 = vld [vmem:[#allocation2 + $0x8] sm:$0xff] }
  0x11   : > { %v1241_v1 = vld [vmem:[%s306_s22] sm:$0xff]   ;;  %v1242_v2 = vld [vmem:[%s306_s22 + $0x8] sm:$0xff]   ;;  %v1243_v5 = vld [vmem:[%s306_s22 + $0x10] sm:$0xff]   ;;  %s1377_s29 = scalar_lea.vmem %s1484_s2, %s1142_s19  ;;  %s323_s6 = scalar_lea.vmem %s1485_s3, %s1492_s15 }
  0x12   : > { %v380_v3 = vsel %vm345_vm0, %v1241_v1, 0  ;;  %v431_v4 = vsel %vm345_vm0, %v1242_v2, 0  ;;  %v350_v6 = vld [vmem:[%s297_s26] sm:$0xf]  ;;  %v1244_v7 = vld [vmem:[%s306_s22 + $0x18] sm:$0xff]   ;;  %v482_v9 = vsel %vm345_vm0, %v1243_v5, 0 }
  0x13   : > { %1161 = vmatpush3.bf16.xpose.msra.mxu0 %v380_v3  ;;  %1167 = vmatpush3.bf16.xpose.msra.mxu1 %v431_v4  ;;  %v351_v8 = vld [vmem:[%s297_s26 + $0x4] sm:$0xf]  ;;  %v533_v10 = vsel %vm345_vm0, %v1244_v7, 0  ;;  %v352_v11 = vld [vmem:[%s297_s26 + $0x8] sm:$0xf]  ;;  %v592_v51 = vld [vmem:[#allocation2 + $0x10] sm:$0xff] }
  0x14   : > { %1172 = vmatprep.subr.bf16.mxu0 %v1297_v0  ;;  %1178 = vmatprep.subr.bf16.mxu1 %v1297_v0  ;;  %v353_v12 = vld [vmem:[%s297_s26 + $0xc] sm:$0xf]  ;;  %v1130_v15 = vld [vmem:[%s323_s6] ss:$0 sm:$0xff]  ;;  %v593_v55 = vld [vmem:[#allocation2 + $0x18] sm:$0xff]  ;;  %s1121_s10 = sshll.u32 %s1492_s15, 2 }
  0x15   : > { %v1245_v60 = vld [vmem:[%s1377_s29] sm:$0xff]   ;;  %v1246_v61 = vld [vmem:[%s1377_s29 + $0x8] sm:$0xff]   ;;  %s330_s13 = scalar_lea.vmem %s1486_s4, %s1121_s10 }
  0x16   : > { %v655_v43 = vld [vmem:[#allocation3] sm:$0xff] }
  0x1a   : > { %1163 = vmatmul.mubr.msk.bf16.vlgmr.msra.gmra.mrb[0].mxu0 %vm345_vm0, %v350_v6  ;;  %1169 = vmatmul.mubr.msk.bf16.vlgmr.msra.gmra.mrb[0].mxu1 %vm345_vm0, %v351_v8 }
  0x1b   : > { %1173 = vmatpush3.bf16.xpose.msra.mxu0 %v482_v9  ;;  %1179 = vmatpush3.bf16.xpose.msra.mxu1 %v533_v10 }
  0x1c   : > { %1174 = vmatprep.mubr.msk.bf16.mxu0 %vm1298_vm1, %v1297_v0  ;;  %1180 = vmatprep.mubr.msk.bf16.mxu1 %vm1298_vm1, %v1297_v0 }
  0x1d   : > { %1184 = vmatprep.subr.bf16.mxu0 %v1297_v0  ;;  %1190 = vmatprep.subr.bf16.mxu1 %v1297_v0 }
  0x22   : > { %1175 = vmatmul.mubr.msk.bf16.vlgmr.msra.gmra.mrb[4].mxu0 %vm345_vm0, %v352_v11  ;;  %1181 = vmatmul.mubr.msk.bf16.vlgmr.msra.gmra.mrb[4].mxu1 %vm345_vm0, %v353_v12  ;;  %v1247_v12 = vld [vmem:[%s1377_s29 + $0x10] sm:$0xff]  }
  0x23   : > { %1186 = vmatprep.mubr.msk.bf16.mxu0 %vm1298_vm1, %v1297_v0  ;;  %1192 = vmatprep.mubr.msk.bf16.mxu1 %vm1298_vm1, %v1297_v0 }
  0x24   : > { %1185 = vmatpush3.bf16.msra.mxu0 %v1245_v60  ;;  %1191 = vmatpush3.bf16.msra.mxu1 %v1246_v61 }
  0x25   : > { %1196 = vmatprep.subr.bf16.mxu0 %v1297_v0  ;;  %1202 = vmatprep.subr.bf16.mxu1 %v1297_v0 }
  0xed   : > { %v416_v14 = vpop.f32.mrb[0].mxu0  ;;  %v467_v18 = vpop.f32.mrb[0].mxu1 }
  0xee   : > { %v575_v16 = vmul.f32 0.35355338, %v416_v14  ;;  %v1164_v17 = vpop.f32.mrb[1].mxu0  ;;  %v576_v20 = vmul.f32 0.35355338, %v467_v18  ;;  %v1170_v21 = vpop.f32.mrb[1].mxu1 }
  0xef   : > { %v419_v19 = vpop.f32.mrb[2].mxu0  ;;  %v470_v23 = vpop.f32.mrb[2].mxu1 }
  0xf0   : > { %v1165_v22 = vpop.f32.mrb[3].mxu0  ;;  %v586_v24 = vadd.f32 %v1130_v15, %v575_v16  ;;  %v1171_v25 = vpop.f32.mrb[3].mxu1  ;;  %v587_v26 = vadd.f32 %v1130_v15, %v576_v20 }
  0xf2   : > { %v595_v27 = vsel %vm594_vm3, %v586_v24, -inf  ;;  %v598_v28 = vsel %vm594_vm3, %v587_v26, -inf }
  0xf3   : > { %596 = vmax.xlane.f32.xlu0 %v595_v27 }
  0xf5   : > { %v518_v29 = vpop.f32.mrb[4].mxu0  ;;  %v569_v32 = vpop.f32.mrb[4].mxu1 }
  0xf6   : > { %v577_v30 = vmul.f32 0.35355338, %v518_v29  ;;  %v1176_v31 = vpop.f32.mrb[5].mxu0  ;;  %v578_v33 = vmul.f32 0.35355338, %v569_v32  ;;  %v1182_v35 = vpop.f32.mrb[5].mxu1 }
  0xf7   : > { %599 = vmax.xlane.f32.xlu0 %v598_v28  ;;  %v521_v34 = vpop.f32.mrb[6].mxu0  ;;  %v572_v37 = vpop.f32.mrb[6].mxu1  ;;  %v656_v31 = vld [vmem:[#allocation3 + $0x8] sm:$0xff] }
  0xf8   : > { %v1177_v36 = vpop.f32.mrb[7].mxu0  ;;  %v588_v38 = vadd.f32 %v1130_v15, %v577_v30  ;;  %v1183_v39 = vpop.f32.mrb[7].mxu1  ;;  %v589_v40 = vadd.f32 %v1130_v15, %v578_v33  ;;  %v1248_v15 = vld [vmem:[%s1377_s29 + $0x18] sm:$0xff]   ;;  %v657_v34 = vld [vmem:[#allocation3 + $0x10] sm:$0xff] }
  0xfa   : > { %v601_v41 = vsel %vm594_vm3, %v588_v38, -inf  ;;  %v604_v42 = vsel %vm594_vm3, %v589_v40, -inf }
  0xfb   : > { %602 = vmax.xlane.f32.xlu1 %v601_v41 }
  0xff   : > { %605 = vmax.xlane.f32.xlu1 %v604_v42 }
 0x180   : > { %v597_v45 = vpop.xlane.xlu0 %596 }
 0x181   : > { %v1419_v46 = vmax.f32 %v1416_v44, %v597_v45 }
 0x183   : > { %v611_v48 = vsub.f32 %v1416_v44, %v1419_v46  ;;  %920 = vst.msk [vmem:[#allocation2] sm:$0xff] %vm336_vm2, %v1419_v46  ;;  %625 = vperm.xlu0 %1239, %v1419_v46  }
 0x184   : > { %v600_v49 = vpop.xlane.xlu0 %599 }
 0x185   : > { %v1429_v50 = vmax.f32 %v1421_v47, %v600_v49  ;;  %v615_v30 = vmul.f32 1.442695, %v611_v48 }
 0x187   : > { %v612_v52 = vsub.f32 %v1421_v47, %v1429_v50  ;;  %921 = vst.msk [vmem:[#allocation2 + $0x8] sm:$0xff] %vm336_vm2, %v1429_v50  ;;  %630 = vperm.xlu1 %1240, %v1429_v50  }
 0x188   : > { %v603_v53 = vpop.xlane.xlu1 %602 }
 0x189   : > { %v609_v54 = vmax.f32 %v592_v51, %v603_v53 }
 0x18b   : > { %v613_v56 = vsub.f32 %v592_v51, %v609_v54  ;;  %922 = vst.msk [vmem:[#allocation2 + $0x10] sm:$0xff] %vm336_vm2, %v609_v54  ;;  %635 = vperm.xlu1 %1240, %v609_v54  }
 0x18c   : > { %v606_v57 = vpop.xlane.xlu1 %605 }
 0x18d   : > { %v610_v58 = vmax.f32 %v593_v55, %v606_v57 }
 0x18f   : > { %v614_v59 = vsub.f32 %v593_v55, %v610_v58  ;;  %923 = vst.msk [vmem:[#allocation2 + $0x18] sm:$0xff] %vm336_vm2, %v610_v58  ;;  %640 = vperm.xlu1 %1240, %v610_v58  }
 0x202   : > { %v626_v62 = vpop.permute.xlu0 %625 }
 0x203   : > { %v643_v63 = vsub.f32 %v586_v24, %v626_v62  ;;  %v619_v24 = vmul.f32 1.442695, %v613_v56  ;;  %v685_v56 = vld [vmem:[#allocation4 + $0x8] sm:$0xff] }
 0x205   : > { %v647_v1 = vmul.f32 1.442695, %v643_v63  ;;  %v686_v63 = vld [vmem:[#allocation4 + $0x10] sm:$0xff] }
 0x206   : > { %v631_v2 = vpop.permute.xlu1 %630 }
 0x207   : > { %1249 = vpow2.f32 %v647_v1  ;;  %v644_v3 = vsub.f32 %v587_v26, %v631_v2  ;;  %v617_v26 = vmul.f32 1.442695, %v612_v52 }
 0x209   : > { %v649_v4 = vmul.f32 1.442695, %v644_v3 }
 0x20a   : > { %v636_v5 = vpop.permute.xlu1 %635 }
 0x20b   : > { %1251 = vpow2.f32 %v649_v4  ;;  %v645_v6 = vsub.f32 %v588_v38, %v636_v5  ;;  %v658_v38 = vld [vmem:[#allocation3 + $0x18] sm:$0xff] }
 0x20d   : > { %v651_v7 = vmul.f32 1.442695, %v645_v6 }
 0x20e   : > { %v641_v8 = vpop.permute.xlu1 %640 }
 0x20f   : > { %1253 = vpow2.f32 %v651_v7  ;;  %v646_v9 = vsub.f32 %v589_v40, %v641_v8  ;;  %v687_v8 = vld [vmem:[#allocation4 + $0x18] sm:$0xff] }
 0x211   : > { %v1250_v10 = vpop.eup %1249  ;;  %v653_v11 = vmul.f32 1.442695, %v646_v9 }
 0x212   : > { %v712_v13 = vpack.c.bf16 %v1250_v10, %v1250_v10  ;;  %v663_v25 = vsel %vm594_vm3, %v1250_v10, 0.0 }
 0x213   : > { %1255 = vpow2.f32 %v653_v11 }
 0x214   : > { %1187 = vmatmul.mubr.msk.bf16.vlgmr.msra.gmra.mrb[8].mxu0 %vm594_vm3, %v712_v13  ;;  %1257 = vpow2.f32 %v619_v24 }
 0x215   : > { %v1252_v14 = vpop.eup %1251  ;;  %1197 = vmatpush3.bf16.msra.mxu0 %v1247_v12  ;;  %1198 = vmatprep.mubr.msk.bf16.mxu0 %vm1298_vm1, %v1297_v0  ;;  %1259 = vpow2.f32 %v617_v26 }
 0x216   : > { %v666_v16 = vsel %vm594_vm3, %v1252_v14, 0.0  ;;  %v713_v17 = vpack.c.bf16 %v1252_v14, %v1252_v14 }
 0x217   : > { %667 = vadd.xlane.f32.xlu1 %v666_v16 }
 0x218   : > { %1193 = vmatmul.mubr.msk.bf16.vlgmr.msra.gmra.mrb[8].mxu1 %vm594_vm3, %v713_v17 }
 0x219   : > { %v1254_v18 = vpop.eup %1253  ;;  %1203 = vmatpush3.bf16.msra.mxu1 %v1248_v15  ;;  %1204 = vmatprep.mubr.msk.bf16.mxu1 %vm1298_vm1, %v1297_v0  ;;  %v621_v0 = vmul.f32 1.442695, %v614_v59 }
 0x21a   : > { %v669_v19 = vsel %vm594_vm3, %v1254_v18, 0.0  ;;  %v714_v20 = vpack.c.bf16 %v1254_v18, %v1254_v18 }
 0x21b   : > { %670 = vadd.xlane.f32.xlu0 %v669_v19  ;;  %1261 = vpow2.f32 %v621_v0  ;;  %v684_v0 = vld [vmem:[#allocation4] sm:$0xff] }
 0x21c   : > { %1199 = vmatmul.mubr.msk.bf16.vlgmr.msra.gmra.mrb[12].mxu0 %vm594_vm3, %v714_v20  ;;  %1263 = vpow2.f32 %v615_v30 }
 0x21d   : > { %v1256_v21 = vpop.eup %1255 }
 0x21e   : > { %v672_v22 = vsel %vm594_vm3, %v1256_v21, 0.0  ;;  %v715_v23 = vpack.c.bf16 %v1256_v21, %v1256_v21  ;;  %v1258_v27 = vpop.eup %1257 }
 0x21f   : > { %673 = vadd.xlane.f32.xlu1 %v672_v22  ;;  %v1260_v28 = vpop.eup %1259  ;;  %v661_v36 = vmul.f32 %v1258_v27, %v657_v34 }
 0x220   : > { %1205 = vmatmul.mubr.msk.bf16.vlgmr.msra.gmra.mrb[12].mxu1 %vm594_vm3, %v715_v23  ;;  %v660_v32 = vmul.f32 %v1260_v28, %v656_v31 }
 0x223   : > { %664 = vadd.xlane.f32.xlu1 %v663_v25 }
 0x225   : > { %v1262_v29 = vpop.eup %1261 }
 0x226   : > { %v662_v40 = vmul.f32 %v1262_v29, %v658_v38  ;;  %v1264_v41 = vpop.eup %1263 }
 0x227   : > { %v659_v46 = vmul.f32 %v1264_v41, %v655_v43 }
 0x231   : > { %700 = vperm.xlu0 %1239, %v1258_v27  }
 0x234   : > { %695 = vperm.xlu1 %1240, %v1260_v28  }
 0x238   : > { %705 = vperm.xlu1 %1240, %v1262_v29  }
 0x2a4   : > { %v668_v33 = vpop.xlane.xlu1 %667 }
 0x2a5   : > { %v676_v35 = vadd.f32 %v668_v33, %v660_v32 }
 0x2a7   : > { %681 = vst.msk [vmem:[#allocation3 + $0x8] sm:$0xff] %vm336_vm2, %v676_v35 }
 0x2a8   : > { %v671_v37 = vpop.xlane.xlu0 %670 }
 0x2a9   : > { %v677_v39 = vadd.f32 %v671_v37, %v661_v36 }
 0x2ab   : > { %682 = vst.msk [vmem:[#allocation3 + $0x10] sm:$0xff] %vm336_vm2, %v677_v39 }
 0x2ac   : > { %v674_v42 = vpop.xlane.xlu1 %673 }
 0x2ad   : > { %v678_v44 = vadd.f32 %v674_v42, %v662_v40 }
 0x2ae   : > { %v928_v45 = vld [vmem:[#allocation3 + $0x8] sm:$0xff] }
 0x2af   : > { %683 = vst.msk [vmem:[#allocation3 + $0x18] sm:$0xff] %vm336_vm2, %v678_v44  ;;  %1265 = vrcp.f32 %v928_v45 }
 0x2b0   : > { %v665_v47 = vpop.xlane.xlu1 %664  ;;  %v701_v1 = vpop.permute.xlu0 %700 }
 0x2b1   : > { %v675_v48 = vadd.f32 %v665_v47, %v659_v46  ;;  %v710_v6 = vmul.f32 %v701_v1, %v686_v63 }
 0x2b2   : > { %v929_v49 = vld [vmem:[#allocation3 + $0x10] sm:$0xff] }
 0x2b3   : > { %680 = vst.msk [vmem:[#allocation3] sm:$0xff] %vm336_vm2, %v675_v48  ;;  %1267 = vrcp.f32 %v929_v49 }
 0x2b4   : > { %v696_v57 = vpop.permute.xlu1 %695 }
 0x2b5   : > { %v709_v61 = vmul.f32 %v696_v57, %v685_v56 }
 0x2b6   : > { %v930_v50 = vld [vmem:[#allocation3 + $0x18] sm:$0xff] }
 0x2b7   : > { %1269 = vrcp.f32 %v930_v50 }
 0x2b8   : > { %v706_v9 = vpop.permute.xlu1 %705 }
 0x2b9   : > { %v1266_v51 = vpop.eup %1265  ;;  %v711_v14 = vmul.f32 %v706_v9, %v687_v8 }
 0x2ba   : > { %946 = vperm.xlu1 %1240, %v1266_v51   ;;  %v927_v52 = vld [vmem:[#allocation3] sm:$0xff] }
 0x2bb   : > { %1271 = vrcp.f32 %v927_v52 }
 0x2bd   : > { %v1268_v53 = vpop.eup %1267 }
 0x2be   : > { %951 = vperm.xlu1 %1240, %v1268_v53  }
 0x2c1   : > { %v1270_v54 = vpop.eup %1269 }
 0x2c2   : > { %690 = vperm.xlu1 %1240, %v1264_v41   ;;  %956 = vperm.xlu0 %1239, %v1270_v54  }
 0x2c5   : > { %v1272_v55 = vpop.eup %1271 }
 0x2c6   : > { %941 = vperm.xlu0 %1239, %v1272_v55  }
 0x2e7   : > { %v759_v58 = vpop.f32.mrb[8].mxu0 }
 0x2e8   : > { %v1188_v59 = vpop.f32.mrb[9].mxu0 }
 0x2e9   : > { %v762_v60 = vpop.f32.mrb[10].mxu0 }
 0x2ea   : > { %v1189_v62 = vpop.f32.mrb[11].mxu0 }
 0x2eb   : > { %v808_v2 = vpop.f32.mrb[8].mxu1 }
 0x2ec   : > { %v913_v3 = vadd.f32 %v808_v2, %v709_v61  ;;  %v1194_v4 = vpop.f32.mrb[9].mxu1 }
 0x2ed   : > { %v811_v5 = vpop.f32.mrb[10].mxu1 }
 0x2ee   : > { %917 = vst.msk [vmem:[#allocation4 + $0x8] sm:$0xff] %vm345_vm0, %v913_v3  ;;  %v1195_v7 = vpop.f32.mrb[11].mxu1 }
 0x2ef   : > { %v857_v10 = vpop.f32.mrb[12].mxu0 }
 0x2f0   : > { %v914_v11 = vadd.f32 %v857_v10, %v710_v6  ;;  %v1200_v12 = vpop.f32.mrb[13].mxu0 }
 0x2f1   : > { %v860_v13 = vpop.f32.mrb[14].mxu0 }
 0x2f2   : > { %918 = vst.msk [vmem:[#allocation4 + $0x10] sm:$0xff] %vm345_vm0, %v914_v11  ;;  %v1201_v15 = vpop.f32.mrb[15].mxu0 }
 0x2f3   : > { %v906_v16 = vpop.f32.mrb[12].mxu1 }
 0x2f4   : > { %v915_v17 = vadd.f32 %v906_v16, %v711_v14  ;;  %v1206_v18 = vpop.f32.mrb[13].mxu1 }
 0x2f5   : > { %v909_v19 = vpop.f32.mrb[14].mxu1  ;;  %v936_v21 = vld [vmem:[#allocation4 + $0x8] sm:$0xff] }
 0x2f6   : > { %919 = vst.msk [vmem:[#allocation4 + $0x18] sm:$0xff] %vm345_vm0, %v915_v17  ;;  %v1207_v20 = vpop.f32.mrb[15].mxu1 }
 0x2f9   : > { %v937_v25 = vld [vmem:[#allocation4 + $0x10] sm:$0xff] }
 0x2fd   : > { %v938_v28 = vld [vmem:[#allocation4 + $0x18] sm:$0xff] }
 0x339   : > { %v947_v22 = vpop.permute.xlu1 %946 }
 0x33a   : > { %v960_v23 = vmul.f32 %v947_v22, %v936_v21 }
 0x33c   : > { %964 = vrot.lane.b32.xlu1 %v960_v23, %s1301_s7 }
 0x33d   : > { %v952_v24 = vpop.permute.xlu1 %951 }
 0x33e   : > { %v961_v26 = vmul.f32 %v952_v24, %v937_v25 }
 0x340   : > { %968 = vrot.lane.b32.xlu0 %v961_v26, %s1302_s8 }
 0x341   : > { %v957_v27 = vpop.permute.xlu0 %956  ;;  %v691_v29 = vpop.permute.xlu1 %690 }
 0x342   : > { %v962_v30 = vmul.f32 %v957_v27, %v938_v28  ;;  %v708_v31 = vmul.f32 %v691_v29, %v684_v0 }
 0x344   : > { %v912_v32 = vadd.f32 %v759_v58, %v708_v31  ;;  %972 = vrot.lane.b32.xlu1 %v962_v30, %s1303_s9 }
 0x345   : > { %v942_v33 = vpop.permute.xlu0 %941 }
 0x346   : > { %916 = vst.msk [vmem:[#allocation4] sm:$0xff] %vm345_vm0, %v912_v32 }
 0x34d   : > { %v935_v34 = vld [vmem:[#allocation4] sm:$0xff] }
 0x34e   : > { %v959_v36 = vmul.f32 %v942_v33, %v935_v34 }
 0x3ae   : > { %v965_v35 = vpop.permute.xlu1 %964 }
 0x3af   : > { %v975_v38 = vsel %vm345_vm0, %v959_v36, %v965_v35 }
 0x3b2   : > { %v969_v37 = vpop.permute.xlu0 %968 }
 0x3b3   : > { %v976_v39 = vsel %vm594_vm3, %v975_v38, %v969_v37 }
 0x3b6   : > { %v973_v40 = vpop.permute.xlu1 %972 }
 0x3b7   : > { %v978_v41 = vsel %vm977_vm4, %v976_v39, %v973_v40 }
 0x3b8   : > { %v979_v42 = vpack.c.bf16 %v978_v41, %v978_v41 }
 0x3ba   : > { %981 = vst.msk [vmem:[%s330_s13] sm:$0xf] %vm980_vm5, %v979_v42 }
 0x3bb PF: > { %s14_s17 = sadd.s32 1, %s1295_s17   ;;  %s1487_s15 = smov %s1291_s16 }
 0x3bc   : > { %p11_p5 = scmp.ge.s32.totalorder %s14_s17, 4   ;;  %s1488_s16 = smov %s1490_s18 }
 0x3be   :  { %13 = sbr.rel (!%p11_p5) target bundleno = 2 (0x2), region = 83 }

// kernel: bart_decoder_forward.55
= control target key start
LH: loop header
LB: loop body
LE: loop exit
PB: predicated region body
PF: predicated region fallthrough
CT: control target
= control target key end

     0   :  { %s779_s15 = smov 0   ;;  %s781_s16 = smov 0   ;;  %s871_s0 = inlined_call_operand.vmem [shape: bf16[16,32], index: 0, kind: input, shape index: {}]   ;;  %s872_s1 = inlined_call_operand.vmem [shape: bf16[32,384], index: 1, kind: input, shape index: {}]   ;;  %s873_s2 = inlined_call_operand.vmem [shape: f32[16,1], index: 2, kind: input, shape index: {}]   ;;  %s874_s3 = inlined_call_operand.vmem [shape: f32[16,1], index: 3, kind: input, shape index: {}]   ;;  %s875_s4 = inlined_call_operand.vmem [shape: bf16[16,384], index: 4, kind: output, shape index: {}]  }
   0x1   :  { %s783_s17 = smov 0   ;;  %s785_s18 = smov 0  }
   0x2   :  { %s787_s19 = smov 0  }
   0x3 LB: > { %s23_s20 = sadd.s32 1, %s745_s18  ;;  %s614_s21 = sadd.s32 4294967295, %s749_s19   ;;  %s749_s19 = sphi %s787_s19, %s14_s19   ;;  %s745_s18 = sphi %s785_s18, %s880_s18   ;;  %s741_s17 = sphi %s783_s17, %s879_s17   ;;  %s737_s16 = sphi %s781_s16, %s878_s16   ;;  %s733_s15 = sphi %s779_s15, %s877_s15  }
   0x4   : > { %p24_p0 = scmp.ge.s32.totalorder %s23_s20, 3  ;;  %p66_p1 = scmp.ne.s32.totalorder %s737_s16, %s733_s15 }
   0x5   : > { %p67_p2 = scmp.eq.s32.totalorder %s749_s19, 0  ;;  %p150_p4 = scmp.eq.s32.totalorder %s614_s21, 2 }
   0x6   : > { %s882_s20 = smov (%p24_p0, %s23_s20), 0  ;;  %s59_s23 = sadd.s32 1, %s737_s16 }
   0x7   : > { %p68_p3 = por %p67_p2, %p66_p1  ;;  %s56_s22 = ssub.s32 %s745_s18, %s882_s20 }
   0x8   : > { %p57_p5 = scmp.eq.s32.totalorder %s56_s22, 0  ;;  %p814_p6 = por %p150_p4, %p66_p1 }
   0x9   : > { %p620_p7 = scmp.ge.s32.totalorder %s749_s19, 3 }
   0xa   : > { %s819_s25 = scalar_select %p57_p5, %s737_s16, %s59_s23  }
   0xb   : > { %199 = sbr.rel (%p620_p7) target bundleno = 25 (0x19), region = 28 }
  0x12   : > { %202 = sbr.rel (!%p68_p3) target bundleno = 25 (0x19), region = 32  ;;  %s204_s26 = sand.u32 (%p68_p3), 1, %s737_s16  }
  0x13   : > { %s622_s27 = sshll.u32 (%p68_p3), %s745_s18, 2  ;;  %s621_s28 = sshll.u32 (%p68_p3), %s204_s26, 4 }
  0x14   : > { %s208_s5 = scalar_lea.vmem (%p68_p3), %s872_s1, %s622_s27  ;;  %s206_s6 = scalar_lea.vmem (%p68_p3), [#allocation2], %s621_s28 }
  0x15   : > { %v224_v0 = vld [vmem:[%s208_s5] sm:$0xf] (%p68_p3)  ;;  %v226_v1 = vld [vmem:[%s208_s5 + $0xc] sm:$0xf] (%p68_p3)  ;;  %v228_v2 = vld [vmem:[%s208_s5 + $0x18] sm:$0xf] (%p68_p3) }
  0x16   : > { %225 = vst [vmem:[%s206_s6] sm:$0xf] (%p68_p3), %v224_v0  ;;  %227 = vst [vmem:[%s206_s6 + $0x4] sm:$0xf] (%p68_p3), %v226_v1  ;;  %v230_v3 = vld [vmem:[%s208_s5 + $0x24] sm:$0xf] (%p68_p3) }
  0x17   : > { %229 = vst [vmem:[%s206_s6 + $0x8] sm:$0xf] (%p68_p3), %v228_v2  ;;  %231 = vst [vmem:[%s206_s6 + $0xc] sm:$0xf] (%p68_p3), %v230_v3 }
  0x19 PF: > { %p623_p8 = scmp.ge.s32.totalorder %s749_s19, 1  ;;  %p261_p9 = scmp.lt.s32.totalorder %s749_s19, 4 }
  0x1b   : > { %p262_p10 = pnand %p623_p8, %p261_p9 }
  0x1c   : > { %s268_s7 = sand.u32 (!%p262_p10), 1, %s733_s15   ;;  %v751_v4 = vmov (!%p262_p10), 0.0   ;;  %vm752_vm0 = vmmov (!%p262_p10), 0   ;;  %v753_v5 = vmov (!%p262_p10), 0   ;;  %v395_v6 = vld [vmem:[%s873_s2] sm:$0xff] (!%p262_p10)  ;;  %v396_v9 = vld [vmem:[%s873_s2 + $0x8] sm:$0xff] (!%p262_p10)  ;;  %v429_v24 = vlaneseq (!%p262_p10) }
  0x1d   : > { %265 = sbr.rel (%p262_p10) target bundleno = 282 (0x11a), region = 73  ;;  %647 = vmatprep.subr.bf16.mxu0 (!%p262_p10), %v751_v4  ;;  %s624_s8 = sshll.u32 (!%p262_p10), %s268_s7, 4  ;;  %651 = vmatprep.mubr.msk.bf16.mxu0 (!%p262_p10), %vm752_vm0, %v751_v4  ;;  %v413_v7 = vld [vmem:[%s874_s3] sm:$0xff] (!%p262_p10)  ;;  %v414_v11 = vld [vmem:[%s874_s3 + $0x8] sm:$0xff] (!%p262_p10)  ;;  %vm350_vm1 = vcmask (!%p262_p10), 261120  }
  0x1e   : > { %698 = vset.pattern.permute.xlu0 (!%p262_p10), %v753_v5  ;;  %699 = vset.pattern.permute.xlu1 (!%p262_p10), %v753_v5  ;;  %s270_s13 = scalar_lea.vmem (!%p262_p10), [#allocation2], %s624_s8  ;;  %v702_v12 = vld [vmem:[%s871_s0] sm:$0xff] (!%p262_p10)   ;;  %s630_s28 = sshll.u32 (!%p262_p10), %s741_s17, 7  ;;  %v430_v26 = vand.u32 (!%p262_p10), 127, %v429_v24 }
  0x1f   : > { %v700_v8 = vld [vmem:[%s270_s13] sm:$0xff] (!%p262_p10)   ;;  %399 = vperm.xlu0 (!%p262_p10), %698, %v395_v6   ;;  %417 = vperm.xlu1 (!%p262_p10), %699, %v413_v7   ;;  %v701_v10 = vld [vmem:[%s270_s13 + $0x8] sm:$0xff] (!%p262_p10)   ;;  %v432_v27 = vstv (!%p262_p10), %s630_s28  ;;  %s625_s29 = sshll.u32 (!%p262_p10), %s268_s7, 3 }
  0x20   : > { %648 = vmatpush3.bf16.msra.mxu0 (!%p262_p10), %v700_v8  ;;  %v433_v28 = vadd.s32 (!%p262_p10), %v432_v27, %v430_v26  ;;  %s306_s30 = scalar_lea.vmem (!%p262_p10), [#allocation3], %s625_s29 }
  0x21   : > { %649 = vmatprep.subr.bf16.mxu0 (!%p262_p10), %v751_v4 }
  0x22   : > { %vm434_vm2 = vcmp.lt.s32.totalorder (!%p262_p10), %v433_v28, 300 }
  0x23   : > { %404 = vperm.xlu0 (!%p262_p10), %698, %v396_v9   ;;  %422 = vperm.xlu1 (!%p262_p10), %699, %v414_v11  }
  0x24   : > { %650 = vmatpush3.bf16.msra.mxu0 %v701_v10  ;;  %s634_s5 = sshll.u32 (%p814_p6), %s741_s17, 2 }
  0x25   : > { %s458_s9 = scalar_lea.vmem (%p814_p6), %s875_s4, %s634_s5 }
  0x27   : > { %652 = vmatmul.mubr.msk.bf16.vlgmr.msra.gmra.mrb[0].mxu0 %vm350_vm1, %v702_v12 }
  0x9e   : > { %v400_v13 = vpop.permute.xlu0 %399  ;;  %v418_v14 = vpop.permute.xlu1 %417 }
  0x9f   : > { %703 = vrcp.f32 %v418_v14 }
  0xa2   : > { %v405_v18 = vpop.permute.xlu0 %404  ;;  %v423_v21 = vpop.permute.xlu1 %422 }
  0xa9   : > { %v704_v29 = vpop.eup %703 }
  0xfa   : > { %v388_v15 = vpop.f32.mrb[0].mxu0 }
  0xfb   : > { %v407_v16 = vsub.f32 %v388_v15, %v400_v13  ;;  %v653_v17 = vpop.f32.mrb[1].mxu0 }
  0xfc   : > { %v391_v19 = vpop.f32.mrb[2].mxu0 }
  0xfd   : > { %v409_v20 = vmul.f32 1.442695, %v407_v16  ;;  %v408_v22 = vsub.f32 %v391_v19, %v405_v18  ;;  %v654_v23 = vpop.f32.mrb[3].mxu0 }
  0xff   : > { %705 = vpow2.f32 %v409_v20  ;;  %v411_v25 = vmul.f32 1.442695, %v408_v22 }
 0x100   : > { %707 = vrcp.f32 %v423_v21 }
 0x101   : > { %709 = vpow2.f32 %v411_v25 }
 0x109   : > { %v706_v30 = vpop.eup %705 }
 0x10a   : > { %v708_v31 = vpop.eup %707  ;;  %v426_v32 = vmul.f32 %v706_v30, %v704_v29 }
 0x10b   : > { %v710_v33 = vpop.eup %709  ;;  %453 = sbr.rel (!%p814_p6) target bundleno = 282 (0x11a), region = 81 }
 0x10c   : > { %v428_v34 = vmul.f32 %v710_v33, %v708_v31  ;;  %v435_v35 = vsel %vm434_vm2, %v426_v32, 0.0 }
 0x10e   : > { %v436_v36 = vsel %vm434_vm2, %v428_v34, 0.0 }
 0x10f   : > { %v642_v37 = vpack.c.bf16 %v436_v36, %v435_v35 }
 0x111   : > { %643 = vst [vmem:[%s306_s30] sm:$0xff] %v642_v37  }
 0x118   : > { %v474_v38 = vld [vmem:[%s306_s30] sm:$0xf]  ;;  %v476_v39 = vld [vmem:[%s306_s30 + $0x4] sm:$0xf] }
 0x119   : > { %475 = vst [vmem:[%s458_s9] sm:$0xf] %v474_v38  ;;  %477 = vst [vmem:[%s458_s9 + $0xc] sm:$0xf] %v476_v39 }
 0x11a PF: > { %s14_s19 = sadd.s32 1, %s749_s19   ;;  %s877_s15 = smov %s737_s16 }
 0x11b   : > { %p11_p11 = scmp.ge.s32.totalorder %s14_s19, 5   ;;  %s878_s16 = smov %s819_s25 }
 0x11c   : > { %s879_s17 = smov %s745_s18  ;;  %s880_s18 = smov %s882_s20 }
 0x11d   :  { %13 = sbr.rel (!%p11_p11) target bundleno = 3 (0x3), region = 162 }

</bundles_post_ra>
